<compile_context>
chip_gen: v5e
topology: v5e:2x2
jax: 0.10.0
libtpu: 0.0.40
codegen_flags: <defaults>
</compile_context>

<pallas_src>
import functools

import jax
import jax.numpy as jnp
from jax.experimental import pallas as pl
from jax.experimental.pallas import tpu as pltpu


# ------------------------------ Fused kernel ------------------------------

def _dec_block_kernel(
    # activations / masks
    q_ref, k_ref, qmc_ref, qmr_ref, kmr_ref,
    # self-attention (causal) params
    s_wqkv_ref, s_bqkv_ref, s_wo_ref, s_bo_ref, ln1g_ref, ln1b_ref,
    # cross-attention params
    c_wq_ref, c_bq_ref, c_wkv_ref, c_bkv_ref, c_wo_ref, c_bo_ref,
    ln2g_ref, ln2b_ref,
    # feed-forward params
    ffw1_ref, ffb1_ref, ffw2_ref, ffb2_ref, ln3g_ref, ln3b_ref,
    # output
    o_ref,
    *, head_num, head_dims, eps):
    NEG = jnp.float32(-1e30)
    H, Dh = head_num, head_dims
    hid = H * Dh

    bb, Lq, Dq = q_ref.shape
    _, Lk, Dk = k_ref.shape
    M = bb * Lq

    x = q_ref[...].astype(jnp.float32).reshape(M, Dq)          # decoder state
    enc = k_ref[...].astype(jnp.float32).reshape(bb * Lk, Dk)  # encoder memory
    qm_col = qmc_ref[...].reshape(M, 1)                        # 1 = valid token

    def mm(a, w_ref, b_ref):
        # f32 activation -> bf16 MXU matmul with bf16 weights, f32 accum + bias.
        y = jnp.dot(a.astype(jnp.bfloat16), w_ref[...],
                    preferred_element_type=jnp.float32)
        return y + b_ref[...]

    def heads(z, col0):
        # Gather the H per-head [T, Dh] lane slices starting at column `col0`
        # into one head-leading [H, T, Dh] operand (done once per block).
        return jnp.stack(
            [z[:, col0 + h * Dh: col0 + (h + 1) * Dh] for h in range(H)],
            axis=0)

    def mha(q_h, k_h, v_h, valid):
        # q_h [H,Tq,Dh], k_h/v_h [H,Tk,Dh]; valid broadcastable to [H,Tq,Tk].
        s = jnp.einsum('hqd,hkd->hqk',
                       q_h.astype(jnp.bfloat16), k_h.astype(jnp.bfloat16),
                       preferred_element_type=jnp.float32)     # [H,Tq,Tk]
        s = jnp.where(valid, s, NEG)                           # fused mask
        m = jnp.max(s, axis=-1, keepdims=True)
        e = jnp.exp(s - m)
        inv = pl.reciprocal(jnp.sum(e, axis=-1, keepdims=True), approx=True)
        o = jnp.einsum('hqk,hkd->hqd',
                       e.astype(jnp.bfloat16), v_h.astype(jnp.bfloat16),
                       preferred_element_type=jnp.float32)     # [H,Tq,Dh]
        o = o * inv                                            # normalize after PV
        # heads -> tokens: one lane-concat, no scratch round-trip.
        return jnp.concatenate([o[h] for h in range(H)], axis=-1)  # [Tq, hid]

    def add_ln(y, res, g_ref, b_ref):
        z = y + res
        mu = jnp.mean(z, axis=-1, keepdims=True)
        var = jnp.mean(jnp.square(z - mu), axis=-1, keepdims=True)
        return (z - mu) * jax.lax.rsqrt(var + eps) * g_ref[...] + b_ref[...]

    row = jax.lax.broadcasted_iota(jnp.int32, (Lq, Lq), 0)
    col = jax.lax.broadcasted_iota(jnp.int32, (Lq, Lq), 1)
    causal_ok = col <= row                                     # [Lq, Lq] bool

    # ---- 1) residual causal self-attention + LayerNorm ----
    qkv = mm(x, s_wqkv_ref, s_bqkv_ref)                        # [M, 3*hid]
    att_rows = []
    for b in range(bb):                                        # batch can't mix in attn
        z = qkv[b * Lq:(b + 1) * Lq]                           # [Lq, 3*hid]
        q_h = heads(z, 0)
        k_h = heads(z, hid)
        v_h = heads(z, 2 * hid)
        valid = causal_ok & (qmr_ref[b] != 0.0)                # [Lq,Lq] & [1,Lq]
        att_rows.append(mha(q_h, k_h, v_h, valid))
    att = jnp.concatenate(att_rows, axis=0)                    # [M, hid]
    att = mm(att, s_wo_ref, s_bo_ref) * qm_col                 # [M, Dq]
    x = add_ln(att, x, ln1g_ref, ln1b_ref)

    # ---- 2) residual cross-attention + LayerNorm ----
    qc = mm(x, c_wq_ref, c_bq_ref)                             # [M, hid]
    kv = mm(enc, c_wkv_ref, c_bkv_ref)                         # [bb*Lk, 2*hid]
    att_rows = []
    for b in range(bb):
        q_h = heads(qc[b * Lq:(b + 1) * Lq], 0)
        zk = kv[b * Lk:(b + 1) * Lk]
        k_h = heads(zk, 0)
        v_h = heads(zk, hid)
        valid = kmr_ref[b] != 0.0                              # [1, Lk]
        att_rows.append(mha(q_h, k_h, v_h, valid))
    att = jnp.concatenate(att_rows, axis=0)                    # [M, hid]
    att = mm(att, c_wo_ref, c_bo_ref) * qm_col                 # [M, Dq]
    x = add_ln(att, x, ln2g_ref, ln2b_ref)

    # ---- 3) residual feed-forward (LeakyReLU 0.01) + LayerNorm ----
    hmid = mm(x, ffw1_ref, ffb1_ref)                           # [M, ff_hid]
    hmid = jnp.where(hmid > 0, hmid, jnp.float32(0.01) * hmid)
    y = mm(hmid, ffw2_ref, ffb2_ref) * qm_col                  # [M, Dq]
    x = add_ln(y, x, ln3g_ref, ln3b_ref)

    o_ref[...] = x.reshape(bb, Lq, Dq).astype(o_ref.dtype)


# ------------------------------ Wrapper ------------------------------

def _pick_batch_block(B, Lq, min_steps=2, target_rows=256):
    """Batch elements per grid step: fill M on v5e/v6e, keep >=2 steps for v7x."""
    bb = max(1, min(B, target_rows // max(Lq, 1)))
    while bb > 1 and B // bb < min_steps:
        bb -= 1
    while B % bb:
        bb -= 1
    return bb


def _pick_vmem_limit():
    """~3/4 of physical VMEM (v7x ~48 MiB, v5e/v6e up to ~96 MiB), safe fallback."""
    try:
        cap = int(pltpu.get_tpu_info().vmem_capacity_bytes)
    except Exception:
        return 48 * 1024 * 1024
    return int(min(max(cap - cap // 4, 32 * 1024 * 1024), 100 * 1024 * 1024))


def dec_block(query, key, query_mask, key_mask, params, head_num, head_dims,
              batch_block=None):
    B, Lq, Dq = query.shape
    _, Lk, Dk = key.shape

    bb = _pick_batch_block(B, Lq) if batch_block is None else batch_block
    assert B % bb == 0, (B, bb)
    steps = B // bb

    qm = query_mask.astype(jnp.float32)
    km = key_mask.astype(jnp.float32)
    qm_col = qm.reshape(B, Lq, 1)    # output masking (column)
    qm_row = qm.reshape(B, 1, Lq)    # self-attn key mask (row)
    km_row = km.reshape(B, 1, Lk)    # cross-attn key mask (row)

    in_arrays = [
        query, key, qm_col, qm_row, km_row,
        params["s_wqkv"], params["s_bqkv"], params["s_wo"], params["s_bo"],
        params["ln1_g"], params["ln1_b"],
        params["c_wq"], params["c_bq"], params["c_wkv"], params["c_bkv"],
        params["c_wo"], params["c_bo"], params["ln2_g"], params["ln2_b"],
        params["ff_w1"], params["ff_b1"], params["ff_w2"], params["ff_b2"],
        params["ln3_g"], params["ln3_b"],
    ]

    def data_spec(shape):
        nd = len(shape)
        blk = (bb,) + tuple(shape[1:])
        return pl.BlockSpec(blk, lambda g, _n=nd: (g,) + (0,) * (_n - 1))

    def const_spec(shape, mode):
        nd = len(shape)
        idx = lambda g, _n=nd: (0,) * _n
        if mode is None:
            return pl.BlockSpec(tuple(shape), idx)
        return pl.BlockSpec(tuple(shape), idx, pipeline_mode=mode)

    kernel = functools.partial(_dec_block_kernel, head_num=head_num,
                               head_dims=head_dims, eps=1e-5)

    def build(weight_mode):
        in_specs = ([data_spec(a.shape) for a in in_arrays[:5]]
                    + [const_spec(a.shape, weight_mode) for a in in_arrays[5:]])
        return pl.pallas_call(
            kernel,
            out_shape=jax.ShapeDtypeStruct((B, Lq, Dq), query.dtype),
            grid=(steps,),
            in_specs=in_specs,
            out_specs=pl.BlockSpec((bb, Lq, Dq), lambda g: (g, 0, 0)),
            compiler_params=pltpu.CompilerParams(
                dimension_semantics=("parallel",),
                vmem_limit_bytes=_pick_vmem_limit()),
        )

    try:
        # Constant (grid-invariant) weights only need a single VMEM buffer.
        return build(pl.Buffered(1))(*in_arrays)
    except Exception:
        # TODO(synk): pl.Buffered(1) pipeline_mode unsupported on this jax
        # version; fall back to default double-buffered weights.
        return build(None)(*in_arrays)


# ------------------------------ Parameter init ------------------------------

def init_dec_block_params(rng, query_dims, key_dims, ff_hid, head_num, head_dims):
    hid = head_num * head_dims
    scale = float(head_dims) ** (-0.5)
    ks = iter(jax.random.split(rng, 32))

    def w(i, o):
        return jax.random.normal(next(ks), (i, o), jnp.float32) * 0.1

    def b(o):
        return jax.random.normal(next(ks), (o,), jnp.float32) * 0.01

    def wgt(x):            # matmul weights stored bf16 for the MXU
        return x.astype(jnp.bfloat16)

    def vec(x):            # biases / LN params as f32 row vectors [1, N]
        return x.reshape(1, -1).astype(jnp.float32)

    # self-attention (causal): fused QKV; head_dims**-0.5 folded into Q weights+bias
    s_wq, s_wk, s_wv = w(query_dims, hid), w(query_dims, hid), w(query_dims, hid)
    s_bq, s_bk, s_bv = b(hid), b(hid), b(hid)
    s_wqkv = jnp.concatenate([s_wq * scale, s_wk, s_wv], axis=1)
    s_bqkv = jnp.concatenate([s_bq * scale, s_bk, s_bv], axis=0)
    s_wo, s_bo = w(hid, query_dims), b(query_dims)

    # cross-attention: Q from decoder state (pre-scaled), fused KV from encoder
    c_wq, c_bq = w(query_dims, hid), b(hid)
    c_wk, c_wv = w(key_dims, hid), w(key_dims, hid)
    c_bk, c_bv = b(hid), b(hid)
    c_wkv = jnp.concatenate([c_wk, c_wv], axis=1)
    c_bkv = jnp.concatenate([c_bk, c_bv], axis=0)
    c_wo, c_bo = w(hid, query_dims), b(query_dims)

    ff_w1, ff_b1 = w(query_dims, ff_hid), b(ff_hid)
    ff_w2, ff_b2 = w(ff_hid, query_dims), b(query_dims)

    ones = jnp.ones((query_dims,), jnp.float32)
    zeros = jnp.zeros((query_dims,), jnp.float32)

    return {
        "s_wqkv": wgt(s_wqkv), "s_bqkv": vec(s_bqkv),
        "s_wo": wgt(s_wo), "s_bo": vec(s_bo),
        "ln1_g": vec(ones), "ln1_b": vec(zeros),
        "c_wq": wgt(c_wq * scale), "c_bq": vec(c_bq * scale),
        "c_wkv": wgt(c_wkv), "c_bkv": vec(c_bkv),
        "c_wo": wgt(c_wo), "c_bo": vec(c_bo),
        "ln2_g": vec(ones), "ln2_b": vec(zeros),
        "ff_w1": wgt(ff_w1), "ff_b1": vec(ff_b1),
        "ff_w2": wgt(ff_w2), "ff_b2": vec(ff_b2),
        "ln3_g": vec(ones), "ln3_b": vec(zeros),
    }


# ----------------------------------- Main -----------------------------------

if __name__ == "__main__":
    B, Lq, Lk = 4, 8, 8
    QUERY_DIMS, KEY_DIMS = 32, 32
    HEAD_NUM, HEAD_DIMS = 4, 8
    FF_HID = 64

    root = jax.random.PRNGKey(0)
    k_q, k_k, k_p = jax.random.split(root, 3)

    query = jax.random.normal(k_q, (B, Lq, QUERY_DIMS), jnp.float32)
    key = jax.random.normal(k_k, (B, Lk, KEY_DIMS), jnp.float32)
    # 1 = valid token, 0 = pad (pad_idx = 0)
    query_mask = (jnp.ones((B, Lq), jnp.float32)
                  .at[1, Lq - 1].set(0.0)
                  .at[3, Lq - 2:].set(0.0))
    key_mask = jnp.ones((B, Lk), jnp.float32).at[:, Lk - 1].set(0.0)

    params = init_dec_block_params(k_p, QUERY_DIMS, KEY_DIMS, FF_HID,
                                   HEAD_NUM, HEAD_DIMS)

    out = dec_block(query, key, query_mask, key_mask, params,
                    HEAD_NUM, HEAD_DIMS)
    out = jax.block_until_ready(out)

    assert out.shape == (B, Lq, QUERY_DIMS), out.shape
    assert bool(jnp.all(jnp.isfinite(out)))
    print("KERNEL_OK")
</pallas_src>

<mosaic_0001>
module attributes {stable_mosaic.version = 11 : i64} {
  func.func @_dec_block_kernel(%arg0: i32, %arg1: memref<2x8x32xf32, #tpu.memory_space<vmem>>, %arg2: memref<2x8x32xf32, #tpu.memory_space<vmem>>, %arg3: memref<2x8x1xf32, #tpu.memory_space<vmem>>, %arg4: memref<2x1x8xf32, #tpu.memory_space<vmem>>, %arg5: memref<2x1x8xf32, #tpu.memory_space<vmem>>, %arg6: memref<32x96xbf16, #tpu.memory_space<vmem>>, %arg7: memref<1x96xf32, #tpu.memory_space<vmem>>, %arg8: memref<32x32xbf16, #tpu.memory_space<vmem>>, %arg9: memref<1x32xf32, #tpu.memory_space<vmem>>, %arg10: memref<1x32xf32, #tpu.memory_space<vmem>>, %arg11: memref<1x32xf32, #tpu.memory_space<vmem>>, %arg12: memref<32x32xbf16, #tpu.memory_space<vmem>>, %arg13: memref<1x32xf32, #tpu.memory_space<vmem>>, %arg14: memref<32x64xbf16, #tpu.memory_space<vmem>>, %arg15: memref<1x64xf32, #tpu.memory_space<vmem>>, %arg16: memref<32x32xbf16, #tpu.memory_space<vmem>>, %arg17: memref<1x32xf32, #tpu.memory_space<vmem>>, %arg18: memref<1x32xf32, #tpu.memory_space<vmem>>, %arg19: memref<1x32xf32, #tpu.memory_space<vmem>>, %arg20: memref<32x64xbf16, #tpu.memory_space<vmem>>, %arg21: memref<1x64xf32, #tpu.memory_space<vmem>>, %arg22: memref<64x32xbf16, #tpu.memory_space<vmem>>, %arg23: memref<1x32xf32, #tpu.memory_space<vmem>>, %arg24: memref<1x32xf32, #tpu.memory_space<vmem>>, %arg25: memref<1x32xf32, #tpu.memory_space<vmem>>, %arg26: memref<2x8x32xf32, #tpu.memory_space<vmem>>) attributes {dimension_semantics = [#tpu.dimension_semantics<parallel>], iteration_bounds = array<i64: 2>, scalar_prefetch = 0 : i64, scratch_operands = 0 : i64, tpu.core_type = #tpu.core_type<tc>, window_params = [{transform_indices = @transform_0, window_bounds = array<i64: 2, 8, 32>}, {transform_indices = @transform_1, window_bounds = array<i64: 2, 8, 32>}, {transform_indices = @transform_2, window_bounds = array<i64: 2, 8, 1>}, {transform_indices = @transform_3, window_bounds = array<i64: 2, 1, 8>}, {transform_indices = @transform_4, window_bounds = array<i64: 2, 1, 8>}, {pipeline_mode = #tpu.pipeline_mode<synchronous>, transform_indices = @transform_5, window_bounds = array<i64: 32, 96>}, {pipeline_mode = #tpu.pipeline_mode<synchronous>, transform_indices = @transform_6, window_bounds = array<i64: 1, 96>}, {pipeline_mode = #tpu.pipeline_mode<synchronous>, transform_indices = @transform_7, window_bounds = array<i64: 32, 32>}, {pipeline_mode = #tpu.pipeline_mode<synchronous>, transform_indices = @transform_8, window_bounds = array<i64: 1, 32>}, {pipeline_mode = #tpu.pipeline_mode<synchronous>, transform_indices = @transform_9, window_bounds = array<i64: 1, 32>}, {pipeline_mode = #tpu.pipeline_mode<synchronous>, transform_indices = @transform_10, window_bounds = array<i64: 1, 32>}, {pipeline_mode = #tpu.pipeline_mode<synchronous>, transform_indices = @transform_11, window_bounds = array<i64: 32, 32>}, {pipeline_mode = #tpu.pipeline_mode<synchronous>, transform_indices = @transform_12, window_bounds = array<i64: 1, 32>}, {pipeline_mode = #tpu.pipeline_mode<synchronous>, transform_indices = @transform_13, window_bounds = array<i64: 32, 64>}, {pipeline_mode = #tpu.pipeline_mode<synchronous>, transform_indices = @transform_14, window_bounds = array<i64: 1, 64>}, {pipeline_mode = #tpu.pipeline_mode<synchronous>, transform_indices = @transform_15, window_bounds = array<i64: 32, 32>}, {pipeline_mode = #tpu.pipeline_mode<synchronous>, transform_indices = @transform_16, window_bounds = array<i64: 1, 32>}, {pipeline_mode = #tpu.pipeline_mode<synchronous>, transform_indices = @transform_17, window_bounds = array<i64: 1, 32>}, {pipeline_mode = #tpu.pipeline_mode<synchronous>, transform_indices = @transform_18, window_bounds = array<i64: 1, 32>}, {pipeline_mode = #tpu.pipeline_mode<synchronous>, transform_indices = @transform_19, window_bounds = array<i64: 32, 64>}, {pipeline_mode = #tpu.pipeline_mode<synchronous>, transform_indices = @transform_20, window_bounds = array<i64: 1, 64>}, {pipeline_mode = #tpu.pipeline_mode<synchronous>, transform_indices = @transform_21, window_bounds = array<i64: 64, 32>}, {pipeline_mode = #tpu.pipeline_mode<synchronous>, transform_indices = @transform_22, window_bounds = array<i64: 1, 32>}, {pipeline_mode = #tpu.pipeline_mode<synchronous>, transform_indices = @transform_23, window_bounds = array<i64: 1, 32>}, {pipeline_mode = #tpu.pipeline_mode<synchronous>, transform_indices = @transform_24, window_bounds = array<i64: 1, 32>}, {transform_indices = @transform_25, window_bounds = array<i64: 2, 8, 32>}]} {
    %c0 = arith.constant 0 : index
    %c0_0 = arith.constant 0 : index
    %c0_1 = arith.constant 0 : index
    %0 = vector.load %arg1[%c0, %c0_0, %c0_1] : memref<2x8x32xf32, #tpu.memory_space<vmem>>, vector<2x8x32xf32>
    %1 = vector.shape_cast %0 : vector<2x8x32xf32> to vector<16x32xf32>
    %c0_2 = arith.constant 0 : index
    %c0_3 = arith.constant 0 : index
    %c0_4 = arith.constant 0 : index
    %2 = vector.load %arg2[%c0_2, %c0_3, %c0_4] : memref<2x8x32xf32, #tpu.memory_space<vmem>>, vector<2x8x32xf32>
    %3 = vector.shape_cast %2 : vector<2x8x32xf32> to vector<16x32xf32>
    %c0_5 = arith.constant 0 : index
    %c0_6 = arith.constant 0 : index
    %c0_7 = arith.constant 0 : index
    %4 = vector.load %arg3[%c0_5, %c0_6, %c0_7] : memref<2x8x1xf32, #tpu.memory_space<vmem>>, vector<2x8x1xf32>
    %5 = vector.shape_cast %4 : vector<2x8x1xf32> to vector<16x1xf32>
    %6 = tpu.iota {dimensions = array<i32: 0>} : vector<8x8xi32>
    %7 = tpu.iota {dimensions = array<i32: 1>} : vector<8x8xi32>
    %8 = arith.cmpi sle, %7, %6 : vector<8x8xi32>
    %9 = arith.truncf %1 : vector<16x32xf32> to vector<16x32xbf16>
    %c0_8 = arith.constant 0 : index
    %c0_9 = arith.constant 0 : index
    %10 = vector.load %arg6[%c0_8, %c0_9] : memref<32x96xbf16, #tpu.memory_space<vmem>>, vector<32x96xbf16>
    %cst = arith.constant dense<0.000000e+00> : vector<16x96xf32>
    %11 = tpu.matmul %9, %10, %cst {dimension_numbers = #tpu.dot_dimension_numbers<[1], [0], [0], [1], [0, 0, 1, 1], [], []>} : vector<16x32xbf16>, vector<32x96xbf16>, vector<16x96xf32> -> vector<16x96xf32>
    %c0_10 = arith.constant 0 : index
    %c0_11 = arith.constant 0 : index
    %12 = vector.load %arg7[%c0_10, %c0_11] : memref<1x96xf32, #tpu.memory_space<vmem>>, vector<1x96xf32>
    %13 = vector.broadcast %12 : vector<1x96xf32> to vector<16x96xf32>
    %14 = arith.addf %11, %13 : vector<16x96xf32>
    %15 = vector.extract_strided_slice %14 {offsets = [0, 0], sizes = [8, 96], strides = [1, 1]} : vector<16x96xf32> to vector<8x96xf32>
    %16 = vector.extract_strided_slice %15 {offsets = [0, 0], sizes = [8, 8], strides = [1, 1]} : vector<8x96xf32> to vector<8x8xf32>
    %17 = vector.extract_strided_slice %15 {offsets = [0, 8], sizes = [8, 8], strides = [1, 1]} : vector<8x96xf32> to vector<8x8xf32>
    %18 = vector.extract_strided_slice %15 {offsets = [0, 16], sizes = [8, 8], strides = [1, 1]} : vector<8x96xf32> to vector<8x8xf32>
    %19 = vector.extract_strided_slice %15 {offsets = [0, 24], sizes = [8, 8], strides = [1, 1]} : vector<8x96xf32> to vector<8x8xf32>
    %20 = vector.shape_cast %16 : vector<8x8xf32> to vector<1x8x8xf32>
    %21 = vector.shape_cast %17 : vector<8x8xf32> to vector<1x8x8xf32>
    %22 = vector.shape_cast %18 : vector<8x8xf32> to vector<1x8x8xf32>
    %23 = vector.shape_cast %19 : vector<8x8xf32> to vector<1x8x8xf32>
    %24 = tpu.concatenate %20, %21, %22, %23 in 0 : vector<1x8x8xf32>, vector<1x8x8xf32>, vector<1x8x8xf32>, vector<1x8x8xf32> -> vector<4x8x8xf32>
    %25 = vector.extract_strided_slice %15 {offsets = [0, 32], sizes = [8, 8], strides = [1, 1]} : vector<8x96xf32> to vector<8x8xf32>
    %26 = vector.extract_strided_slice %15 {offsets = [0, 40], sizes = [8, 8], strides = [1, 1]} : vector<8x96xf32> to vector<8x8xf32>
    %27 = vector.extract_strided_slice %15 {offsets = [0, 48], sizes = [8, 8], strides = [1, 1]} : vector<8x96xf32> to vector<8x8xf32>
    %28 = vector.extract_strided_slice %15 {offsets = [0, 56], sizes = [8, 8], strides = [1, 1]} : vector<8x96xf32> to vector<8x8xf32>
    %29 = vector.shape_cast %25 : vector<8x8xf32> to vector<1x8x8xf32>
    %30 = vector.shape_cast %26 : vector<8x8xf32> to vector<1x8x8xf32>
    %31 = vector.shape_cast %27 : vector<8x8xf32> to vector<1x8x8xf32>
    %32 = vector.shape_cast %28 : vector<8x8xf32> to vector<1x8x8xf32>
    %33 = tpu.concatenate %29, %30, %31, %32 in 0 : vector<1x8x8xf32>, vector<1x8x8xf32>, vector<1x8x8xf32>, vector<1x8x8xf32> -> vector<4x8x8xf32>
    %34 = vector.extract_strided_slice %15 {offsets = [0, 64], sizes = [8, 8], strides = [1, 1]} : vector<8x96xf32> to vector<8x8xf32>
    %35 = vector.extract_strided_slice %15 {offsets = [0, 72], sizes = [8, 8], strides = [1, 1]} : vector<8x96xf32> to vector<8x8xf32>
    %36 = vector.extract_strided_slice %15 {offsets = [0, 80], sizes = [8, 8], strides = [1, 1]} : vector<8x96xf32> to vector<8x8xf32>
    %37 = vector.extract_strided_slice %15 {offsets = [0, 88], sizes = [8, 8], strides = [1, 1]} : vector<8x96xf32> to vector<8x8xf32>
    %38 = vector.shape_cast %34 : vector<8x8xf32> to vector<1x8x8xf32>
    %39 = vector.shape_cast %35 : vector<8x8xf32> to vector<1x8x8xf32>
    %40 = vector.shape_cast %36 : vector<8x8xf32> to vector<1x8x8xf32>
    %41 = vector.shape_cast %37 : vector<8x8xf32> to vector<1x8x8xf32>
    %42 = tpu.concatenate %38, %39, %40, %41 in 0 : vector<1x8x8xf32>, vector<1x8x8xf32>, vector<1x8x8xf32>, vector<1x8x8xf32> -> vector<4x8x8xf32>
    %c0_12 = arith.constant 0 : index
    %c0_13 = arith.constant 0 : index
    %c0_14 = arith.constant 0 : index
    %43 = vector.load %arg4[%c0_12, %c0_13, %c0_14] : memref<2x1x8xf32, #tpu.memory_space<vmem>>, vector<1x1x8xf32>
    %44 = vector.shape_cast %43 : vector<1x1x8xf32> to vector<1x8xf32>
    %cst_15 = arith.constant 0.000000e+00 : f32
    %45 = vector.broadcast %cst_15 : f32 to vector<1x8xf32>
    %46 = arith.cmpf one, %44, %45 : vector<1x8xf32>
    %47 = vector.broadcast %46 : vector<1x8xi1> to vector<8x8xi1>
    %48 = arith.andi %8, %47 : vector<8x8xi1>
    %49 = arith.truncf %24 : vector<4x8x8xf32> to vector<4x8x8xbf16>
    %50 = arith.truncf %33 : vector<4x8x8xf32> to vector<4x8x8xbf16>
    "tpu.trace_start"() <{level = 10 : i32, message = "hqd,hkd->hqk"}> : () -> ()
    %cst_16 = arith.constant dense<0.000000e+00> : vector<4x8x8xf32>
    %51 = tpu.matmul %49, %50, %cst_16 {dimension_numbers = #tpu.dot_dimension_numbers<[2], [2], [1], [1], [0, 0, 0, 1, 1, 1], [0], [0]>} : vector<4x8x8xbf16>, vector<4x8x8xbf16>, vector<4x8x8xf32> -> vector<4x8x8xf32>
    %cst_17 = arith.constant -1.000000e+30 : f32
    "tpu.trace_stop"() : () -> ()
    %52 = vector.shape_cast %48 : vector<8x8xi1> to vector<1x8x8xi1>
    %53 = vector.broadcast %52 : vector<1x8x8xi1> to vector<4x8x8xi1>
    %54 = vector.broadcast %cst_17 : f32 to vector<4x8x8xf32>
    %55 = arith.select %53, %51, %54 : vector<4x8x8xi1>, vector<4x8x8xf32>
    %cst_18 = arith.constant dense<0xFF800000> : vector<4x8xf32>
    %56 = vector.multi_reduction <maximumf>, %55, %cst_18 [2] : vector<4x8x8xf32> to vector<4x8xf32>
    %57 = vector.shape_cast %56 : vector<4x8xf32> to vector<4x8x1xf32>
    %58 = vector.broadcast %57 : vector<4x8x1xf32> to vector<4x8x8xf32>
    %59 = arith.subf %55, %58 : vector<4x8x8xf32>
    %60 = math.exp %59 : vector<4x8x8xf32>
    %cst_19 = arith.constant dense<0.000000e+00> : vector<4x8xf32>
    %61 = vector.multi_reduction <add>, %60, %cst_19 [2] : vector<4x8x8xf32> to vector<4x8xf32>
    %62 = vector.shape_cast %61 : vector<4x8xf32> to vector<4x8x1xf32>
    %63 = tpu.reciprocal %62 {approx = true} : vector<4x8x1xf32> -> vector<4x8x1xf32>
    %64 = arith.truncf %60 : vector<4x8x8xf32> to vector<4x8x8xbf16>
    %65 = arith.truncf %42 : vector<4x8x8xf32> to vector<4x8x8xbf16>
    "tpu.trace_start"() <{level = 10 : i32, message = "hqk,hkd->hqd"}> : () -> ()
    %cst_20 = arith.constant dense<0.000000e+00> : vector<4x8x8xf32>
    %66 = tpu.matmul %64, %65, %cst_20 {dimension_numbers = #tpu.dot_dimension_numbers<[2], [1], [1], [2], [0, 0, 0, 1, 1, 2], [0], [0]>} : vector<4x8x8xbf16>, vector<4x8x8xbf16>, vector<4x8x8xf32> -> vector<4x8x8xf32>
    "tpu.trace_stop"() : () -> ()
    %67 = vector.broadcast %63 : vector<4x8x1xf32> to vector<4x8x8xf32>
    %68 = arith.mulf %66, %67 : vector<4x8x8xf32>
    %69 = vector.extract_strided_slice %68 {offsets = [0, 0, 0], sizes = [1, 8, 8], strides = [1, 1, 1]} : vector<4x8x8xf32> to vector<1x8x8xf32>
    %70 = vector.shape_cast %69 : vector<1x8x8xf32> to vector<8x8xf32>
    %71 = vector.extract_strided_slice %68 {offsets = [1, 0, 0], sizes = [1, 8, 8], strides = [1, 1, 1]} : vector<4x8x8xf32> to vector<1x8x8xf32>
    %72 = vector.shape_cast %71 : vector<1x8x8xf32> to vector<8x8xf32>
    %73 = vector.extract_strided_slice %68 {offsets = [2, 0, 0], sizes = [1, 8, 8], strides = [1, 1, 1]} : vector<4x8x8xf32> to vector<1x8x8xf32>
    %74 = vector.shape_cast %73 : vector<1x8x8xf32> to vector<8x8xf32>
    %75 = vector.extract_strided_slice %68 {offsets = [3, 0, 0], sizes = [1, 8, 8], strides = [1, 1, 1]} : vector<4x8x8xf32> to vector<1x8x8xf32>
    %76 = vector.shape_cast %75 : vector<1x8x8xf32> to vector<8x8xf32>
    %77 = tpu.concatenate %70, %72, %74, %76 in 1 : vector<8x8xf32>, vector<8x8xf32>, vector<8x8xf32>, vector<8x8xf32> -> vector<8x32xf32>
    %78 = vector.extract_strided_slice %14 {offsets = [8, 0], sizes = [8, 96], strides = [1, 1]} : vector<16x96xf32> to vector<8x96xf32>
    %79 = vector.extract_strided_slice %78 {offsets = [0, 0], sizes = [8, 8], strides = [1, 1]} : vector<8x96xf32> to vector<8x8xf32>
    %80 = vector.extract_strided_slice %78 {offsets = [0, 8], sizes = [8, 8], strides = [1, 1]} : vector<8x96xf32> to vector<8x8xf32>
    %81 = vector.extract_strided_slice %78 {offsets = [0, 16], sizes = [8, 8], strides = [1, 1]} : vector<8x96xf32> to vector<8x8xf32>
    %82 = vector.extract_strided_slice %78 {offsets = [0, 24], sizes = [8, 8], strides = [1, 1]} : vector<8x96xf32> to vector<8x8xf32>
    %83 = vector.shape_cast %79 : vector<8x8xf32> to vector<1x8x8xf32>
    %84 = vector.shape_cast %80 : vector<8x8xf32> to vector<1x8x8xf32>
    %85 = vector.shape_cast %81 : vector<8x8xf32> to vector<1x8x8xf32>
    %86 = vector.shape_cast %82 : vector<8x8xf32> to vector<1x8x8xf32>
    %87 = tpu.concatenate %83, %84, %85, %86 in 0 : vector<1x8x8xf32>, vector<1x8x8xf32>, vector<1x8x8xf32>, vector<1x8x8xf32> -> vector<4x8x8xf32>
    %88 = vector.extract_strided_slice %78 {offsets = [0, 32], sizes = [8, 8], strides = [1, 1]} : vector<8x96xf32> to vector<8x8xf32>
    %89 = vector.extract_strided_slice %78 {offsets = [0, 40], sizes = [8, 8], strides = [1, 1]} : vector<8x96xf32> to vector<8x8xf32>
    %90 = vector.extract_strided_slice %78 {offsets = [0, 48], sizes = [8, 8], strides = [1, 1]} : vector<8x96xf32> to vector<8x8xf32>
    %91 = vector.extract_strided_slice %78 {offsets = [0, 56], sizes = [8, 8], strides = [1, 1]} : vector<8x96xf32> to vector<8x8xf32>
    %92 = vector.shape_cast %88 : vector<8x8xf32> to vector<1x8x8xf32>
    %93 = vector.shape_cast %89 : vector<8x8xf32> to vector<1x8x8xf32>
    %94 = vector.shape_cast %90 : vector<8x8xf32> to vector<1x8x8xf32>
    %95 = vector.shape_cast %91 : vector<8x8xf32> to vector<1x8x8xf32>
    %96 = tpu.concatenate %92, %93, %94, %95 in 0 : vector<1x8x8xf32>, vector<1x8x8xf32>, vector<1x8x8xf32>, vector<1x8x8xf32> -> vector<4x8x8xf32>
    %97 = vector.extract_strided_slice %78 {offsets = [0, 64], sizes = [8, 8], strides = [1, 1]} : vector<8x96xf32> to vector<8x8xf32>
    %98 = vector.extract_strided_slice %78 {offsets = [0, 72], sizes = [8, 8], strides = [1, 1]} : vector<8x96xf32> to vector<8x8xf32>
    %99 = vector.extract_strided_slice %78 {offsets = [0, 80], sizes = [8, 8], strides = [1, 1]} : vector<8x96xf32> to vector<8x8xf32>
    %100 = vector.extract_strided_slice %78 {offsets = [0, 88], sizes = [8, 8], strides = [1, 1]} : vector<8x96xf32> to vector<8x8xf32>
    %101 = vector.shape_cast %97 : vector<8x8xf32> to vector<1x8x8xf32>
    %102 = vector.shape_cast %98 : vector<8x8xf32> to vector<1x8x8xf32>
    %103 = vector.shape_cast %99 : vector<8x8xf32> to vector<1x8x8xf32>
    %104 = vector.shape_cast %100 : vector<8x8xf32> to vector<1x8x8xf32>
    %105 = tpu.concatenate %101, %102, %103, %104 in 0 : vector<1x8x8xf32>, vector<1x8x8xf32>, vector<1x8x8xf32>, vector<1x8x8xf32> -> vector<4x8x8xf32>
    %c1 = arith.constant 1 : index
    %c0_21 = arith.constant 0 : index
    %c0_22 = arith.constant 0 : index
    %106 = vector.load %arg4[%c1, %c0_21, %c0_22] : memref<2x1x8xf32, #tpu.memory_space<vmem>>, vector<1x1x8xf32>
    %107 = vector.shape_cast %106 : vector<1x1x8xf32> to vector<1x8xf32>
    %cst_23 = arith.constant 0.000000e+00 : f32
    %108 = vector.broadcast %cst_23 : f32 to vector<1x8xf32>
    %109 = arith.cmpf one, %107, %108 : vector<1x8xf32>
    %110 = vector.broadcast %109 : vector<1x8xi1> to vector<8x8xi1>
    %111 = arith.andi %8, %110 : vector<8x8xi1>
    %112 = arith.truncf %87 : vector<4x8x8xf32> to vector<4x8x8xbf16>
    %113 = arith.truncf %96 : vector<4x8x8xf32> to vector<4x8x8xbf16>
    "tpu.trace_start"() <{level = 10 : i32, message = "hqd,hkd->hqk"}> : () -> ()
    %cst_24 = arith.constant dense<0.000000e+00> : vector<4x8x8xf32>
    %114 = tpu.matmul %112, %113, %cst_24 {dimension_numbers = #tpu.dot_dimension_numbers<[2], [2], [1], [1], [0, 0, 0, 1, 1, 1], [0], [0]>} : vector<4x8x8xbf16>, vector<4x8x8xbf16>, vector<4x8x8xf32> -> vector<4x8x8xf32>
    %cst_25 = arith.constant -1.000000e+30 : f32
    "tpu.trace_stop"() : () -> ()
    %115 = vector.shape_cast %111 : vector<8x8xi1> to vector<1x8x8xi1>
    %116 = vector.broadcast %115 : vector<1x8x8xi1> to vector<4x8x8xi1>
    %117 = vector.broadcast %cst_25 : f32 to vector<4x8x8xf32>
    %118 = arith.select %116, %114, %117 : vector<4x8x8xi1>, vector<4x8x8xf32>
    %cst_26 = arith.constant dense<0xFF800000> : vector<4x8xf32>
    %119 = vector.multi_reduction <maximumf>, %118, %cst_26 [2] : vector<4x8x8xf32> to vector<4x8xf32>
    %120 = vector.shape_cast %119 : vector<4x8xf32> to vector<4x8x1xf32>
    %121 = vector.broadcast %120 : vector<4x8x1xf32> to vector<4x8x8xf32>
    %122 = arith.subf %118, %121 : vector<4x8x8xf32>
    %123 = math.exp %122 : vector<4x8x8xf32>
    %cst_27 = arith.constant dense<0.000000e+00> : vector<4x8xf32>
    %124 = vector.multi_reduction <add>, %123, %cst_27 [2] : vector<4x8x8xf32> to vector<4x8xf32>
    %125 = vector.shape_cast %124 : vector<4x8xf32> to vector<4x8x1xf32>
    %126 = tpu.reciprocal %125 {approx = true} : vector<4x8x1xf32> -> vector<4x8x1xf32>
    %127 = arith.truncf %123 : vector<4x8x8xf32> to vector<4x8x8xbf16>
    %128 = arith.truncf %105 : vector<4x8x8xf32> to vector<4x8x8xbf16>
    "tpu.trace_start"() <{level = 10 : i32, message = "hqk,hkd->hqd"}> : () -> ()
    %cst_28 = arith.constant dense<0.000000e+00> : vector<4x8x8xf32>
    %129 = tpu.matmul %127, %128, %cst_28 {dimension_numbers = #tpu.dot_dimension_numbers<[2], [1], [1], [2], [0, 0, 0, 1, 1, 2], [0], [0]>} : vector<4x8x8xbf16>, vector<4x8x8xbf16>, vector<4x8x8xf32> -> vector<4x8x8xf32>
    "tpu.trace_stop"() : () -> ()
    %130 = vector.broadcast %126 : vector<4x8x1xf32> to vector<4x8x8xf32>
    %131 = arith.mulf %129, %130 : vector<4x8x8xf32>
    %132 = vector.extract_strided_slice %131 {offsets = [0, 0, 0], sizes = [1, 8, 8], strides = [1, 1, 1]} : vector<4x8x8xf32> to vector<1x8x8xf32>
    %133 = vector.shape_cast %132 : vector<1x8x8xf32> to vector<8x8xf32>
    %134 = vector.extract_strided_slice %131 {offsets = [1, 0, 0], sizes = [1, 8, 8], strides = [1, 1, 1]} : vector<4x8x8xf32> to vector<1x8x8xf32>
    %135 = vector.shape_cast %134 : vector<1x8x8xf32> to vector<8x8xf32>
    %136 = vector.extract_strided_slice %131 {offsets = [2, 0, 0], sizes = [1, 8, 8], strides = [1, 1, 1]} : vector<4x8x8xf32> to vector<1x8x8xf32>
    %137 = vector.shape_cast %136 : vector<1x8x8xf32> to vector<8x8xf32>
    %138 = vector.extract_strided_slice %131 {offsets = [3, 0, 0], sizes = [1, 8, 8], strides = [1, 1, 1]} : vector<4x8x8xf32> to vector<1x8x8xf32>
    %139 = vector.shape_cast %138 : vector<1x8x8xf32> to vector<8x8xf32>
    %140 = tpu.concatenate %133, %135, %137, %139 in 1 : vector<8x8xf32>, vector<8x8xf32>, vector<8x8xf32>, vector<8x8xf32> -> vector<8x32xf32>
    %141 = tpu.concatenate %77, %140 in 0 : vector<8x32xf32>, vector<8x32xf32> -> vector<16x32xf32>
    %142 = arith.truncf %141 : vector<16x32xf32> to vector<16x32xbf16>
    %c0_29 = arith.constant 0 : index
    %c0_30 = arith.constant 0 : index
    %143 = vector.load %arg8[%c0_29, %c0_30] : memref<32x32xbf16, #tpu.memory_space<vmem>>, vector<32x32xbf16>
    %cst_31 = arith.constant dense<0.000000e+00> : vector<16x32xf32>
    %144 = tpu.matmul %142, %143, %cst_31 {dimension_numbers = #tpu.dot_dimension_numbers<[1], [0], [0], [1], [0, 0, 1, 1], [], []>} : vector<16x32xbf16>, vector<32x32xbf16>, vector<16x32xf32> -> vector<16x32xf32>
    %c0_32 = arith.constant 0 : index
    %c0_33 = arith.constant 0 : index
    %145 = vector.load %arg9[%c0_32, %c0_33] : memref<1x32xf32, #tpu.memory_space<vmem>>, vector<1x32xf32>
    %146 = vector.broadcast %145 : vector<1x32xf32> to vector<16x32xf32>
    %147 = arith.addf %144, %146 : vector<16x32xf32>
    %148 = vector.broadcast %5 : vector<16x1xf32> to vector<16x32xf32>
    %149 = arith.mulf %147, %148 : vector<16x32xf32>
    %150 = arith.addf %149, %1 : vector<16x32xf32>
    %cst_34 = arith.constant dense<0.000000e+00> : vector<16xf32>
    %151 = vector.multi_reduction <add>, %150, %cst_34 [1] : vector<16x32xf32> to vector<16xf32>
    %152 = vector.shape_cast %151 : vector<16xf32> to vector<16x1xf32>
    %cst_35 = arith.constant 3.200000e+01 : f32
    %153 = vector.broadcast %cst_35 : f32 to vector<16x1xf32>
    %154 = arith.divf %152, %153 : vector<16x1xf32>
    %155 = vector.broadcast %154 : vector<16x1xf32> to vector<16x32xf32>
    %156 = arith.subf %150, %155 : vector<16x32xf32>
    %157 = arith.mulf %156, %156 : vector<16x32xf32>
    %cst_36 = arith.constant dense<0.000000e+00> : vector<16xf32>
    %158 = vector.multi_reduction <add>, %157, %cst_36 [1] : vector<16x32xf32> to vector<16xf32>
    %159 = vector.shape_cast %158 : vector<16xf32> to vector<16x1xf32>
    %cst_37 = arith.constant 3.200000e+01 : f32
    %160 = vector.broadcast %cst_37 : f32 to vector<16x1xf32>
    %161 = arith.divf %159, %160 : vector<16x1xf32>
    %162 = vector.broadcast %154 : vector<16x1xf32> to vector<16x32xf32>
    %163 = arith.subf %150, %162 : vector<16x32xf32>
    %cst_38 = arith.constant 9.99999974E-6 : f32
    %164 = vector.broadcast %cst_38 : f32 to vector<16x1xf32>
    %165 = arith.addf %161, %164 : vector<16x1xf32>
    %166 = math.rsqrt %165 : vector<16x1xf32>
    %167 = vector.broadcast %166 : vector<16x1xf32> to vector<16x32xf32>
    %168 = arith.mulf %163, %167 : vector<16x32xf32>
    %c0_39 = arith.constant 0 : index
    %c0_40 = arith.constant 0 : index
    %169 = vector.load %arg10[%c0_39, %c0_40] : memref<1x32xf32, #tpu.memory_space<vmem>>, vector<1x32xf32>
    %170 = vector.broadcast %169 : vector<1x32xf32> to vector<16x32xf32>
    %171 = arith.mulf %168, %170 : vector<16x32xf32>
    %c0_41 = arith.constant 0 : index
    %c0_42 = arith.constant 0 : index
    %172 = vector.load %arg11[%c0_41, %c0_42] : memref<1x32xf32, #tpu.memory_space<vmem>>, vector<1x32xf32>
    %173 = vector.broadcast %172 : vector<1x32xf32> to vector<16x32xf32>
    %174 = arith.addf %171, %173 : vector<16x32xf32>
    %175 = arith.truncf %174 : vector<16x32xf32> to vector<16x32xbf16>
    %c0_43 = arith.constant 0 : index
    %c0_44 = arith.constant 0 : index
    %176 = vector.load %arg12[%c0_43, %c0_44] : memref<32x32xbf16, #tpu.memory_space<vmem>>, vector<32x32xbf16>
    %cst_45 = arith.constant dense<0.000000e+00> : vector<16x32xf32>
    %177 = tpu.matmul %175, %176, %cst_45 {dimension_numbers = #tpu.dot_dimension_numbers<[1], [0], [0], [1], [0, 0, 1, 1], [], []>} : vector<16x32xbf16>, vector<32x32xbf16>, vector<16x32xf32> -> vector<16x32xf32>
    %c0_46 = arith.constant 0 : index
    %c0_47 = arith.constant 0 : index
    %178 = vector.load %arg13[%c0_46, %c0_47] : memref<1x32xf32, #tpu.memory_space<vmem>>, vector<1x32xf32>
    %179 = vector.broadcast %178 : vector<1x32xf32> to vector<16x32xf32>
    %180 = arith.addf %177, %179 : vector<16x32xf32>
    %181 = arith.truncf %3 : vector<16x32xf32> to vector<16x32xbf16>
    %c0_48 = arith.constant 0 : index
    %c0_49 = arith.constant 0 : index
    %182 = vector.load %arg14[%c0_48, %c0_49] : memref<32x64xbf16, #tpu.memory_space<vmem>>, vector<32x64xbf16>
    %cst_50 = arith.constant dense<0.000000e+00> : vector<16x64xf32>
    %183 = tpu.matmul %181, %182, %cst_50 {dimension_numbers = #tpu.dot_dimension_numbers<[1], [0], [0], [1], [0, 0, 1, 1], [], []>} : vector<16x32xbf16>, vector<32x64xbf16>, vector<16x64xf32> -> vector<16x64xf32>
    %c0_51 = arith.constant 0 : index
    %c0_52 = arith.constant 0 : index
    %184 = vector.load %arg15[%c0_51, %c0_52] : memref<1x64xf32, #tpu.memory_space<vmem>>, vector<1x64xf32>
    %185 = vector.broadcast %184 : vector<1x64xf32> to vector<16x64xf32>
    %186 = arith.addf %183, %185 : vector<16x64xf32>
    %187 = vector.extract_strided_slice %180 {offsets = [0, 0], sizes = [8, 32], strides = [1, 1]} : vector<16x32xf32> to vector<8x32xf32>
    %188 = vector.extract_strided_slice %187 {offsets = [0, 0], sizes = [8, 8], strides = [1, 1]} : vector<8x32xf32> to vector<8x8xf32>
    %189 = vector.extract_strided_slice %187 {offsets = [0, 8], sizes = [8, 8], strides = [1, 1]} : vector<8x32xf32> to vector<8x8xf32>
    %190 = vector.extract_strided_slice %187 {offsets = [0, 16], sizes = [8, 8], strides = [1, 1]} : vector<8x32xf32> to vector<8x8xf32>
    %191 = vector.extract_strided_slice %187 {offsets = [0, 24], sizes = [8, 8], strides = [1, 1]} : vector<8x32xf32> to vector<8x8xf32>
    %192 = vector.shape_cast %188 : vector<8x8xf32> to vector<1x8x8xf32>
    %193 = vector.shape_cast %189 : vector<8x8xf32> to vector<1x8x8xf32>
    %194 = vector.shape_cast %190 : vector<8x8xf32> to vector<1x8x8xf32>
    %195 = vector.shape_cast %191 : vector<8x8xf32> to vector<1x8x8xf32>
    %196 = tpu.concatenate %192, %193, %194, %195 in 0 : vector<1x8x8xf32>, vector<1x8x8xf32>, vector<1x8x8xf32>, vector<1x8x8xf32> -> vector<4x8x8xf32>
    %197 = vector.extract_strided_slice %186 {offsets = [0, 0], sizes = [8, 64], strides = [1, 1]} : vector<16x64xf32> to vector<8x64xf32>
    %198 = vector.extract_strided_slice %197 {offsets = [0, 0], sizes = [8, 8], strides = [1, 1]} : vector<8x64xf32> to vector<8x8xf32>
    %199 = vector.extract_strided_slice %197 {offsets = [0, 8], sizes = [8, 8], strides = [1, 1]} : vector<8x64xf32> to vector<8x8xf32>
    %200 = vector.extract_strided_slice %197 {offsets = [0, 16], sizes = [8, 8], strides = [1, 1]} : vector<8x64xf32> to vector<8x8xf32>
    %201 = vector.extract_strided_slice %197 {offsets = [0, 24], sizes = [8, 8], strides = [1, 1]} : vector<8x64xf32> to vector<8x8xf32>
    %202 = vector.shape_cast %198 : vector<8x8xf32> to vector<1x8x8xf32>
    %203 = vector.shape_cast %199 : vector<8x8xf32> to vector<1x8x8xf32>
    %204 = vector.shape_cast %200 : vector<8x8xf32> to vector<1x8x8xf32>
    %205 = vector.shape_cast %201 : vector<8x8xf32> to vector<1x8x8xf32>
    %206 = tpu.concatenate %202, %203, %204, %205 in 0 : vector<1x8x8xf32>, vector<1x8x8xf32>, vector<1x8x8xf32>, vector<1x8x8xf32> -> vector<4x8x8xf32>
    %207 = vector.extract_strided_slice %197 {offsets = [0, 32], sizes = [8, 8], strides = [1, 1]} : vector<8x64xf32> to vector<8x8xf32>
    %208 = vector.extract_strided_slice %197 {offsets = [0, 40], sizes = [8, 8], strides = [1, 1]} : vector<8x64xf32> to vector<8x8xf32>
    %209 = vector.extract_strided_slice %197 {offsets = [0, 48], sizes = [8, 8], strides = [1, 1]} : vector<8x64xf32> to vector<8x8xf32>
    %210 = vector.extract_strided_slice %197 {offsets = [0, 56], sizes = [8, 8], strides = [1, 1]} : vector<8x64xf32> to vector<8x8xf32>
    %211 = vector.shape_cast %207 : vector<8x8xf32> to vector<1x8x8xf32>
    %212 = vector.shape_cast %208 : vector<8x8xf32> to vector<1x8x8xf32>
    %213 = vector.shape_cast %209 : vector<8x8xf32> to vector<1x8x8xf32>
    %214 = vector.shape_cast %210 : vector<8x8xf32> to vector<1x8x8xf32>
    %215 = tpu.concatenate %211, %212, %213, %214 in 0 : vector<1x8x8xf32>, vector<1x8x8xf32>, vector<1x8x8xf32>, vector<1x8x8xf32> -> vector<4x8x8xf32>
    %c0_53 = arith.constant 0 : index
    %c0_54 = arith.constant 0 : index
    %c0_55 = arith.constant 0 : index
    %216 = vector.load %arg5[%c0_53, %c0_54, %c0_55] : memref<2x1x8xf32, #tpu.memory_space<vmem>>, vector<1x1x8xf32>
    %217 = vector.shape_cast %216 : vector<1x1x8xf32> to vector<1x8xf32>
    %cst_56 = arith.constant 0.000000e+00 : f32
    %218 = vector.broadcast %cst_56 : f32 to vector<1x8xf32>
    %219 = arith.cmpf one, %217, %218 : vector<1x8xf32>
    %220 = arith.truncf %196 : vector<4x8x8xf32> to vector<4x8x8xbf16>
    %221 = arith.truncf %206 : vector<4x8x8xf32> to vector<4x8x8xbf16>
    "tpu.trace_start"() <{level = 10 : i32, message = "hqd,hkd->hqk"}> : () -> ()
    %cst_57 = arith.constant dense<0.000000e+00> : vector<4x8x8xf32>
    %222 = tpu.matmul %220, %221, %cst_57 {dimension_numbers = #tpu.dot_dimension_numbers<[2], [2], [1], [1], [0, 0, 0, 1, 1, 1], [0], [0]>} : vector<4x8x8xbf16>, vector<4x8x8xbf16>, vector<4x8x8xf32> -> vector<4x8x8xf32>
    %cst_58 = arith.constant -1.000000e+30 : f32
    "tpu.trace_stop"() : () -> ()
    %223 = vector.shape_cast %219 : vector<1x8xi1> to vector<1x1x8xi1>
    %224 = vector.broadcast %223 : vector<1x1x8xi1> to vector<4x8x8xi1>
    %225 = vector.broadcast %cst_58 : f32 to vector<4x8x8xf32>
    %226 = arith.select %224, %222, %225 : vector<4x8x8xi1>, vector<4x8x8xf32>
    %cst_59 = arith.constant dense<0xFF800000> : vector<4x8xf32>
    %227 = vector.multi_reduction <maximumf>, %226, %cst_59 [2] : vector<4x8x8xf32> to vector<4x8xf32>
    %228 = vector.shape_cast %227 : vector<4x8xf32> to vector<4x8x1xf32>
    %229 = vector.broadcast %228 : vector<4x8x1xf32> to vector<4x8x8xf32>
    %230 = arith.subf %226, %229 : vector<4x8x8xf32>
    %231 = math.exp %230 : vector<4x8x8xf32>
    %cst_60 = arith.constant dense<0.000000e+00> : vector<4x8xf32>
    %232 = vector.multi_reduction <add>, %231, %cst_60 [2] : vector<4x8x8xf32> to vector<4x8xf32>
    %233 = vector.shape_cast %232 : vector<4x8xf32> to vector<4x8x1xf32>
    %234 = tpu.reciprocal %233 {approx = true} : vector<4x8x1xf32> -> vector<4x8x1xf32>
    %235 = arith.truncf %231 : vector<4x8x8xf32> to vector<4x8x8xbf16>
    %236 = arith.truncf %215 : vector<4x8x8xf32> to vector<4x8x8xbf16>
    "tpu.trace_start"() <{level = 10 : i32, message = "hqk,hkd->hqd"}> : () -> ()
    %cst_61 = arith.constant dense<0.000000e+00> : vector<4x8x8xf32>
    %237 = tpu.matmul %235, %236, %cst_61 {dimension_numbers = #tpu.dot_dimension_numbers<[2], [1], [1], [2], [0, 0, 0, 1, 1, 2], [0], [0]>} : vector<4x8x8xbf16>, vector<4x8x8xbf16>, vector<4x8x8xf32> -> vector<4x8x8xf32>
    "tpu.trace_stop"() : () -> ()
    %238 = vector.broadcast %234 : vector<4x8x1xf32> to vector<4x8x8xf32>
    %239 = arith.mulf %237, %238 : vector<4x8x8xf32>
    %240 = vector.extract_strided_slice %239 {offsets = [0, 0, 0], sizes = [1, 8, 8], strides = [1, 1, 1]} : vector<4x8x8xf32> to vector<1x8x8xf32>
    %241 = vector.shape_cast %240 : vector<1x8x8xf32> to vector<8x8xf32>
    %242 = vector.extract_strided_slice %239 {offsets = [1, 0, 0], sizes = [1, 8, 8], strides = [1, 1, 1]} : vector<4x8x8xf32> to vector<1x8x8xf32>
    %243 = vector.shape_cast %242 : vector<1x8x8xf32> to vector<8x8xf32>
    %244 = vector.extract_strided_slice %239 {offsets = [2, 0, 0], sizes = [1, 8, 8], strides = [1, 1, 1]} : vector<4x8x8xf32> to vector<1x8x8xf32>
    %245 = vector.shape_cast %244 : vector<1x8x8xf32> to vector<8x8xf32>
    %246 = vector.extract_strided_slice %239 {offsets = [3, 0, 0], sizes = [1, 8, 8], strides = [1, 1, 1]} : vector<4x8x8xf32> to vector<1x8x8xf32>
    %247 = vector.shape_cast %246 : vector<1x8x8xf32> to vector<8x8xf32>
    %248 = tpu.concatenate %241, %243, %245, %247 in 1 : vector<8x8xf32>, vector<8x8xf32>, vector<8x8xf32>, vector<8x8xf32> -> vector<8x32xf32>
    %249 = vector.extract_strided_slice %180 {offsets = [8, 0], sizes = [8, 32], strides = [1, 1]} : vector<16x32xf32> to vector<8x32xf32>
    %250 = vector.extract_strided_slice %249 {offsets = [0, 0], sizes = [8, 8], strides = [1, 1]} : vector<8x32xf32> to vector<8x8xf32>
    %251 = vector.extract_strided_slice %249 {offsets = [0, 8], sizes = [8, 8], strides = [1, 1]} : vector<8x32xf32> to vector<8x8xf32>
    %252 = vector.extract_strided_slice %249 {offsets = [0, 16], sizes = [8, 8], strides = [1, 1]} : vector<8x32xf32> to vector<8x8xf32>
    %253 = vector.extract_strided_slice %249 {offsets = [0, 24], sizes = [8, 8], strides = [1, 1]} : vector<8x32xf32> to vector<8x8xf32>
    %254 = vector.shape_cast %250 : vector<8x8xf32> to vector<1x8x8xf32>
    %255 = vector.shape_cast %251 : vector<8x8xf32> to vector<1x8x8xf32>
    %256 = vector.shape_cast %252 : vector<8x8xf32> to vector<1x8x8xf32>
    %257 = vector.shape_cast %253 : vector<8x8xf32> to vector<1x8x8xf32>
    %258 = tpu.concatenate %254, %255, %256, %257 in 0 : vector<1x8x8xf32>, vector<1x8x8xf32>, vector<1x8x8xf32>, vector<1x8x8xf32> -> vector<4x8x8xf32>
    %259 = vector.extract_strided_slice %186 {offsets = [8, 0], sizes = [8, 64], strides = [1, 1]} : vector<16x64xf32> to vector<8x64xf32>
    %260 = vector.extract_strided_slice %259 {offsets = [0, 0], sizes = [8, 8], strides = [1, 1]} : vector<8x64xf32> to vector<8x8xf32>
    %261 = vector.extract_strided_slice %259 {offsets = [0, 8], sizes = [8, 8], strides = [1, 1]} : vector<8x64xf32> to vector<8x8xf32>
    %262 = vector.extract_strided_slice %259 {offsets = [0, 16], sizes = [8, 8], strides = [1, 1]} : vector<8x64xf32> to vector<8x8xf32>
    %263 = vector.extract_strided_slice %259 {offsets = [0, 24], sizes = [8, 8], strides = [1, 1]} : vector<8x64xf32> to vector<8x8xf32>
    %264 = vector.shape_cast %260 : vector<8x8xf32> to vector<1x8x8xf32>
    %265 = vector.shape_cast %261 : vector<8x8xf32> to vector<1x8x8xf32>
    %266 = vector.shape_cast %262 : vector<8x8xf32> to vector<1x8x8xf32>
    %267 = vector.shape_cast %263 : vector<8x8xf32> to vector<1x8x8xf32>
    %268 = tpu.concatenate %264, %265, %266, %267 in 0 : vector<1x8x8xf32>, vector<1x8x8xf32>, vector<1x8x8xf32>, vector<1x8x8xf32> -> vector<4x8x8xf32>
    %269 = vector.extract_strided_slice %259 {offsets = [0, 32], sizes = [8, 8], strides = [1, 1]} : vector<8x64xf32> to vector<8x8xf32>
    %270 = vector.extract_strided_slice %259 {offsets = [0, 40], sizes = [8, 8], strides = [1, 1]} : vector<8x64xf32> to vector<8x8xf32>
    %271 = vector.extract_strided_slice %259 {offsets = [0, 48], sizes = [8, 8], strides = [1, 1]} : vector<8x64xf32> to vector<8x8xf32>
    %272 = vector.extract_strided_slice %259 {offsets = [0, 56], sizes = [8, 8], strides = [1, 1]} : vector<8x64xf32> to vector<8x8xf32>
    %273 = vector.shape_cast %269 : vector<8x8xf32> to vector<1x8x8xf32>
    %274 = vector.shape_cast %270 : vector<8x8xf32> to vector<1x8x8xf32>
    %275 = vector.shape_cast %271 : vector<8x8xf32> to vector<1x8x8xf32>
    %276 = vector.shape_cast %272 : vector<8x8xf32> to vector<1x8x8xf32>
    %277 = tpu.concatenate %273, %274, %275, %276 in 0 : vector<1x8x8xf32>, vector<1x8x8xf32>, vector<1x8x8xf32>, vector<1x8x8xf32> -> vector<4x8x8xf32>
    %c1_62 = arith.constant 1 : index
    %c0_63 = arith.constant 0 : index
    %c0_64 = arith.constant 0 : index
    %278 = vector.load %arg5[%c1_62, %c0_63, %c0_64] : memref<2x1x8xf32, #tpu.memory_space<vmem>>, vector<1x1x8xf32>
    %279 = vector.shape_cast %278 : vector<1x1x8xf32> to vector<1x8xf32>
    %cst_65 = arith.constant 0.000000e+00 : f32
    %280 = vector.broadcast %cst_65 : f32 to vector<1x8xf32>
    %281 = arith.cmpf one, %279, %280 : vector<1x8xf32>
    %282 = arith.truncf %258 : vector<4x8x8xf32> to vector<4x8x8xbf16>
    %283 = arith.truncf %268 : vector<4x8x8xf32> to vector<4x8x8xbf16>
    "tpu.trace_start"() <{level = 10 : i32, message = "hqd,hkd->hqk"}> : () -> ()
    %cst_66 = arith.constant dense<0.000000e+00> : vector<4x8x8xf32>
    %284 = tpu.matmul %282, %283, %cst_66 {dimension_numbers = #tpu.dot_dimension_numbers<[2], [2], [1], [1], [0, 0, 0, 1, 1, 1], [0], [0]>} : vector<4x8x8xbf16>, vector<4x8x8xbf16>, vector<4x8x8xf32> -> vector<4x8x8xf32>
    %cst_67 = arith.constant -1.000000e+30 : f32
    "tpu.trace_stop"() : () -> ()
    %285 = vector.shape_cast %281 : vector<1x8xi1> to vector<1x1x8xi1>
    %286 = vector.broadcast %285 : vector<1x1x8xi1> to vector<4x8x8xi1>
    %287 = vector.broadcast %cst_67 : f32 to vector<4x8x8xf32>
    %288 = arith.select %286, %284, %287 : vector<4x8x8xi1>, vector<4x8x8xf32>
    %cst_68 = arith.constant dense<0xFF800000> : vector<4x8xf32>
    %289 = vector.multi_reduction <maximumf>, %288, %cst_68 [2] : vector<4x8x8xf32> to vector<4x8xf32>
    %290 = vector.shape_cast %289 : vector<4x8xf32> to vector<4x8x1xf32>
    %291 = vector.broadcast %290 : vector<4x8x1xf32> to vector<4x8x8xf32>
    %292 = arith.subf %288, %291 : vector<4x8x8xf32>
    %293 = math.exp %292 : vector<4x8x8xf32>
    %cst_69 = arith.constant dense<0.000000e+00> : vector<4x8xf32>
    %294 = vector.multi_reduction <add>, %293, %cst_69 [2] : vector<4x8x8xf32> to vector<4x8xf32>
    %295 = vector.shape_cast %294 : vector<4x8xf32> to vector<4x8x1xf32>
    %296 = tpu.reciprocal %295 {approx = true} : vector<4x8x1xf32> -> vector<4x8x1xf32>
    %297 = arith.truncf %293 : vector<4x8x8xf32> to vector<4x8x8xbf16>
    %298 = arith.truncf %277 : vector<4x8x8xf32> to vector<4x8x8xbf16>
    "tpu.trace_start"() <{level = 10 : i32, message = "hqk,hkd->hqd"}> : () -> ()
    %cst_70 = arith.constant dense<0.000000e+00> : vector<4x8x8xf32>
    %299 = tpu.matmul %297, %298, %cst_70 {dimension_numbers = #tpu.dot_dimension_numbers<[2], [1], [1], [2], [0, 0, 0, 1, 1, 2], [0], [0]>} : vector<4x8x8xbf16>, vector<4x8x8xbf16>, vector<4x8x8xf32> -> vector<4x8x8xf32>
    "tpu.trace_stop"() : () -> ()
    %300 = vector.broadcast %296 : vector<4x8x1xf32> to vector<4x8x8xf32>
    %301 = arith.mulf %299, %300 : vector<4x8x8xf32>
    %302 = vector.extract_strided_slice %301 {offsets = [0, 0, 0], sizes = [1, 8, 8], strides = [1, 1, 1]} : vector<4x8x8xf32> to vector<1x8x8xf32>
    %303 = vector.shape_cast %302 : vector<1x8x8xf32> to vector<8x8xf32>
    %304 = vector.extract_strided_slice %301 {offsets = [1, 0, 0], sizes = [1, 8, 8], strides = [1, 1, 1]} : vector<4x8x8xf32> to vector<1x8x8xf32>
    %305 = vector.shape_cast %304 : vector<1x8x8xf32> to vector<8x8xf32>
    %306 = vector.extract_strided_slice %301 {offsets = [2, 0, 0], sizes = [1, 8, 8], strides = [1, 1, 1]} : vector<4x8x8xf32> to vector<1x8x8xf32>
    %307 = vector.shape_cast %306 : vector<1x8x8xf32> to vector<8x8xf32>
    %308 = vector.extract_strided_slice %301 {offsets = [3, 0, 0], sizes = [1, 8, 8], strides = [1, 1, 1]} : vector<4x8x8xf32> to vector<1x8x8xf32>
    %309 = vector.shape_cast %308 : vector<1x8x8xf32> to vector<8x8xf32>
    %310 = tpu.concatenate %303, %305, %307, %309 in 1 : vector<8x8xf32>, vector<8x8xf32>, vector<8x8xf32>, vector<8x8xf32> -> vector<8x32xf32>
    %311 = tpu.concatenate %248, %310 in 0 : vector<8x32xf32>, vector<8x32xf32> -> vector<16x32xf32>
    %312 = arith.truncf %311 : vector<16x32xf32> to vector<16x32xbf16>
    %c0_71 = arith.constant 0 : index
    %c0_72 = arith.constant 0 : index
    %313 = vector.load %arg16[%c0_71, %c0_72] : memref<32x32xbf16, #tpu.memory_space<vmem>>, vector<32x32xbf16>
    %cst_73 = arith.constant dense<0.000000e+00> : vector<16x32xf32>
    %314 = tpu.matmul %312, %313, %cst_73 {dimension_numbers = #tpu.dot_dimension_numbers<[1], [0], [0], [1], [0, 0, 1, 1], [], []>} : vector<16x32xbf16>, vector<32x32xbf16>, vector<16x32xf32> -> vector<16x32xf32>
    %c0_74 = arith.constant 0 : index
    %c0_75 = arith.constant 0 : index
    %315 = vector.load %arg17[%c0_74, %c0_75] : memref<1x32xf32, #tpu.memory_space<vmem>>, vector<1x32xf32>
    %316 = vector.broadcast %315 : vector<1x32xf32> to vector<16x32xf32>
    %317 = arith.addf %314, %316 : vector<16x32xf32>
    %318 = vector.broadcast %5 : vector<16x1xf32> to vector<16x32xf32>
    %319 = arith.mulf %317, %318 : vector<16x32xf32>
    %320 = arith.addf %319, %174 : vector<16x32xf32>
    %cst_76 = arith.constant dense<0.000000e+00> : vector<16xf32>
    %321 = vector.multi_reduction <add>, %320, %cst_76 [1] : vector<16x32xf32> to vector<16xf32>
    %322 = vector.shape_cast %321 : vector<16xf32> to vector<16x1xf32>
    %cst_77 = arith.constant 3.200000e+01 : f32
    %323 = vector.broadcast %cst_77 : f32 to vector<16x1xf32>
    %324 = arith.divf %322, %323 : vector<16x1xf32>
    %325 = vector.broadcast %324 : vector<16x1xf32> to vector<16x32xf32>
    %326 = arith.subf %320, %325 : vector<16x32xf32>
    %327 = arith.mulf %326, %326 : vector<16x32xf32>
    %cst_78 = arith.constant dense<0.000000e+00> : vector<16xf32>
    %328 = vector.multi_reduction <add>, %327, %cst_78 [1] : vector<16x32xf32> to vector<16xf32>
    %329 = vector.shape_cast %328 : vector<16xf32> to vector<16x1xf32>
    %cst_79 = arith.constant 3.200000e+01 : f32
    %330 = vector.broadcast %cst_79 : f32 to vector<16x1xf32>
    %331 = arith.divf %329, %330 : vector<16x1xf32>
    %332 = vector.broadcast %324 : vector<16x1xf32> to vector<16x32xf32>
    %333 = arith.subf %320, %332 : vector<16x32xf32>
    %cst_80 = arith.constant 9.99999974E-6 : f32
    %334 = vector.broadcast %cst_80 : f32 to vector<16x1xf32>
    %335 = arith.addf %331, %334 : vector<16x1xf32>
    %336 = math.rsqrt %335 : vector<16x1xf32>
    %337 = vector.broadcast %336 : vector<16x1xf32> to vector<16x32xf32>
    %338 = arith.mulf %333, %337 : vector<16x32xf32>
    %c0_81 = arith.constant 0 : index
    %c0_82 = arith.constant 0 : index
    %339 = vector.load %arg18[%c0_81, %c0_82] : memref<1x32xf32, #tpu.memory_space<vmem>>, vector<1x32xf32>
    %340 = vector.broadcast %339 : vector<1x32xf32> to vector<16x32xf32>
    %341 = arith.mulf %338, %340 : vector<16x32xf32>
    %c0_83 = arith.constant 0 : index
    %c0_84 = arith.constant 0 : index
    %342 = vector.load %arg19[%c0_83, %c0_84] : memref<1x32xf32, #tpu.memory_space<vmem>>, vector<1x32xf32>
    %343 = vector.broadcast %342 : vector<1x32xf32> to vector<16x32xf32>
    %344 = arith.addf %341, %343 : vector<16x32xf32>
    %345 = arith.truncf %344 : vector<16x32xf32> to vector<16x32xbf16>
    %c0_85 = arith.constant 0 : index
    %c0_86 = arith.constant 0 : index
    %346 = vector.load %arg20[%c0_85, %c0_86] : memref<32x64xbf16, #tpu.memory_space<vmem>>, vector<32x64xbf16>
    %cst_87 = arith.constant dense<0.000000e+00> : vector<16x64xf32>
    %347 = tpu.matmul %345, %346, %cst_87 {dimension_numbers = #tpu.dot_dimension_numbers<[1], [0], [0], [1], [0, 0, 1, 1], [], []>} : vector<16x32xbf16>, vector<32x64xbf16>, vector<16x64xf32> -> vector<16x64xf32>
    %c0_88 = arith.constant 0 : index
    %c0_89 = arith.constant 0 : index
    %348 = vector.load %arg21[%c0_88, %c0_89] : memref<1x64xf32, #tpu.memory_space<vmem>>, vector<1x64xf32>
    %349 = vector.broadcast %348 : vector<1x64xf32> to vector<16x64xf32>
    %350 = arith.addf %347, %349 : vector<16x64xf32>
    %cst_90 = arith.constant 0.000000e+00 : f32
    %351 = vector.broadcast %cst_90 : f32 to vector<16x64xf32>
    %352 = arith.cmpf ogt, %350, %351 : vector<16x64xf32>
    %cst_91 = arith.constant 0.00999999977 : f32
    %353 = vector.broadcast %cst_91 : f32 to vector<16x64xf32>
    %354 = arith.mulf %353, %350 : vector<16x64xf32>
    %355 = arith.select %352, %350, %354 : vector<16x64xi1>, vector<16x64xf32>
    %356 = arith.truncf %355 : vector<16x64xf32> to vector<16x64xbf16>
    %c0_92 = arith.constant 0 : index
    %c0_93 = arith.constant 0 : index
    %357 = vector.load %arg22[%c0_92, %c0_93] : memref<64x32xbf16, #tpu.memory_space<vmem>>, vector<64x32xbf16>
    %cst_94 = arith.constant dense<0.000000e+00> : vector<16x32xf32>
    %358 = tpu.matmul %356, %357, %cst_94 {dimension_numbers = #tpu.dot_dimension_numbers<[1], [0], [0], [1], [0, 0, 1, 1], [], []>} : vector<16x64xbf16>, vector<64x32xbf16>, vector<16x32xf32> -> vector<16x32xf32>
    %c0_95 = arith.constant 0 : index
    %c0_96 = arith.constant 0 : index
    %359 = vector.load %arg23[%c0_95, %c0_96] : memref<1x32xf32, #tpu.memory_space<vmem>>, vector<1x32xf32>
    %360 = vector.broadcast %359 : vector<1x32xf32> to vector<16x32xf32>
    %361 = arith.addf %358, %360 : vector<16x32xf32>
    %362 = vector.broadcast %5 : vector<16x1xf32> to vector<16x32xf32>
    %363 = arith.mulf %361, %362 : vector<16x32xf32>
    %364 = arith.addf %363, %344 : vector<16x32xf32>
    %cst_97 = arith.constant dense<0.000000e+00> : vector<16xf32>
    %365 = vector.multi_reduction <add>, %364, %cst_97 [1] : vector<16x32xf32> to vector<16xf32>
    %366 = vector.shape_cast %365 : vector<16xf32> to vector<16x1xf32>
    %cst_98 = arith.constant 3.200000e+01 : f32
    %367 = vector.broadcast %cst_98 : f32 to vector<16x1xf32>
    %368 = arith.divf %366, %367 : vector<16x1xf32>
    %369 = vector.broadcast %368 : vector<16x1xf32> to vector<16x32xf32>
    %370 = arith.subf %364, %369 : vector<16x32xf32>
    %371 = arith.mulf %370, %370 : vector<16x32xf32>
    %cst_99 = arith.constant dense<0.000000e+00> : vector<16xf32>
    %372 = vector.multi_reduction <add>, %371, %cst_99 [1] : vector<16x32xf32> to vector<16xf32>
    %373 = vector.shape_cast %372 : vector<16xf32> to vector<16x1xf32>
    %cst_100 = arith.constant 3.200000e+01 : f32
    %374 = vector.broadcast %cst_100 : f32 to vector<16x1xf32>
    %375 = arith.divf %373, %374 : vector<16x1xf32>
    %376 = vector.broadcast %368 : vector<16x1xf32> to vector<16x32xf32>
    %377 = arith.subf %364, %376 : vector<16x32xf32>
    %cst_101 = arith.constant 9.99999974E-6 : f32
    %378 = vector.broadcast %cst_101 : f32 to vector<16x1xf32>
    %379 = arith.addf %375, %378 : vector<16x1xf32>
    %380 = math.rsqrt %379 : vector<16x1xf32>
    %381 = vector.broadcast %380 : vector<16x1xf32> to vector<16x32xf32>
    %382 = arith.mulf %377, %381 : vector<16x32xf32>
    %c0_102 = arith.constant 0 : index
    %c0_103 = arith.constant 0 : index
    %383 = vector.load %arg24[%c0_102, %c0_103] : memref<1x32xf32, #tpu.memory_space<vmem>>, vector<1x32xf32>
    %384 = vector.broadcast %383 : vector<1x32xf32> to vector<16x32xf32>
    %385 = arith.mulf %382, %384 : vector<16x32xf32>
    %c0_104 = arith.constant 0 : index
    %c0_105 = arith.constant 0 : index
    %386 = vector.load %arg25[%c0_104, %c0_105] : memref<1x32xf32, #tpu.memory_space<vmem>>, vector<1x32xf32>
    %387 = vector.broadcast %386 : vector<1x32xf32> to vector<16x32xf32>
    %388 = arith.addf %385, %387 : vector<16x32xf32>
    %389 = vector.shape_cast %388 : vector<16x32xf32> to vector<2x8x32xf32>
    %c0_106 = arith.constant 0 : index
    %c0_107 = arith.constant 0 : index
    %c0_108 = arith.constant 0 : index
    %390 = vector.load %arg26[%c0_106, %c0_107, %c0_108] : memref<2x8x32xf32, #tpu.memory_space<vmem>>, vector<2x8x32xf32>
    tpu.vector_store %arg26[%c0_106, %c0_107, %c0_108], %389 {strides = array<i32>} : memref<2x8x32xf32, #tpu.memory_space<vmem>>, vector<2x8x32xf32>,
    return
  }
  func.func @transform_0(%arg0: i32) -> (i32, i32, i32) {
    %c0_i32 = arith.constant 0 : i32
    %c0_i32_0 = arith.constant 0 : i32
    %c0_i32_1 = arith.constant 0 : i32
    return %arg0, %c0_i32, %c0_i32_0 : i32, i32, i32
  }
  func.func @transform_1(%arg0: i32) -> (i32, i32, i32) {
    %c0_i32 = arith.constant 0 : i32
    %c0_i32_0 = arith.constant 0 : i32
    %c0_i32_1 = arith.constant 0 : i32
    return %arg0, %c0_i32, %c0_i32_0 : i32, i32, i32
  }
  func.func @transform_2(%arg0: i32) -> (i32, i32, i32) {
    %c0_i32 = arith.constant 0 : i32
    %c0_i32_0 = arith.constant 0 : i32
    %c0_i32_1 = arith.constant 0 : i32
    return %arg0, %c0_i32, %c0_i32_0 : i32, i32, i32
  }
  func.func @transform_3(%arg0: i32) -> (i32, i32, i32) {
    %c0_i32 = arith.constant 0 : i32
    %c0_i32_0 = arith.constant 0 : i32
    %c0_i32_1 = arith.constant 0 : i32
    return %arg0, %c0_i32, %c0_i32_0 : i32, i32, i32
  }
  func.func @transform_4(%arg0: i32) -> (i32, i32, i32) {
    %c0_i32 = arith.constant 0 : i32
    %c0_i32_0 = arith.constant 0 : i32
    %c0_i32_1 = arith.constant 0 : i32
    return %arg0, %c0_i32, %c0_i32_0 : i32, i32, i32
  }
  func.func @transform_5(%arg0: i32) -> (i32, i32) {
    %c0_i32 = arith.constant 0 : i32
    %c0_i32_0 = arith.constant 0 : i32
    %c0_i32_1 = arith.constant 0 : i32
    return %c0_i32, %c0_i32_0 : i32, i32
  }
  func.func @transform_6(%arg0: i32) -> (i32, i32) {
    %c0_i32 = arith.constant 0 : i32
    %c0_i32_0 = arith.constant 0 : i32
    %c0_i32_1 = arith.constant 0 : i32
    return %c0_i32, %c0_i32_0 : i32, i32
  }
  func.func @transform_7(%arg0: i32) -> (i32, i32) {
    %c0_i32 = arith.constant 0 : i32
    %c0_i32_0 = arith.constant 0 : i32
    %c0_i32_1 = arith.constant 0 : i32
    return %c0_i32, %c0_i32_0 : i32, i32
  }
  func.func @transform_8(%arg0: i32) -> (i32, i32) {
    %c0_i32 = arith.constant 0 : i32
    %c0_i32_0 = arith.constant 0 : i32
    %c0_i32_1 = arith.constant 0 : i32
    return %c0_i32, %c0_i32_0 : i32, i32
  }
  func.func @transform_9(%arg0: i32) -> (i32, i32) {
    %c0_i32 = arith.constant 0 : i32
    %c0_i32_0 = arith.constant 0 : i32
    %c0_i32_1 = arith.constant 0 : i32
    return %c0_i32, %c0_i32_0 : i32, i32
  }
  func.func @transform_10(%arg0: i32) -> (i32, i32) {
    %c0_i32 = arith.constant 0 : i32
    %c0_i32_0 = arith.constant 0 : i32
    %c0_i32_1 = arith.constant 0 : i32
    return %c0_i32, %c0_i32_0 : i32, i32
  }
  func.func @transform_11(%arg0: i32) -> (i32, i32) {
    %c0_i32 = arith.constant 0 : i32
    %c0_i32_0 = arith.constant 0 : i32
    %c0_i32_1 = arith.constant 0 : i32
    return %c0_i32, %c0_i32_0 : i32, i32
  }
  func.func @transform_12(%arg0: i32) -> (i32, i32) {
    %c0_i32 = arith.constant 0 : i32
    %c0_i32_0 = arith.constant 0 : i32
    %c0_i32_1 = arith.constant 0 : i32
    return %c0_i32, %c0_i32_0 : i32, i32
  }
  func.func @transform_13(%arg0: i32) -> (i32, i32) {
    %c0_i32 = arith.constant 0 : i32
    %c0_i32_0 = arith.constant 0 : i32
    %c0_i32_1 = arith.constant 0 : i32
    return %c0_i32, %c0_i32_0 : i32, i32
  }
  func.func @transform_14(%arg0: i32) -> (i32, i32) {
    %c0_i32 = arith.constant 0 : i32
    %c0_i32_0 = arith.constant 0 : i32
    %c0_i32_1 = arith.constant 0 : i32
    return %c0_i32, %c0_i32_0 : i32, i32
  }
  func.func @transform_15(%arg0: i32) -> (i32, i32) {
    %c0_i32 = arith.constant 0 : i32
    %c0_i32_0 = arith.constant 0 : i32
    %c0_i32_1 = arith.constant 0 : i32
    return %c0_i32, %c0_i32_0 : i32, i32
  }
  func.func @transform_16(%arg0: i32) -> (i32, i32) {
    %c0_i32 = arith.constant 0 : i32
    %c0_i32_0 = arith.constant 0 : i32
    %c0_i32_1 = arith.constant 0 : i32
    return %c0_i32, %c0_i32_0 : i32, i32
  }
  func.func @transform_17(%arg0: i32) -> (i32, i32) {
    %c0_i32 = arith.constant 0 : i32
    %c0_i32_0 = arith.constant 0 : i32
    %c0_i32_1 = arith.constant 0 : i32
    return %c0_i32, %c0_i32_0 : i32, i32
  }
  func.func @transform_18(%arg0: i32) -> (i32, i32) {
    %c0_i32 = arith.constant 0 : i32
    %c0_i32_0 = arith.constant 0 : i32
    %c0_i32_1 = arith.constant 0 : i32
    return %c0_i32, %c0_i32_0 : i32, i32
  }
  func.func @transform_19(%arg0: i32) -> (i32, i32) {
    %c0_i32 = arith.constant 0 : i32
    %c0_i32_0 = arith.constant 0 : i32
    %c0_i32_1 = arith.constant 0 : i32
    return %c0_i32, %c0_i32_0 : i32, i32
  }
  func.func @transform_20(%arg0: i32) -> (i32, i32) {
    %c0_i32 = arith.constant 0 : i32
    %c0_i32_0 = arith.constant 0 : i32
    %c0_i32_1 = arith.constant 0 : i32
    return %c0_i32, %c0_i32_0 : i32, i32
  }
  func.func @transform_21(%arg0: i32) -> (i32, i32) {
    %c0_i32 = arith.constant 0 : i32
    %c0_i32_0 = arith.constant 0 : i32
    %c0_i32_1 = arith.constant 0 : i32
    return %c0_i32, %c0_i32_0 : i32, i32
  }
  func.func @transform_22(%arg0: i32) -> (i32, i32) {
    %c0_i32 = arith.constant 0 : i32
    %c0_i32_0 = arith.constant 0 : i32
    %c0_i32_1 = arith.constant 0 : i32
    return %c0_i32, %c0_i32_0 : i32, i32
  }
  func.func @transform_23(%arg0: i32) -> (i32, i32) {
    %c0_i32 = arith.constant 0 : i32
    %c0_i32_0 = arith.constant 0 : i32
    %c0_i32_1 = arith.constant 0 : i32
    return %c0_i32, %c0_i32_0 : i32, i32
  }
  func.func @transform_24(%arg0: i32) -> (i32, i32) {
    %c0_i32 = arith.constant 0 : i32
    %c0_i32_0 = arith.constant 0 : i32
    %c0_i32_1 = arith.constant 0 : i32
    return %c0_i32, %c0_i32_0 : i32, i32
  }
  func.func @transform_25(%arg0: i32) -> (i32, i32, i32) {
    %c0_i32 = arith.constant 0 : i32
    %c0_i32_0 = arith.constant 0 : i32
    %c0_i32_1 = arith.constant 0 : i32
    return %arg0, %c0_i32, %c0_i32_0 : i32, i32, i32
  }
}

module attributes {stable_mosaic.version = 11 : i64} {
  func.func @_dec_block_kernel(%arg0: i32, %arg1: memref<2x8x32xf32, #tpu.memory_space<vmem>>, %arg2: memref<2x8x32xf32, #tpu.memory_space<vmem>>, %arg3: memref<2x8x1xf32, #tpu.memory_space<vmem>>, %arg4: memref<2x1x8xf32, #tpu.memory_space<vmem>>, %arg5: memref<2x1x8xf32, #tpu.memory_space<vmem>>, %arg6: memref<32x96xbf16, #tpu.memory_space<vmem>>, %arg7: memref<1x96xf32, #tpu.memory_space<vmem>>, %arg8: memref<32x32xbf16, #tpu.memory_space<vmem>>, %arg9: memref<1x32xf32, #tpu.memory_space<vmem>>, %arg10: memref<1x32xf32, #tpu.memory_space<vmem>>, %arg11: memref<1x32xf32, #tpu.memory_space<vmem>>, %arg12: memref<32x32xbf16, #tpu.memory_space<vmem>>, %arg13: memref<1x32xf32, #tpu.memory_space<vmem>>, %arg14: memref<32x64xbf16, #tpu.memory_space<vmem>>, %arg15: memref<1x64xf32, #tpu.memory_space<vmem>>, %arg16: memref<32x32xbf16, #tpu.memory_space<vmem>>, %arg17: memref<1x32xf32, #tpu.memory_space<vmem>>, %arg18: memref<1x32xf32, #tpu.memory_space<vmem>>, %arg19: memref<1x32xf32, #tpu.memory_space<vmem>>, %arg20: memref<32x64xbf16, #tpu.memory_space<vmem>>, %arg21: memref<1x64xf32, #tpu.memory_space<vmem>>, %arg22: memref<64x32xbf16, #tpu.memory_space<vmem>>, %arg23: memref<1x32xf32, #tpu.memory_space<vmem>>, %arg24: memref<1x32xf32, #tpu.memory_space<vmem>>, %arg25: memref<1x32xf32, #tpu.memory_space<vmem>>, %arg26: memref<2x8x32xf32, #tpu.memory_space<vmem>>) attributes {dimension_semantics = [#tpu.dimension_semantics<parallel>], iteration_bounds = array<i64: 2>, scalar_prefetch = 0 : i64, scratch_operands = 0 : i64, tpu.core_type = #tpu.core_type<tc>, window_params = [{transform_indices = @transform_0, window_bounds = array<i64: 2, 8, 32>}, {transform_indices = @transform_1, window_bounds = array<i64: 2, 8, 32>}, {transform_indices = @transform_2, window_bounds = array<i64: 2, 8, 1>}, {transform_indices = @transform_3, window_bounds = array<i64: 2, 1, 8>}, {transform_indices = @transform_4, window_bounds = array<i64: 2, 1, 8>}, {pipeline_mode = #tpu.pipeline_mode<synchronous>, transform_indices = @transform_5, window_bounds = array<i64: 32, 96>}, {pipeline_mode = #tpu.pipeline_mode<synchronous>, transform_indices = @transform_6, window_bounds = array<i64: 1, 96>}, {pipeline_mode = #tpu.pipeline_mode<synchronous>, transform_indices = @transform_7, window_bounds = array<i64: 32, 32>}, {pipeline_mode = #tpu.pipeline_mode<synchronous>, transform_indices = @transform_8, window_bounds = array<i64: 1, 32>}, {pipeline_mode = #tpu.pipeline_mode<synchronous>, transform_indices = @transform_9, window_bounds = array<i64: 1, 32>}, {pipeline_mode = #tpu.pipeline_mode<synchronous>, transform_indices = @transform_10, window_bounds = array<i64: 1, 32>}, {pipeline_mode = #tpu.pipeline_mode<synchronous>, transform_indices = @transform_11, window_bounds = array<i64: 32, 32>}, {pipeline_mode = #tpu.pipeline_mode<synchronous>, transform_indices = @transform_12, window_bounds = array<i64: 1, 32>}, {pipeline_mode = #tpu.pipeline_mode<synchronous>, transform_indices = @transform_13, window_bounds = array<i64: 32, 64>}, {pipeline_mode = #tpu.pipeline_mode<synchronous>, transform_indices = @transform_14, window_bounds = array<i64: 1, 64>}, {pipeline_mode = #tpu.pipeline_mode<synchronous>, transform_indices = @transform_15, window_bounds = array<i64: 32, 32>}, {pipeline_mode = #tpu.pipeline_mode<synchronous>, transform_indices = @transform_16, window_bounds = array<i64: 1, 32>}, {pipeline_mode = #tpu.pipeline_mode<synchronous>, transform_indices = @transform_17, window_bounds = array<i64: 1, 32>}, {pipeline_mode = #tpu.pipeline_mode<synchronous>, transform_indices = @transform_18, window_bounds = array<i64: 1, 32>}, {pipeline_mode = #tpu.pipeline_mode<synchronous>, transform_indices = @transform_19, window_bounds = array<i64: 32, 64>}, {pipeline_mode = #tpu.pipeline_mode<synchronous>, transform_indices = @transform_20, window_bounds = array<i64: 1, 64>}, {pipeline_mode = #tpu.pipeline_mode<synchronous>, transform_indices = @transform_21, window_bounds = array<i64: 64, 32>}, {pipeline_mode = #tpu.pipeline_mode<synchronous>, transform_indices = @transform_22, window_bounds = array<i64: 1, 32>}, {pipeline_mode = #tpu.pipeline_mode<synchronous>, transform_indices = @transform_23, window_bounds = array<i64: 1, 32>}, {pipeline_mode = #tpu.pipeline_mode<synchronous>, transform_indices = @transform_24, window_bounds = array<i64: 1, 32>}, {transform_indices = @transform_25, window_bounds = array<i64: 2, 8, 32>}]} {
    %c0 = arith.constant 0 : index
    %c0_0 = arith.constant 0 : index
    %c0_1 = arith.constant 0 : index
    %0 = vector.load %arg1[%c0, %c0_0, %c0_1] : memref<2x8x32xf32, #tpu.memory_space<vmem>>, vector<2x8x32xf32>
    %1 = vector.shape_cast %0 : vector<2x8x32xf32> to vector<16x32xf32>
    %c0_2 = arith.constant 0 : index
    %c0_3 = arith.constant 0 : index
    %c0_4 = arith.constant 0 : index
    %2 = vector.load %arg2[%c0_2, %c0_3, %c0_4] : memref<2x8x32xf32, #tpu.memory_space<vmem>>, vector<2x8x32xf32>
    %3 = vector.shape_cast %2 : vector<2x8x32xf32> to vector<16x32xf32>
    %c0_5 = arith.constant 0 : index
    %c0_6 = arith.constant 0 : index
    %c0_7 = arith.constant 0 : index
    %4 = vector.load %arg3[%c0_5, %c0_6, %c0_7] : memref<2x8x1xf32, #tpu.memory_space<vmem>>, vector<2x8x1xf32>
    %5 = vector.shape_cast %4 : vector<2x8x1xf32> to vector<16x1xf32>
    %6 = tpu.iota {dimensions = array<i32: 0>} : vector<8x8xi32>
    %7 = tpu.iota {dimensions = array<i32: 1>} : vector<8x8xi32>
    %8 = arith.cmpi sle, %7, %6 : vector<8x8xi32>
    %9 = arith.truncf %1 : vector<16x32xf32> to vector<16x32xbf16>
    %c0_8 = arith.constant 0 : index
    %c0_9 = arith.constant 0 : index
    %10 = vector.load %arg6[%c0_8, %c0_9] : memref<32x96xbf16, #tpu.memory_space<vmem>>, vector<32x96xbf16>
    %cst = arith.constant dense<0.000000e+00> : vector<16x96xf32>
    %11 = tpu.matmul %9, %10, %cst {dimension_numbers = #tpu.dot_dimension_numbers<[1], [0], [0], [1], [0, 0, 1, 1], [], []>} : vector<16x32xbf16>, vector<32x96xbf16>, vector<16x96xf32> -> vector<16x96xf32>
    %c0_10 = arith.constant 0 : index
    %c0_11 = arith.constant 0 : index
    %12 = vector.load %arg7[%c0_10, %c0_11] : memref<1x96xf32, #tpu.memory_space<vmem>>, vector<1x96xf32>
    %13 = vector.broadcast %12 : vector<1x96xf32> to vector<16x96xf32>
    %14 = arith.addf %11, %13 : vector<16x96xf32>
    %15 = vector.extract_strided_slice %14 {offsets = [0, 0], sizes = [8, 96], strides = [1, 1]} : vector<16x96xf32> to vector<8x96xf32>
    %16 = vector.extract_strided_slice %15 {offsets = [0, 0], sizes = [8, 8], strides = [1, 1]} : vector<8x96xf32> to vector<8x8xf32>
    %17 = vector.extract_strided_slice %15 {offsets = [0, 8], sizes = [8, 8], strides = [1, 1]} : vector<8x96xf32> to vector<8x8xf32>
    %18 = vector.extract_strided_slice %15 {offsets = [0, 16], sizes = [8, 8], strides = [1, 1]} : vector<8x96xf32> to vector<8x8xf32>
    %19 = vector.extract_strided_slice %15 {offsets = [0, 24], sizes = [8, 8], strides = [1, 1]} : vector<8x96xf32> to vector<8x8xf32>
    %20 = vector.shape_cast %16 : vector<8x8xf32> to vector<1x8x8xf32>
    %21 = vector.shape_cast %17 : vector<8x8xf32> to vector<1x8x8xf32>
    %22 = vector.shape_cast %18 : vector<8x8xf32> to vector<1x8x8xf32>
    %23 = vector.shape_cast %19 : vector<8x8xf32> to vector<1x8x8xf32>
    %24 = tpu.concatenate %20, %21, %22, %23 in 0 : vector<1x8x8xf32>, vector<1x8x8xf32>, vector<1x8x8xf32>, vector<1x8x8xf32> -> vector<4x8x8xf32>
    %25 = vector.extract_strided_slice %15 {offsets = [0, 32], sizes = [8, 8], strides = [1, 1]} : vector<8x96xf32> to vector<8x8xf32>
    %26 = vector.extract_strided_slice %15 {offsets = [0, 40], sizes = [8, 8], strides = [1, 1]} : vector<8x96xf32> to vector<8x8xf32>
    %27 = vector.extract_strided_slice %15 {offsets = [0, 48], sizes = [8, 8], strides = [1, 1]} : vector<8x96xf32> to vector<8x8xf32>
    %28 = vector.extract_strided_slice %15 {offsets = [0, 56], sizes = [8, 8], strides = [1, 1]} : vector<8x96xf32> to vector<8x8xf32>
    %29 = vector.shape_cast %25 : vector<8x8xf32> to vector<1x8x8xf32>
    %30 = vector.shape_cast %26 : vector<8x8xf32> to vector<1x8x8xf32>
    %31 = vector.shape_cast %27 : vector<8x8xf32> to vector<1x8x8xf32>
    %32 = vector.shape_cast %28 : vector<8x8xf32> to vector<1x8x8xf32>
    %33 = tpu.concatenate %29, %30, %31, %32 in 0 : vector<1x8x8xf32>, vector<1x8x8xf32>, vector<1x8x8xf32>, vector<1x8x8xf32> -> vector<4x8x8xf32>
    %34 = vector.extract_strided_slice %15 {offsets = [0, 64], sizes = [8, 8], strides = [1, 1]} : vector<8x96xf32> to vector<8x8xf32>
    %35 = vector.extract_strided_slice %15 {offsets = [0, 72], sizes = [8, 8], strides = [1, 1]} : vector<8x96xf32> to vector<8x8xf32>
    %36 = vector.extract_strided_slice %15 {offsets = [0, 80], sizes = [8, 8], strides = [1, 1]} : vector<8x96xf32> to vector<8x8xf32>
    %37 = vector.extract_strided_slice %15 {offsets = [0, 88], sizes = [8, 8], strides = [1, 1]} : vector<8x96xf32> to vector<8x8xf32>
    %38 = vector.shape_cast %34 : vector<8x8xf32> to vector<1x8x8xf32>
    %39 = vector.shape_cast %35 : vector<8x8xf32> to vector<1x8x8xf32>
    %40 = vector.shape_cast %36 : vector<8x8xf32> to vector<1x8x8xf32>
    %41 = vector.shape_cast %37 : vector<8x8xf32> to vector<1x8x8xf32>
    %42 = tpu.concatenate %38, %39, %40, %41 in 0 : vector<1x8x8xf32>, vector<1x8x8xf32>, vector<1x8x8xf32>, vector<1x8x8xf32> -> vector<4x8x8xf32>
    %c0_12 = arith.constant 0 : index
    %c0_13 = arith.constant 0 : index
    %c0_14 = arith.constant 0 : index
    %43 = vector.load %arg4[%c0_12, %c0_13, %c0_14] : memref<2x1x8xf32, #tpu.memory_space<vmem>>, vector<1x1x8xf32>
    %44 = vector.shape_cast %43 : vector<1x1x8xf32> to vector<1x8xf32>
    %cst_15 = arith.constant 0.000000e+00 : f32
    %45 = vector.broadcast %cst_15 : f32 to vector<1x8xf32>
    %46 = arith.cmpf one, %44, %45 : vector<1x8xf32>
    %47 = vector.broadcast %46 : vector<1x8xi1> to vector<8x8xi1>
    %48 = arith.andi %8, %47 : vector<8x8xi1>
    %49 = arith.truncf %24 : vector<4x8x8xf32> to vector<4x8x8xbf16>
    %50 = arith.truncf %33 : vector<4x8x8xf32> to vector<4x8x8xbf16>
    "tpu.trace_start"() <{level = 10 : i32, message = "hqd,hkd->hqk"}> : () -> ()
    %cst_16 = arith.constant dense<0.000000e+00> : vector<4x8x8xf32>
    %51 = tpu.matmul %49, %50, %cst_16 {dimension_numbers = #tpu.dot_dimension_numbers<[2], [2], [1], [1], [0, 0, 0, 1, 1, 1], [0], [0]>} : vector<4x8x8xbf16>, vector<4x8x8xbf16>, vector<4x8x8xf32> -> vector<4x8x8xf32>
    %cst_17 = arith.constant -1.000000e+30 : f32
    "tpu.trace_stop"() : () -> ()
    %52 = vector.shape_cast %48 : vector<8x8xi1> to vector<1x8x8xi1>
    %53 = vector.broadcast %52 : vector<1x8x8xi1> to vector<4x8x8xi1>
    %54 = vector.broadcast %cst_17 : f32 to vector<4x8x8xf32>
    %55 = arith.select %53, %51, %54 : vector<4x8x8xi1>, vector<4x8x8xf32>
    %cst_18 = arith.constant dense<0xFF800000> : vector<4x8xf32>
    %56 = vector.multi_reduction <maximumf>, %55, %cst_18 [2] : vector<4x8x8xf32> to vector<4x8xf32>
    %57 = vector.shape_cast %56 : vector<4x8xf32> to vector<4x8x1xf32>
    %58 = vector.broadcast %57 : vector<4x8x1xf32> to vector<4x8x8xf32>
    %59 = arith.subf %55, %58 : vector<4x8x8xf32>
    %60 = math.exp %59 : vector<4x8x8xf32>
    %cst_19 = arith.constant dense<0.000000e+00> : vector<4x8xf32>
    %61 = vector.multi_reduction <add>, %60, %cst_19 [2] : vector<4x8x8xf32> to vector<4x8xf32>
    %62 = vector.shape_cast %61 : vector<4x8xf32> to vector<4x8x1xf32>
    %63 = tpu.reciprocal %62 {approx = true} : vector<4x8x1xf32> -> vector<4x8x1xf32>
    %64 = arith.truncf %60 : vector<4x8x8xf32> to vector<4x8x8xbf16>
    %65 = arith.truncf %42 : vector<4x8x8xf32> to vector<4x8x8xbf16>
    "tpu.trace_start"() <{level = 10 : i32, message = "hqk,hkd->hqd"}> : () -> ()
    %cst_20 = arith.constant dense<0.000000e+00> : vector<4x8x8xf32>
    %66 = tpu.matmul %64, %65, %cst_20 {dimension_numbers = #tpu.dot_dimension_numbers<[2], [1], [1], [2], [0, 0, 0, 1, 1, 2], [0], [0]>} : vector<4x8x8xbf16>, vector<4x8x8xbf16>, vector<4x8x8xf32> -> vector<4x8x8xf32>
    "tpu.trace_stop"() : () -> ()
    %67 = vector.broadcast %63 : vector<4x8x1xf32> to vector<4x8x8xf32>
    %68 = arith.mulf %66, %67 : vector<4x8x8xf32>
    %69 = vector.extract_strided_slice %68 {offsets = [0, 0, 0], sizes = [1, 8, 8], strides = [1, 1, 1]} : vector<4x8x8xf32> to vector<1x8x8xf32>
    %70 = vector.shape_cast %69 : vector<1x8x8xf32> to vector<8x8xf32>
    %71 = vector.extract_strided_slice %68 {offsets = [1, 0, 0], sizes = [1, 8, 8], strides = [1, 1, 1]} : vector<4x8x8xf32> to vector<1x8x8xf32>
    %72 = vector.shape_cast %71 : vector<1x8x8xf32> to vector<8x8xf32>
    %73 = vector.extract_strided_slice %68 {offsets = [2, 0, 0], sizes = [1, 8, 8], strides = [1, 1, 1]} : vector<4x8x8xf32> to vector<1x8x8xf32>
    %74 = vector.shape_cast %73 : vector<1x8x8xf32> to vector<8x8xf32>
    %75 = vector.extract_strided_slice %68 {offsets = [3, 0, 0], sizes = [1, 8, 8], strides = [1, 1, 1]} : vector<4x8x8xf32> to vector<1x8x8xf32>
    %76 = vector.shape_cast %75 : vector<1x8x8xf32> to vector<8x8xf32>
    %77 = tpu.concatenate %70, %72, %74, %76 in 1 : vector<8x8xf32>, vector<8x8xf32>, vector<8x8xf32>, vector<8x8xf32> -> vector<8x32xf32>
    %78 = vector.extract_strided_slice %14 {offsets = [8, 0], sizes = [8, 96], strides = [1, 1]} : vector<16x96xf32> to vector<8x96xf32>
    %79 = vector.extract_strided_slice %78 {offsets = [0, 0], sizes = [8, 8], strides = [1, 1]} : vector<8x96xf32> to vector<8x8xf32>
    %80 = vector.extract_strided_slice %78 {offsets = [0, 8], sizes = [8, 8], strides = [1, 1]} : vector<8x96xf32> to vector<8x8xf32>
    %81 = vector.extract_strided_slice %78 {offsets = [0, 16], sizes = [8, 8], strides = [1, 1]} : vector<8x96xf32> to vector<8x8xf32>
    %82 = vector.extract_strided_slice %78 {offsets = [0, 24], sizes = [8, 8], strides = [1, 1]} : vector<8x96xf32> to vector<8x8xf32>
    %83 = vector.shape_cast %79 : vector<8x8xf32> to vector<1x8x8xf32>
    %84 = vector.shape_cast %80 : vector<8x8xf32> to vector<1x8x8xf32>
    %85 = vector.shape_cast %81 : vector<8x8xf32> to vector<1x8x8xf32>
    %86 = vector.shape_cast %82 : vector<8x8xf32> to vector<1x8x8xf32>
    %87 = tpu.concatenate %83, %84, %85, %86 in 0 : vector<1x8x8xf32>, vector<1x8x8xf32>, vector<1x8x8xf32>, vector<1x8x8xf32> -> vector<4x8x8xf32>
    %88 = vector.extract_strided_slice %78 {offsets = [0, 32], sizes = [8, 8], strides = [1, 1]} : vector<8x96xf32> to vector<8x8xf32>
    %89 = vector.extract_strided_slice %78 {offsets = [0, 40], sizes = [8, 8], strides = [1, 1]} : vector<8x96xf32> to vector<8x8xf32>
    %90 = vector.extract_strided_slice %78 {offsets = [0, 48], sizes = [8, 8], strides = [1, 1]} : vector<8x96xf32> to vector<8x8xf32>
    %91 = vector.extract_strided_slice %78 {offsets = [0, 56], sizes = [8, 8], strides = [1, 1]} : vector<8x96xf32> to vector<8x8xf32>
    %92 = vector.shape_cast %88 : vector<8x8xf32> to vector<1x8x8xf32>
    %93 = vector.shape_cast %89 : vector<8x8xf32> to vector<1x8x8xf32>
    %94 = vector.shape_cast %90 : vector<8x8xf32> to vector<1x8x8xf32>
    %95 = vector.shape_cast %91 : vector<8x8xf32> to vector<1x8x8xf32>
    %96 = tpu.concatenate %92, %93, %94, %95 in 0 : vector<1x8x8xf32>, vector<1x8x8xf32>, vector<1x8x8xf32>, vector<1x8x8xf32> -> vector<4x8x8xf32>
    %97 = vector.extract_strided_slice %78 {offsets = [0, 64], sizes = [8, 8], strides = [1, 1]} : vector<8x96xf32> to vector<8x8xf32>
    %98 = vector.extract_strided_slice %78 {offsets = [0, 72], sizes = [8, 8], strides = [1, 1]} : vector<8x96xf32> to vector<8x8xf32>
    %99 = vector.extract_strided_slice %78 {offsets = [0, 80], sizes = [8, 8], strides = [1, 1]} : vector<8x96xf32> to vector<8x8xf32>
    %100 = vector.extract_strided_slice %78 {offsets = [0, 88], sizes = [8, 8], strides = [1, 1]} : vector<8x96xf32> to vector<8x8xf32>
    %101 = vector.shape_cast %97 : vector<8x8xf32> to vector<1x8x8xf32>
    %102 = vector.shape_cast %98 : vector<8x8xf32> to vector<1x8x8xf32>
    %103 = vector.shape_cast %99 : vector<8x8xf32> to vector<1x8x8xf32>
    %104 = vector.shape_cast %100 : vector<8x8xf32> to vector<1x8x8xf32>
    %105 = tpu.concatenate %101, %102, %103, %104 in 0 : vector<1x8x8xf32>, vector<1x8x8xf32>, vector<1x8x8xf32>, vector<1x8x8xf32> -> vector<4x8x8xf32>
    %c1 = arith.constant 1 : index
    %c0_21 = arith.constant 0 : index
    %c0_22 = arith.constant 0 : index
    %106 = vector.load %arg4[%c1, %c0_21, %c0_22] : memref<2x1x8xf32, #tpu.memory_space<vmem>>, vector<1x1x8xf32>
    %107 = vector.shape_cast %106 : vector<1x1x8xf32> to vector<1x8xf32>
    %cst_23 = arith.constant 0.000000e+00 : f32
    %108 = vector.broadcast %cst_23 : f32 to vector<1x8xf32>
    %109 = arith.cmpf one, %107, %108 : vector<1x8xf32>
    %110 = vector.broadcast %109 : vector<1x8xi1> to vector<8x8xi1>
    %111 = arith.andi %8, %110 : vector<8x8xi1>
    %112 = arith.truncf %87 : vector<4x8x8xf32> to vector<4x8x8xbf16>
    %113 = arith.truncf %96 : vector<4x8x8xf32> to vector<4x8x8xbf16>
    "tpu.trace_start"() <{level = 10 : i32, message = "hqd,hkd->hqk"}> : () -> ()
    %cst_24 = arith.constant dense<0.000000e+00> : vector<4x8x8xf32>
    %114 = tpu.matmul %112, %113, %cst_24 {dimension_numbers = #tpu.dot_dimension_numbers<[2], [2], [1], [1], [0, 0, 0, 1, 1, 1], [0], [0]>} : vector<4x8x8xbf16>, vector<4x8x8xbf16>, vector<4x8x8xf32> -> vector<4x8x8xf32>
    %cst_25 = arith.constant -1.000000e+30 : f32
    "tpu.trace_stop"() : () -> ()
    %115 = vector.shape_cast %111 : vector<8x8xi1> to vector<1x8x8xi1>
    %116 = vector.broadcast %115 : vector<1x8x8xi1> to vector<4x8x8xi1>
    %117 = vector.broadcast %cst_25 : f32 to vector<4x8x8xf32>
    %118 = arith.select %116, %114, %117 : vector<4x8x8xi1>, vector<4x8x8xf32>
    %cst_26 = arith.constant dense<0xFF800000> : vector<4x8xf32>
    %119 = vector.multi_reduction <maximumf>, %118, %cst_26 [2] : vector<4x8x8xf32> to vector<4x8xf32>
    %120 = vector.shape_cast %119 : vector<4x8xf32> to vector<4x8x1xf32>
    %121 = vector.broadcast %120 : vector<4x8x1xf32> to vector<4x8x8xf32>
    %122 = arith.subf %118, %121 : vector<4x8x8xf32>
    %123 = math.exp %122 : vector<4x8x8xf32>
    %cst_27 = arith.constant dense<0.000000e+00> : vector<4x8xf32>
    %124 = vector.multi_reduction <add>, %123, %cst_27 [2] : vector<4x8x8xf32> to vector<4x8xf32>
    %125 = vector.shape_cast %124 : vector<4x8xf32> to vector<4x8x1xf32>
    %126 = tpu.reciprocal %125 {approx = true} : vector<4x8x1xf32> -> vector<4x8x1xf32>
    %127 = arith.truncf %123 : vector<4x8x8xf32> to vector<4x8x8xbf16>
    %128 = arith.truncf %105 : vector<4x8x8xf32> to vector<4x8x8xbf16>
    "tpu.trace_start"() <{level = 10 : i32, message = "hqk,hkd->hqd"}> : () -> ()
    %cst_28 = arith.constant dense<0.000000e+00> : vector<4x8x8xf32>
    %129 = tpu.matmul %127, %128, %cst_28 {dimension_numbers = #tpu.dot_dimension_numbers<[2], [1], [1], [2], [0, 0, 0, 1, 1, 2], [0], [0]>} : vector<4x8x8xbf16>, vector<4x8x8xbf16>, vector<4x8x8xf32> -> vector<4x8x8xf32>
    "tpu.trace_stop"() : () -> ()
    %130 = vector.broadcast %126 : vector<4x8x1xf32> to vector<4x8x8xf32>
    %131 = arith.mulf %129, %130 : vector<4x8x8xf32>
    %132 = vector.extract_strided_slice %131 {offsets = [0, 0, 0], sizes = [1, 8, 8], strides = [1, 1, 1]} : vector<4x8x8xf32> to vector<1x8x8xf32>
    %133 = vector.shape_cast %132 : vector<1x8x8xf32> to vector<8x8xf32>
    %134 = vector.extract_strided_slice %131 {offsets = [1, 0, 0], sizes = [1, 8, 8], strides = [1, 1, 1]} : vector<4x8x8xf32> to vector<1x8x8xf32>
    %135 = vector.shape_cast %134 : vector<1x8x8xf32> to vector<8x8xf32>
    %136 = vector.extract_strided_slice %131 {offsets = [2, 0, 0], sizes = [1, 8, 8], strides = [1, 1, 1]} : vector<4x8x8xf32> to vector<1x8x8xf32>
    %137 = vector.shape_cast %136 : vector<1x8x8xf32> to vector<8x8xf32>
    %138 = vector.extract_strided_slice %131 {offsets = [3, 0, 0], sizes = [1, 8, 8], strides = [1, 1, 1]} : vector<4x8x8xf32> to vector<1x8x8xf32>
    %139 = vector.shape_cast %138 : vector<1x8x8xf32> to vector<8x8xf32>
    %140 = tpu.concatenate %133, %135, %137, %139 in 1 : vector<8x8xf32>, vector<8x8xf32>, vector<8x8xf32>, vector<8x8xf32> -> vector<8x32xf32>
    %141 = tpu.concatenate %77, %140 in 0 : vector<8x32xf32>, vector<8x32xf32> -> vector<16x32xf32>
    %142 = arith.truncf %141 : vector<16x32xf32> to vector<16x32xbf16>
    %c0_29 = arith.constant 0 : index
    %c0_30 = arith.constant 0 : index
    %143 = vector.load %arg8[%c0_29, %c0_30] : memref<32x32xbf16, #tpu.memory_space<vmem>>, vector<32x32xbf16>
    %cst_31 = arith.constant dense<0.000000e+00> : vector<16x32xf32>
    %144 = tpu.matmul %142, %143, %cst_31 {dimension_numbers = #tpu.dot_dimension_numbers<[1], [0], [0], [1], [0, 0, 1, 1], [], []>} : vector<16x32xbf16>, vector<32x32xbf16>, vector<16x32xf32> -> vector<16x32xf32>
    %c0_32 = arith.constant 0 : index
    %c0_33 = arith.constant 0 : index
    %145 = vector.load %arg9[%c0_32, %c0_33] : memref<1x32xf32, #tpu.memory_space<vmem>>, vector<1x32xf32>
    %146 = vector.broadcast %145 : vector<1x32xf32> to vector<16x32xf32>
    %147 = arith.addf %144, %146 : vector<16x32xf32>
    %148 = vector.broadcast %5 : vector<16x1xf32> to vector<16x32xf32>
    %149 = arith.mulf %147, %148 : vector<16x32xf32>
    %150 = arith.addf %149, %1 : vector<16x32xf32>
    %cst_34 = arith.constant dense<0.000000e+00> : vector<16xf32>
    %151 = vector.multi_reduction <add>, %150, %cst_34 [1] : vector<16x32xf32> to vector<16xf32>
    %152 = vector.shape_cast %151 : vector<16xf32> to vector<16x1xf32>
    %cst_35 = arith.constant 3.200000e+01 : f32
    %153 = vector.broadcast %cst_35 : f32 to vector<16x1xf32>
    %154 = arith.divf %152, %153 : vector<16x1xf32>
    %155 = vector.broadcast %154 : vector<16x1xf32> to vector<16x32xf32>
    %156 = arith.subf %150, %155 : vector<16x32xf32>
    %157 = arith.mulf %156, %156 : vector<16x32xf32>
    %cst_36 = arith.constant dense<0.000000e+00> : vector<16xf32>
    %158 = vector.multi_reduction <add>, %157, %cst_36 [1] : vector<16x32xf32> to vector<16xf32>
    %159 = vector.shape_cast %158 : vector<16xf32> to vector<16x1xf32>
    %cst_37 = arith.constant 3.200000e+01 : f32
    %160 = vector.broadcast %cst_37 : f32 to vector<16x1xf32>
    %161 = arith.divf %159, %160 : vector<16x1xf32>
    %162 = vector.broadcast %154 : vector<16x1xf32> to vector<16x32xf32>
    %163 = arith.subf %150, %162 : vector<16x32xf32>
    %cst_38 = arith.constant 9.99999974E-6 : f32
    %164 = vector.broadcast %cst_38 : f32 to vector<16x1xf32>
    %165 = arith.addf %161, %164 : vector<16x1xf32>
    %166 = math.rsqrt %165 : vector<16x1xf32>
    %167 = vector.broadcast %166 : vector<16x1xf32> to vector<16x32xf32>
    %168 = arith.mulf %163, %167 : vector<16x32xf32>
    %c0_39 = arith.constant 0 : index
    %c0_40 = arith.constant 0 : index
    %169 = vector.load %arg10[%c0_39, %c0_40] : memref<1x32xf32, #tpu.memory_space<vmem>>, vector<1x32xf32>
    %170 = vector.broadcast %169 : vector<1x32xf32> to vector<16x32xf32>
    %171 = arith.mulf %168, %170 : vector<16x32xf32>
    %c0_41 = arith.constant 0 : index
    %c0_42 = arith.constant 0 : index
    %172 = vector.load %arg11[%c0_41, %c0_42] : memref<1x32xf32, #tpu.memory_space<vmem>>, vector<1x32xf32>
    %173 = vector.broadcast %172 : vector<1x32xf32> to vector<16x32xf32>
    %174 = arith.addf %171, %173 : vector<16x32xf32>
    %175 = arith.truncf %174 : vector<16x32xf32> to vector<16x32xbf16>
    %c0_43 = arith.constant 0 : index
    %c0_44 = arith.constant 0 : index
    %176 = vector.load %arg12[%c0_43, %c0_44] : memref<32x32xbf16, #tpu.memory_space<vmem>>, vector<32x32xbf16>
    %cst_45 = arith.constant dense<0.000000e+00> : vector<16x32xf32>
    %177 = tpu.matmul %175, %176, %cst_45 {dimension_numbers = #tpu.dot_dimension_numbers<[1], [0], [0], [1], [0, 0, 1, 1], [], []>} : vector<16x32xbf16>, vector<32x32xbf16>, vector<16x32xf32> -> vector<16x32xf32>
    %c0_46 = arith.constant 0 : index
    %c0_47 = arith.constant 0 : index
    %178 = vector.load %arg13[%c0_46, %c0_47] : memref<1x32xf32, #tpu.memory_space<vmem>>, vector<1x32xf32>
    %179 = vector.broadcast %178 : vector<1x32xf32> to vector<16x32xf32>
    %180 = arith.addf %177, %179 : vector<16x32xf32>
    %181 = arith.truncf %3 : vector<16x32xf32> to vector<16x32xbf16>
    %c0_48 = arith.constant 0 : index
    %c0_49 = arith.constant 0 : index
    %182 = vector.load %arg14[%c0_48, %c0_49] : memref<32x64xbf16, #tpu.memory_space<vmem>>, vector<32x64xbf16>
    %cst_50 = arith.constant dense<0.000000e+00> : vector<16x64xf32>
    %183 = tpu.matmul %181, %182, %cst_50 {dimension_numbers = #tpu.dot_dimension_numbers<[1], [0], [0], [1], [0, 0, 1, 1], [], []>} : vector<16x32xbf16>, vector<32x64xbf16>, vector<16x64xf32> -> vector<16x64xf32>
    %c0_51 = arith.constant 0 : index
    %c0_52 = arith.constant 0 : index
    %184 = vector.load %arg15[%c0_51, %c0_52] : memref<1x64xf32, #tpu.memory_space<vmem>>, vector<1x64xf32>
    %185 = vector.broadcast %184 : vector<1x64xf32> to vector<16x64xf32>
    %186 = arith.addf %183, %185 : vector<16x64xf32>
    %187 = vector.extract_strided_slice %180 {offsets = [0, 0], sizes = [8, 32], strides = [1, 1]} : vector<16x32xf32> to vector<8x32xf32>
    %188 = vector.extract_strided_slice %187 {offsets = [0, 0], sizes = [8, 8], strides = [1, 1]} : vector<8x32xf32> to vector<8x8xf32>
    %189 = vector.extract_strided_slice %187 {offsets = [0, 8], sizes = [8, 8], strides = [1, 1]} : vector<8x32xf32> to vector<8x8xf32>
    %190 = vector.extract_strided_slice %187 {offsets = [0, 16], sizes = [8, 8], strides = [1, 1]} : vector<8x32xf32> to vector<8x8xf32>
    %191 = vector.extract_strided_slice %187 {offsets = [0, 24], sizes = [8, 8], strides = [1, 1]} : vector<8x32xf32> to vector<8x8xf32>
    %192 = vector.shape_cast %188 : vector<8x8xf32> to vector<1x8x8xf32>
    %193 = vector.shape_cast %189 : vector<8x8xf32> to vector<1x8x8xf32>
    %194 = vector.shape_cast %190 : vector<8x8xf32> to vector<1x8x8xf32>
    %195 = vector.shape_cast %191 : vector<8x8xf32> to vector<1x8x8xf32>
    %196 = tpu.concatenate %192, %193, %194, %195 in 0 : vector<1x8x8xf32>, vector<1x8x8xf32>, vector<1x8x8xf32>, vector<1x8x8xf32> -> vector<4x8x8xf32>
    %197 = vector.extract_strided_slice %186 {offsets = [0, 0], sizes = [8, 64], strides = [1, 1]} : vector<16x64xf32> to vector<8x64xf32>
    %198 = vector.extract_strided_slice %197 {offsets = [0, 0], sizes = [8, 8], strides = [1, 1]} : vector<8x64xf32> to vector<8x8xf32>
    %199 = vector.extract_strided_slice %197 {offsets = [0, 8], sizes = [8, 8], strides = [1, 1]} : vector<8x64xf32> to vector<8x8xf32>
    %200 = vector.extract_strided_slice %197 {offsets = [0, 16], sizes = [8, 8], strides = [1, 1]} : vector<8x64xf32> to vector<8x8xf32>
    %201 = vector.extract_strided_slice %197 {offsets = [0, 24], sizes = [8, 8], strides = [1, 1]} : vector<8x64xf32> to vector<8x8xf32>
    %202 = vector.shape_cast %198 : vector<8x8xf32> to vector<1x8x8xf32>
    %203 = vector.shape_cast %199 : vector<8x8xf32> to vector<1x8x8xf32>
    %204 = vector.shape_cast %200 : vector<8x8xf32> to vector<1x8x8xf32>
    %205 = vector.shape_cast %201 : vector<8x8xf32> to vector<1x8x8xf32>
    %206 = tpu.concatenate %202, %203, %204, %205 in 0 : vector<1x8x8xf32>, vector<1x8x8xf32>, vector<1x8x8xf32>, vector<1x8x8xf32> -> vector<4x8x8xf32>
    %207 = vector.extract_strided_slice %197 {offsets = [0, 32], sizes = [8, 8], strides = [1, 1]} : vector<8x64xf32> to vector<8x8xf32>
    %208 = vector.extract_strided_slice %197 {offsets = [0, 40], sizes = [8, 8], strides = [1, 1]} : vector<8x64xf32> to vector<8x8xf32>
    %209 = vector.extract_strided_slice %197 {offsets = [0, 48], sizes = [8, 8], strides = [1, 1]} : vector<8x64xf32> to vector<8x8xf32>
    %210 = vector.extract_strided_slice %197 {offsets = [0, 56], sizes = [8, 8], strides = [1, 1]} : vector<8x64xf32> to vector<8x8xf32>
    %211 = vector.shape_cast %207 : vector<8x8xf32> to vector<1x8x8xf32>
    %212 = vector.shape_cast %208 : vector<8x8xf32> to vector<1x8x8xf32>
    %213 = vector.shape_cast %209 : vector<8x8xf32> to vector<1x8x8xf32>
    %214 = vector.shape_cast %210 : vector<8x8xf32> to vector<1x8x8xf32>
    %215 = tpu.concatenate %211, %212, %213, %214 in 0 : vector<1x8x8xf32>, vector<1x8x8xf32>, vector<1x8x8xf32>, vector<1x8x8xf32> -> vector<4x8x8xf32>
    %c0_53 = arith.constant 0 : index
    %c0_54 = arith.constant 0 : index
    %c0_55 = arith.constant 0 : index
    %216 = vector.load %arg5[%c0_53, %c0_54, %c0_55] : memref<2x1x8xf32, #tpu.memory_space<vmem>>, vector<1x1x8xf32>
    %217 = vector.shape_cast %216 : vector<1x1x8xf32> to vector<1x8xf32>
    %cst_56 = arith.constant 0.000000e+00 : f32
    %218 = vector.broadcast %cst_56 : f32 to vector<1x8xf32>
    %219 = arith.cmpf one, %217, %218 : vector<1x8xf32>
    %220 = arith.truncf %196 : vector<4x8x8xf32> to vector<4x8x8xbf16>
    %221 = arith.truncf %206 : vector<4x8x8xf32> to vector<4x8x8xbf16>
    "tpu.trace_start"() <{level = 10 : i32, message = "hqd,hkd->hqk"}> : () -> ()
    %cst_57 = arith.constant dense<0.000000e+00> : vector<4x8x8xf32>
    %222 = tpu.matmul %220, %221, %cst_57 {dimension_numbers = #tpu.dot_dimension_numbers<[2], [2], [1], [1], [0, 0, 0, 1, 1, 1], [0], [0]>} : vector<4x8x8xbf16>, vector<4x8x8xbf16>, vector<4x8x8xf32> -> vector<4x8x8xf32>
    %cst_58 = arith.constant -1.000000e+30 : f32
    "tpu.trace_stop"() : () -> ()
    %223 = vector.shape_cast %219 : vector<1x8xi1> to vector<1x1x8xi1>
    %224 = vector.broadcast %223 : vector<1x1x8xi1> to vector<4x8x8xi1>
    %225 = vector.broadcast %cst_58 : f32 to vector<4x8x8xf32>
    %226 = arith.select %224, %222, %225 : vector<4x8x8xi1>, vector<4x8x8xf32>
    %cst_59 = arith.constant dense<0xFF800000> : vector<4x8xf32>
    %227 = vector.multi_reduction <maximumf>, %226, %cst_59 [2] : vector<4x8x8xf32> to vector<4x8xf32>
    %228 = vector.shape_cast %227 : vector<4x8xf32> to vector<4x8x1xf32>
    %229 = vector.broadcast %228 : vector<4x8x1xf32> to vector<4x8x8xf32>
    %230 = arith.subf %226, %229 : vector<4x8x8xf32>
    %231 = math.exp %230 : vector<4x8x8xf32>
    %cst_60 = arith.constant dense<0.000000e+00> : vector<4x8xf32>
    %232 = vector.multi_reduction <add>, %231, %cst_60 [2] : vector<4x8x8xf32> to vector<4x8xf32>
    %233 = vector.shape_cast %232 : vector<4x8xf32> to vector<4x8x1xf32>
    %234 = tpu.reciprocal %233 {approx = true} : vector<4x8x1xf32> -> vector<4x8x1xf32>
    %235 = arith.truncf %231 : vector<4x8x8xf32> to vector<4x8x8xbf16>
    %236 = arith.truncf %215 : vector<4x8x8xf32> to vector<4x8x8xbf16>
    "tpu.trace_start"() <{level = 10 : i32, message = "hqk,hkd->hqd"}> : () -> ()
    %cst_61 = arith.constant dense<0.000000e+00> : vector<4x8x8xf32>
    %237 = tpu.matmul %235, %236, %cst_61 {dimension_numbers = #tpu.dot_dimension_numbers<[2], [1], [1], [2], [0, 0, 0, 1, 1, 2], [0], [0]>} : vector<4x8x8xbf16>, vector<4x8x8xbf16>, vector<4x8x8xf32> -> vector<4x8x8xf32>
    "tpu.trace_stop"() : () -> ()
    %238 = vector.broadcast %234 : vector<4x8x1xf32> to vector<4x8x8xf32>
    %239 = arith.mulf %237, %238 : vector<4x8x8xf32>
    %240 = vector.extract_strided_slice %239 {offsets = [0, 0, 0], sizes = [1, 8, 8], strides = [1, 1, 1]} : vector<4x8x8xf32> to vector<1x8x8xf32>
    %241 = vector.shape_cast %240 : vector<1x8x8xf32> to vector<8x8xf32>
    %242 = vector.extract_strided_slice %239 {offsets = [1, 0, 0], sizes = [1, 8, 8], strides = [1, 1, 1]} : vector<4x8x8xf32> to vector<1x8x8xf32>
    %243 = vector.shape_cast %242 : vector<1x8x8xf32> to vector<8x8xf32>
    %244 = vector.extract_strided_slice %239 {offsets = [2, 0, 0], sizes = [1, 8, 8], strides = [1, 1, 1]} : vector<4x8x8xf32> to vector<1x8x8xf32>
    %245 = vector.shape_cast %244 : vector<1x8x8xf32> to vector<8x8xf32>
    %246 = vector.extract_strided_slice %239 {offsets = [3, 0, 0], sizes = [1, 8, 8], strides = [1, 1, 1]} : vector<4x8x8xf32> to vector<1x8x8xf32>
    %247 = vector.shape_cast %246 : vector<1x8x8xf32> to vector<8x8xf32>
    %248 = tpu.concatenate %241, %243, %245, %247 in 1 : vector<8x8xf32>, vector<8x8xf32>, vector<8x8xf32>, vector<8x8xf32> -> vector<8x32xf32>
    %249 = vector.extract_strided_slice %180 {offsets = [8, 0], sizes = [8, 32], strides = [1, 1]} : vector<16x32xf32> to vector<8x32xf32>
    %250 = vector.extract_strided_slice %249 {offsets = [0, 0], sizes = [8, 8], strides = [1, 1]} : vector<8x32xf32> to vector<8x8xf32>
    %251 = vector.extract_strided_slice %249 {offsets = [0, 8], sizes = [8, 8], strides = [1, 1]} : vector<8x32xf32> to vector<8x8xf32>
    %252 = vector.extract_strided_slice %249 {offsets = [0, 16], sizes = [8, 8], strides = [1, 1]} : vector<8x32xf32> to vector<8x8xf32>
    %253 = vector.extract_strided_slice %249 {offsets = [0, 24], sizes = [8, 8], strides = [1, 1]} : vector<8x32xf32> to vector<8x8xf32>
    %254 = vector.shape_cast %250 : vector<8x8xf32> to vector<1x8x8xf32>
    %255 = vector.shape_cast %251 : vector<8x8xf32> to vector<1x8x8xf32>
    %256 = vector.shape_cast %252 : vector<8x8xf32> to vector<1x8x8xf32>
    %257 = vector.shape_cast %253 : vector<8x8xf32> to vector<1x8x8xf32>
    %258 = tpu.concatenate %254, %255, %256, %257 in 0 : vector<1x8x8xf32>, vector<1x8x8xf32>, vector<1x8x8xf32>, vector<1x8x8xf32> -> vector<4x8x8xf32>
    %259 = vector.extract_strided_slice %186 {offsets = [8, 0], sizes = [8, 64], strides = [1, 1]} : vector<16x64xf32> to vector<8x64xf32>
    %260 = vector.extract_strided_slice %259 {offsets = [0, 0], sizes = [8, 8], strides = [1, 1]} : vector<8x64xf32> to vector<8x8xf32>
    %261 = vector.extract_strided_slice %259 {offsets = [0, 8], sizes = [8, 8], strides = [1, 1]} : vector<8x64xf32> to vector<8x8xf32>
    %262 = vector.extract_strided_slice %259 {offsets = [0, 16], sizes = [8, 8], strides = [1, 1]} : vector<8x64xf32> to vector<8x8xf32>
    %263 = vector.extract_strided_slice %259 {offsets = [0, 24], sizes = [8, 8], strides = [1, 1]} : vector<8x64xf32> to vector<8x8xf32>
    %264 = vector.shape_cast %260 : vector<8x8xf32> to vector<1x8x8xf32>
    %265 = vector.shape_cast %261 : vector<8x8xf32> to vector<1x8x8xf32>
    %266 = vector.shape_cast %262 : vector<8x8xf32> to vector<1x8x8xf32>
    %267 = vector.shape_cast %263 : vector<8x8xf32> to vector<1x8x8xf32>
    %268 = tpu.concatenate %264, %265, %266, %267 in 0 : vector<1x8x8xf32>, vector<1x8x8xf32>, vector<1x8x8xf32>, vector<1x8x8xf32> -> vector<4x8x8xf32>
    %269 = vector.extract_strided_slice %259 {offsets = [0, 32], sizes = [8, 8], strides = [1, 1]} : vector<8x64xf32> to vector<8x8xf32>
    %270 = vector.extract_strided_slice %259 {offsets = [0, 40], sizes = [8, 8], strides = [1, 1]} : vector<8x64xf32> to vector<8x8xf32>
    %271 = vector.extract_strided_slice %259 {offsets = [0, 48], sizes = [8, 8], strides = [1, 1]} : vector<8x64xf32> to vector<8x8xf32>
    %272 = vector.extract_strided_slice %259 {offsets = [0, 56], sizes = [8, 8], strides = [1, 1]} : vector<8x64xf32> to vector<8x8xf32>
    %273 = vector.shape_cast %269 : vector<8x8xf32> to vector<1x8x8xf32>
    %274 = vector.shape_cast %270 : vector<8x8xf32> to vector<1x8x8xf32>
    %275 = vector.shape_cast %271 : vector<8x8xf32> to vector<1x8x8xf32>
    %276 = vector.shape_cast %272 : vector<8x8xf32> to vector<1x8x8xf32>
    %277 = tpu.concatenate %273, %274, %275, %276 in 0 : vector<1x8x8xf32>, vector<1x8x8xf32>, vector<1x8x8xf32>, vector<1x8x8xf32> -> vector<4x8x8xf32>
    %c1_62 = arith.constant 1 : index
    %c0_63 = arith.constant 0 : index
    %c0_64 = arith.constant 0 : index
    %278 = vector.load %arg5[%c1_62, %c0_63, %c0_64] : memref<2x1x8xf32, #tpu.memory_space<vmem>>, vector<1x1x8xf32>
    %279 = vector.shape_cast %278 : vector<1x1x8xf32> to vector<1x8xf32>
    %cst_65 = arith.constant 0.000000e+00 : f32
    %280 = vector.broadcast %cst_65 : f32 to vector<1x8xf32>
    %281 = arith.cmpf one, %279, %280 : vector<1x8xf32>
    %282 = arith.truncf %258 : vector<4x8x8xf32> to vector<4x8x8xbf16>
    %283 = arith.truncf %268 : vector<4x8x8xf32> to vector<4x8x8xbf16>
    "tpu.trace_start"() <{level = 10 : i32, message = "hqd,hkd->hqk"}> : () -> ()
    %cst_66 = arith.constant dense<0.000000e+00> : vector<4x8x8xf32>
    %284 = tpu.matmul %282, %283, %cst_66 {dimension_numbers = #tpu.dot_dimension_numbers<[2], [2], [1], [1], [0, 0, 0, 1, 1, 1], [0], [0]>} : vector<4x8x8xbf16>, vector<4x8x8xbf16>, vector<4x8x8xf32> -> vector<4x8x8xf32>
    %cst_67 = arith.constant -1.000000e+30 : f32
    "tpu.trace_stop"() : () -> ()
    %285 = vector.shape_cast %281 : vector<1x8xi1> to vector<1x1x8xi1>
    %286 = vector.broadcast %285 : vector<1x1x8xi1> to vector<4x8x8xi1>
    %287 = vector.broadcast %cst_67 : f32 to vector<4x8x8xf32>
    %288 = arith.select %286, %284, %287 : vector<4x8x8xi1>, vector<4x8x8xf32>
    %cst_68 = arith.constant dense<0xFF800000> : vector<4x8xf32>
    %289 = vector.multi_reduction <maximumf>, %288, %cst_68 [2] : vector<4x8x8xf32> to vector<4x8xf32>
    %290 = vector.shape_cast %289 : vector<4x8xf32> to vector<4x8x1xf32>
    %291 = vector.broadcast %290 : vector<4x8x1xf32> to vector<4x8x8xf32>
    %292 = arith.subf %288, %291 : vector<4x8x8xf32>
    %293 = math.exp %292 : vector<4x8x8xf32>
    %cst_69 = arith.constant dense<0.000000e+00> : vector<4x8xf32>
    %294 = vector.multi_reduction <add>, %293, %cst_69 [2] : vector<4x8x8xf32> to vector<4x8xf32>
    %295 = vector.shape_cast %294 : vector<4x8xf32> to vector<4x8x1xf32>
    %296 = tpu.reciprocal %295 {approx = true} : vector<4x8x1xf32> -> vector<4x8x1xf32>
    %297 = arith.truncf %293 : vector<4x8x8xf32> to vector<4x8x8xbf16>
    %298 = arith.truncf %277 : vector<4x8x8xf32> to vector<4x8x8xbf16>
    "tpu.trace_start"() <{level = 10 : i32, message = "hqk,hkd->hqd"}> : () -> ()
    %cst_70 = arith.constant dense<0.000000e+00> : vector<4x8x8xf32>
    %299 = tpu.matmul %297, %298, %cst_70 {dimension_numbers = #tpu.dot_dimension_numbers<[2], [1], [1], [2], [0, 0, 0, 1, 1, 2], [0], [0]>} : vector<4x8x8xbf16>, vector<4x8x8xbf16>, vector<4x8x8xf32> -> vector<4x8x8xf32>
    "tpu.trace_stop"() : () -> ()
    %300 = vector.broadcast %296 : vector<4x8x1xf32> to vector<4x8x8xf32>
    %301 = arith.mulf %299, %300 : vector<4x8x8xf32>
    %302 = vector.extract_strided_slice %301 {offsets = [0, 0, 0], sizes = [1, 8, 8], strides = [1, 1, 1]} : vector<4x8x8xf32> to vector<1x8x8xf32>
    %303 = vector.shape_cast %302 : vector<1x8x8xf32> to vector<8x8xf32>
    %304 = vector.extract_strided_slice %301 {offsets = [1, 0, 0], sizes = [1, 8, 8], strides = [1, 1, 1]} : vector<4x8x8xf32> to vector<1x8x8xf32>
    %305 = vector.shape_cast %304 : vector<1x8x8xf32> to vector<8x8xf32>
    %306 = vector.extract_strided_slice %301 {offsets = [2, 0, 0], sizes = [1, 8, 8], strides = [1, 1, 1]} : vector<4x8x8xf32> to vector<1x8x8xf32>
    %307 = vector.shape_cast %306 : vector<1x8x8xf32> to vector<8x8xf32>
    %308 = vector.extract_strided_slice %301 {offsets = [3, 0, 0], sizes = [1, 8, 8], strides = [1, 1, 1]} : vector<4x8x8xf32> to vector<1x8x8xf32>
    %309 = vector.shape_cast %308 : vector<1x8x8xf32> to vector<8x8xf32>
    %310 = tpu.concatenate %303, %305, %307, %309 in 1 : vector<8x8xf32>, vector<8x8xf32>, vector<8x8xf32>, vector<8x8xf32> -> vector<8x32xf32>
    %311 = tpu.concatenate %248, %310 in 0 : vector<8x32xf32>, vector<8x32xf32> -> vector<16x32xf32>
    %312 = arith.truncf %311 : vector<16x32xf32> to vector<16x32xbf16>
    %c0_71 = arith.constant 0 : index
    %c0_72 = arith.constant 0 : index
    %313 = vector.load %arg16[%c0_71, %c0_72] : memref<32x32xbf16, #tpu.memory_space<vmem>>, vector<32x32xbf16>
    %cst_73 = arith.constant dense<0.000000e+00> : vector<16x32xf32>
    %314 = tpu.matmul %312, %313, %cst_73 {dimension_numbers = #tpu.dot_dimension_numbers<[1], [0], [0], [1], [0, 0, 1, 1], [], []>} : vector<16x32xbf16>, vector<32x32xbf16>, vector<16x32xf32> -> vector<16x32xf32>
    %c0_74 = arith.constant 0 : index
    %c0_75 = arith.constant 0 : index
    %315 = vector.load %arg17[%c0_74, %c0_75] : memref<1x32xf32, #tpu.memory_space<vmem>>, vector<1x32xf32>
    %316 = vector.broadcast %315 : vector<1x32xf32> to vector<16x32xf32>
    %317 = arith.addf %314, %316 : vector<16x32xf32>
    %318 = vector.broadcast %5 : vector<16x1xf32> to vector<16x32xf32>
    %319 = arith.mulf %317, %318 : vector<16x32xf32>
    %320 = arith.addf %319, %174 : vector<16x32xf32>
    %cst_76 = arith.constant dense<0.000000e+00> : vector<16xf32>
    %321 = vector.multi_reduction <add>, %320, %cst_76 [1] : vector<16x32xf32> to vector<16xf32>
    %322 = vector.shape_cast %321 : vector<16xf32> to vector<16x1xf32>
    %cst_77 = arith.constant 3.200000e+01 : f32
    %323 = vector.broadcast %cst_77 : f32 to vector<16x1xf32>
    %324 = arith.divf %322, %323 : vector<16x1xf32>
    %325 = vector.broadcast %324 : vector<16x1xf32> to vector<16x32xf32>
    %326 = arith.subf %320, %325 : vector<16x32xf32>
    %327 = arith.mulf %326, %326 : vector<16x32xf32>
    %cst_78 = arith.constant dense<0.000000e+00> : vector<16xf32>
    %328 = vector.multi_reduction <add>, %327, %cst_78 [1] : vector<16x32xf32> to vector<16xf32>
    %329 = vector.shape_cast %328 : vector<16xf32> to vector<16x1xf32>
    %cst_79 = arith.constant 3.200000e+01 : f32
    %330 = vector.broadcast %cst_79 : f32 to vector<16x1xf32>
    %331 = arith.divf %329, %330 : vector<16x1xf32>
    %332 = vector.broadcast %324 : vector<16x1xf32> to vector<16x32xf32>
    %333 = arith.subf %320, %332 : vector<16x32xf32>
    %cst_80 = arith.constant 9.99999974E-6 : f32
    %334 = vector.broadcast %cst_80 : f32 to vector<16x1xf32>
    %335 = arith.addf %331, %334 : vector<16x1xf32>
    %336 = math.rsqrt %335 : vector<16x1xf32>
    %337 = vector.broadcast %336 : vector<16x1xf32> to vector<16x32xf32>
    %338 = arith.mulf %333, %337 : vector<16x32xf32>
    %c0_81 = arith.constant 0 : index
    %c0_82 = arith.constant 0 : index
    %339 = vector.load %arg18[%c0_81, %c0_82] : memref<1x32xf32, #tpu.memory_space<vmem>>, vector<1x32xf32>
    %340 = vector.broadcast %339 : vector<1x32xf32> to vector<16x32xf32>
    %341 = arith.mulf %338, %340 : vector<16x32xf32>
    %c0_83 = arith.constant 0 : index
    %c0_84 = arith.constant 0 : index
    %342 = vector.load %arg19[%c0_83, %c0_84] : memref<1x32xf32, #tpu.memory_space<vmem>>, vector<1x32xf32>
    %343 = vector.broadcast %342 : vector<1x32xf32> to vector<16x32xf32>
    %344 = arith.addf %341, %343 : vector<16x32xf32>
    %345 = arith.truncf %344 : vector<16x32xf32> to vector<16x32xbf16>
    %c0_85 = arith.constant 0 : index
    %c0_86 = arith.constant 0 : index
    %346 = vector.load %arg20[%c0_85, %c0_86] : memref<32x64xbf16, #tpu.memory_space<vmem>>, vector<32x64xbf16>
    %cst_87 = arith.constant dense<0.000000e+00> : vector<16x64xf32>
    %347 = tpu.matmul %345, %346, %cst_87 {dimension_numbers = #tpu.dot_dimension_numbers<[1], [0], [0], [1], [0, 0, 1, 1], [], []>} : vector<16x32xbf16>, vector<32x64xbf16>, vector<16x64xf32> -> vector<16x64xf32>
    %c0_88 = arith.constant 0 : index
    %c0_89 = arith.constant 0 : index
    %348 = vector.load %arg21[%c0_88, %c0_89] : memref<1x64xf32, #tpu.memory_space<vmem>>, vector<1x64xf32>
    %349 = vector.broadcast %348 : vector<1x64xf32> to vector<16x64xf32>
    %350 = arith.addf %347, %349 : vector<16x64xf32>
    %cst_90 = arith.constant 0.000000e+00 : f32
    %351 = vector.broadcast %cst_90 : f32 to vector<16x64xf32>
    %352 = arith.cmpf ogt, %350, %351 : vector<16x64xf32>
    %cst_91 = arith.constant 0.00999999977 : f32
    %353 = vector.broadcast %cst_91 : f32 to vector<16x64xf32>
    %354 = arith.mulf %353, %350 : vector<16x64xf32>
    %355 = arith.select %352, %350, %354 : vector<16x64xi1>, vector<16x64xf32>
    %356 = arith.truncf %355 : vector<16x64xf32> to vector<16x64xbf16>
    %c0_92 = arith.constant 0 : index
    %c0_93 = arith.constant 0 : index
    %357 = vector.load %arg22[%c0_92, %c0_93] : memref<64x32xbf16, #tpu.memory_space<vmem>>, vector<64x32xbf16>
    %cst_94 = arith.constant dense<0.000000e+00> : vector<16x32xf32>
    %358 = tpu.matmul %356, %357, %cst_94 {dimension_numbers = #tpu.dot_dimension_numbers<[1], [0], [0], [1], [0, 0, 1, 1], [], []>} : vector<16x64xbf16>, vector<64x32xbf16>, vector<16x32xf32> -> vector<16x32xf32>
    %c0_95 = arith.constant 0 : index
    %c0_96 = arith.constant 0 : index
    %359 = vector.load %arg23[%c0_95, %c0_96] : memref<1x32xf32, #tpu.memory_space<vmem>>, vector<1x32xf32>
    %360 = vector.broadcast %359 : vector<1x32xf32> to vector<16x32xf32>
    %361 = arith.addf %358, %360 : vector<16x32xf32>
    %362 = vector.broadcast %5 : vector<16x1xf32> to vector<16x32xf32>
    %363 = arith.mulf %361, %362 : vector<16x32xf32>
    %364 = arith.addf %363, %344 : vector<16x32xf32>
    %cst_97 = arith.constant dense<0.000000e+00> : vector<16xf32>
    %365 = vector.multi_reduction <add>, %364, %cst_97 [1] : vector<16x32xf32> to vector<16xf32>
    %366 = vector.shape_cast %365 : vector<16xf32> to vector<16x1xf32>
    %cst_98 = arith.constant 3.200000e+01 : f32
    %367 = vector.broadcast %cst_98 : f32 to vector<16x1xf32>
    %368 = arith.divf %366, %367 : vector<16x1xf32>
    %369 = vector.broadcast %368 : vector<16x1xf32> to vector<16x32xf32>
    %370 = arith.subf %364, %369 : vector<16x32xf32>
    %371 = arith.mulf %370, %370 : vector<16x32xf32>
    %cst_99 = arith.constant dense<0.000000e+00> : vector<16xf32>
    %372 = vector.multi_reduction <add>, %371, %cst_99 [1] : vector<16x32xf32> to vector<16xf32>
    %373 = vector.shape_cast %372 : vector<16xf32> to vector<16x1xf32>
    %cst_100 = arith.constant 3.200000e+01 : f32
    %374 = vector.broadcast %cst_100 : f32 to vector<16x1xf32>
    %375 = arith.divf %373, %374 : vector<16x1xf32>
    %376 = vector.broadcast %368 : vector<16x1xf32> to vector<16x32xf32>
    %377 = arith.subf %364, %376 : vector<16x32xf32>
    %cst_101 = arith.constant 9.99999974E-6 : f32
    %378 = vector.broadcast %cst_101 : f32 to vector<16x1xf32>
    %379 = arith.addf %375, %378 : vector<16x1xf32>
    %380 = math.rsqrt %379 : vector<16x1xf32>
    %381 = vector.broadcast %380 : vector<16x1xf32> to vector<16x32xf32>
    %382 = arith.mulf %377, %381 : vector<16x32xf32>
    %c0_102 = arith.constant 0 : index
    %c0_103 = arith.constant 0 : index
    %383 = vector.load %arg24[%c0_102, %c0_103] : memref<1x32xf32, #tpu.memory_space<vmem>>, vector<1x32xf32>
    %384 = vector.broadcast %383 : vector<1x32xf32> to vector<16x32xf32>
    %385 = arith.mulf %382, %384 : vector<16x32xf32>
    %c0_104 = arith.constant 0 : index
    %c0_105 = arith.constant 0 : index
    %386 = vector.load %arg25[%c0_104, %c0_105] : memref<1x32xf32, #tpu.memory_space<vmem>>, vector<1x32xf32>
    %387 = vector.broadcast %386 : vector<1x32xf32> to vector<16x32xf32>
    %388 = arith.addf %385, %387 : vector<16x32xf32>
    %389 = vector.shape_cast %388 : vector<16x32xf32> to vector<2x8x32xf32>
    %c0_106 = arith.constant 0 : index
    %c0_107 = arith.constant 0 : index
    %c0_108 = arith.constant 0 : index
    %390 = vector.load %arg26[%c0_106, %c0_107, %c0_108] : memref<2x8x32xf32, #tpu.memory_space<vmem>>, vector<2x8x32xf32>
    tpu.vector_store %arg26[%c0_106, %c0_107, %c0_108], %389 {strides = array<i32>} : memref<2x8x32xf32, #tpu.memory_space<vmem>>, vector<2x8x32xf32>,
    return
  }
  func.func @transform_0(%arg0: i32) -> (i32, i32, i32) {
    %c0_i32 = arith.constant 0 : i32
    %c0_i32_0 = arith.constant 0 : i32
    %c0_i32_1 = arith.constant 0 : i32
    return %arg0, %c0_i32, %c0_i32_0 : i32, i32, i32
  }
  func.func @transform_1(%arg0: i32) -> (i32, i32, i32) {
    %c0_i32 = arith.constant 0 : i32
    %c0_i32_0 = arith.constant 0 : i32
    %c0_i32_1 = arith.constant 0 : i32
    return %arg0, %c0_i32, %c0_i32_0 : i32, i32, i32
  }
  func.func @transform_2(%arg0: i32) -> (i32, i32, i32) {
    %c0_i32 = arith.constant 0 : i32
    %c0_i32_0 = arith.constant 0 : i32
    %c0_i32_1 = arith.constant 0 : i32
    return %arg0, %c0_i32, %c0_i32_0 : i32, i32, i32
  }
  func.func @transform_3(%arg0: i32) -> (i32, i32, i32) {
    %c0_i32 = arith.constant 0 : i32
    %c0_i32_0 = arith.constant 0 : i32
    %c0_i32_1 = arith.constant 0 : i32
    return %arg0, %c0_i32, %c0_i32_0 : i32, i32, i32
  }
  func.func @transform_4(%arg0: i32) -> (i32, i32, i32) {
    %c0_i32 = arith.constant 0 : i32
    %c0_i32_0 = arith.constant 0 : i32
    %c0_i32_1 = arith.constant 0 : i32
    return %arg0, %c0_i32, %c0_i32_0 : i32, i32, i32
  }
  func.func @transform_5(%arg0: i32) -> (i32, i32) {
    %c0_i32 = arith.constant 0 : i32
    %c0_i32_0 = arith.constant 0 : i32
    %c0_i32_1 = arith.constant 0 : i32
    return %c0_i32, %c0_i32_0 : i32, i32
  }
  func.func @transform_6(%arg0: i32) -> (i32, i32) {
    %c0_i32 = arith.constant 0 : i32
    %c0_i32_0 = arith.constant 0 : i32
    %c0_i32_1 = arith.constant 0 : i32
    return %c0_i32, %c0_i32_0 : i32, i32
  }
  func.func @transform_7(%arg0: i32) -> (i32, i32) {
    %c0_i32 = arith.constant 0 : i32
    %c0_i32_0 = arith.constant 0 : i32
    %c0_i32_1 = arith.constant 0 : i32
    return %c0_i32, %c0_i32_0 : i32, i32
  }
  func.func @transform_8(%arg0: i32) -> (i32, i32) {
    %c0_i32 = arith.constant 0 : i32
    %c0_i32_0 = arith.constant 0 : i32
    %c0_i32_1 = arith.constant 0 : i32
    return %c0_i32, %c0_i32_0 : i32, i32
  }
  func.func @transform_9(%arg0: i32) -> (i32, i32) {
    %c0_i32 = arith.constant 0 : i32
    %c0_i32_0 = arith.constant 0 : i32
    %c0_i32_1 = arith.constant 0 : i32
    return %c0_i32, %c0_i32_0 : i32, i32
  }
  func.func @transform_10(%arg0: i32) -> (i32, i32) {
    %c0_i32 = arith.constant 0 : i32
    %c0_i32_0 = arith.constant 0 : i32
    %c0_i32_1 = arith.constant 0 : i32
    return %c0_i32, %c0_i32_0 : i32, i32
  }
  func.func @transform_11(%arg0: i32) -> (i32, i32) {
    %c0_i32 = arith.constant 0 : i32
    %c0_i32_0 = arith.constant 0 : i32
    %c0_i32_1 = arith.constant 0 : i32
    return %c0_i32, %c0_i32_0 : i32, i32
  }
  func.func @transform_12(%arg0: i32) -> (i32, i32) {
    %c0_i32 = arith.constant 0 : i32
    %c0_i32_0 = arith.constant 0 : i32
    %c0_i32_1 = arith.constant 0 : i32
    return %c0_i32, %c0_i32_0 : i32, i32
  }
  func.func @transform_13(%arg0: i32) -> (i32, i32) {
    %c0_i32 = arith.constant 0 : i32
    %c0_i32_0 = arith.constant 0 : i32
    %c0_i32_1 = arith.constant 0 : i32
    return %c0_i32, %c0_i32_0 : i32, i32
  }
  func.func @transform_14(%arg0: i32) -> (i32, i32) {
    %c0_i32 = arith.constant 0 : i32
    %c0_i32_0 = arith.constant 0 : i32
    %c0_i32_1 = arith.constant 0 : i32
    return %c0_i32, %c0_i32_0 : i32, i32
  }
  func.func @transform_15(%arg0: i32) -> (i32, i32) {
    %c0_i32 = arith.constant 0 : i32
    %c0_i32_0 = arith.constant 0 : i32
    %c0_i32_1 = arith.constant 0 : i32
    return %c0_i32, %c0_i32_0 : i32, i32
  }
  func.func @transform_16(%arg0: i32) -> (i32, i32) {
    %c0_i32 = arith.constant 0 : i32
    %c0_i32_0 = arith.constant 0 : i32
    %c0_i32_1 = arith.constant 0 : i32
    return %c0_i32, %c0_i32_0 : i32, i32
  }
  func.func @transform_17(%arg0: i32) -> (i32, i32) {
    %c0_i32 = arith.constant 0 : i32
    %c0_i32_0 = arith.constant 0 : i32
    %c0_i32_1 = arith.constant 0 : i32
    return %c0_i32, %c0_i32_0 : i32, i32
  }
  func.func @transform_18(%arg0: i32) -> (i32, i32) {
    %c0_i32 = arith.constant 0 : i32
    %c0_i32_0 = arith.constant 0 : i32
    %c0_i32_1 = arith.constant 0 : i32
    return %c0_i32, %c0_i32_0 : i32, i32
  }
  func.func @transform_19(%arg0: i32) -> (i32, i32) {
    %c0_i32 = arith.constant 0 : i32
    %c0_i32_0 = arith.constant 0 : i32
    %c0_i32_1 = arith.constant 0 : i32
    return %c0_i32, %c0_i32_0 : i32, i32
  }
  func.func @transform_20(%arg0: i32) -> (i32, i32) {
    %c0_i32 = arith.constant 0 : i32
    %c0_i32_0 = arith.constant 0 : i32
    %c0_i32_1 = arith.constant 0 : i32
    return %c0_i32, %c0_i32_0 : i32, i32
  }
  func.func @transform_21(%arg0: i32) -> (i32, i32) {
    %c0_i32 = arith.constant 0 : i32
    %c0_i32_0 = arith.constant 0 : i32
    %c0_i32_1 = arith.constant 0 : i32
    return %c0_i32, %c0_i32_0 : i32, i32
  }
  func.func @transform_22(%arg0: i32) -> (i32, i32) {
    %c0_i32 = arith.constant 0 : i32
    %c0_i32_0 = arith.constant 0 : i32
    %c0_i32_1 = arith.constant 0 : i32
    return %c0_i32, %c0_i32_0 : i32, i32
  }
  func.func @transform_23(%arg0: i32) -> (i32, i32) {
    %c0_i32 = arith.constant 0 : i32
    %c0_i32_0 = arith.constant 0 : i32
    %c0_i32_1 = arith.constant 0 : i32
    return %c0_i32, %c0_i32_0 : i32, i32
  }
  func.func @transform_24(%arg0: i32) -> (i32, i32) {
    %c0_i32 = arith.constant 0 : i32
    %c0_i32_0 = arith.constant 0 : i32
    %c0_i32_1 = arith.constant 0 : i32
    return %c0_i32, %c0_i32_0 : i32, i32
  }
  func.func @transform_25(%arg0: i32) -> (i32, i32, i32) {
    %c0_i32 = arith.constant 0 : i32
    %c0_i32_0 = arith.constant 0 : i32
    %c0_i32_1 = arith.constant 0 : i32
    return %arg0, %c0_i32, %c0_i32_0 : i32, i32, i32
  }
}

</mosaic_0001>

<bundles_post_ra>
// kernel: tpu_custom_call.1
= control target key start
LH: loop header
LB: loop body
LE: loop exit
PB: predicated region body
PF: predicated region fallthrough
CT: control target
= control target key end

     0   :  { %s4682_s0 = inlined_call_operand.vmem [shape: f32[4,8,32], index: 0, kind: input, shape index: {}]   ;;  %s4683_s1 = inlined_call_operand.vmem [shape: f32[4,8,32], index: 1, kind: input, shape index: {}]   ;;  %s4684_s2 = inlined_call_operand.vmem [shape: f32[4,8,1], index: 2, kind: input, shape index: {}]   ;;  %s4685_s3 = inlined_call_operand.hbm [shape: f32[4,1,8], index: 3, kind: input, shape index: {}]   ;;  %s4686_s4 = inlined_call_operand.hbm [shape: f32[4,1,8], index: 4, kind: input, shape index: {}]   ;;  %s4687_s5 = inlined_call_operand.hbm [shape: bf16[32,96], index: 5, kind: input, shape index: {}]   ;;  %s4688_s6 = inlined_call_operand.vmem [shape: f32[1,96], index: 6, kind: input, shape index: {}]   ;;  %s4689_s7 = inlined_call_operand.hbm [shape: bf16[32,32], index: 7, kind: input, shape index: {}]   ;;  %s4690_s8 = inlined_call_operand.hbm [shape: f32[1,32], index: 8, kind: input, shape index: {}]   ;;  %s4691_s9 = inlined_call_operand.hbm [shape: f32[1,32], index: 9, kind: input, shape index: {}]   ;;  %s4692_s10 = inlined_call_operand.hbm [shape: f32[1,32], index: 10, kind: input, shape index: {}]   ;;  %s4693_s11 = inlined_call_operand.hbm [shape: bf16[32,32], index: 11, kind: input, shape index: {}]   ;;  %s4694_s12 = inlined_call_operand.hbm [shape: f32[1,32], index: 12, kind: input, shape index: {}]   ;;  %s4695_s13 = inlined_call_operand.hbm [shape: bf16[32,64], index: 13, kind: input, shape index: {}]   ;;  %s4696_s14 = inlined_call_operand.hbm [shape: f32[1,64], index: 14, kind: input, shape index: {}]   ;;  %s4697_s15 = inlined_call_operand.vmem [shape: bf16[32,32], index: 15, kind: input, shape index: {}]   ;;  %s4698_s16 = inlined_call_operand.vmem [shape: f32[1,32], index: 16, kind: input, shape index: {}]   ;;  %s4699_s17 = inlined_call_operand.vmem [shape: f32[1,32], index: 17, kind: input, shape index: {}]   ;;  %s4700_s18 = inlined_call_operand.vmem [shape: f32[1,32], index: 18, kind: input, shape index: {}]   ;;  %s4701_s19 = inlined_call_operand.hbm [shape: bf16[32,64], index: 19, kind: input, shape index: {}]   ;;  %s4702_s20 = inlined_call_operand.vmem [shape: f32[1,64], index: 20, kind: input, shape index: {}]   ;;  %s4703_s21 = inlined_call_operand.vmem [shape: bf16[64,32], index: 21, kind: input, shape index: {}]   ;;  %s4704_s22 = inlined_call_operand.vmem [shape: f32[1,32], index: 22, kind: input, shape index: {}]   ;;  %s4705_s23 = inlined_call_operand.vmem [shape: f32[1,32], index: 23, kind: input, shape index: {}]   ;;  %s4706_s24 = inlined_call_operand.vmem [shape: f32[1,32], index: 24, kind: input, shape index: {}]   ;;  %s4707_s25 = inlined_call_operand.hbm [shape: f32[4,8,32], index: 25, kind: output, shape index: {}]  }
   0x1   :  { %4715 = sst [smem:[#allocation34_spill]] %s4682_s0 }
   0x2   :  { %4716 = sst [smem:[#allocation35_spill]] %s4683_s1 }
   0x3   :  { %4717 = sst [smem:[#allocation36_spill]] %s4684_s2 }
   0x4   :  { %4718 = sst [smem:[#allocation37_spill]] %s4685_s3 }
   0x5   :  { %4719 = sst [smem:[#allocation38_spill]] %s4686_s4 }
   0x6   :  { %4720 = sst [smem:[#allocation39_spill]] %s4687_s5 }
   0x7   :  { %4721 = sst [smem:[#allocation40_spill]] %s4688_s6 }
   0x8   :  { %4722 = sst [smem:[#allocation41_spill]] %s4689_s7 }
   0x9   :  { %4723 = sst [smem:[#allocation42_spill]] %s4690_s8 }
   0xa   :  { %4724 = sst [smem:[#allocation43_spill]] %s4691_s9 }
   0xb   :  { %4725 = sst [smem:[#allocation44_spill]] %s4692_s10 }
   0xc   :  { %4726 = sst [smem:[#allocation45_spill]] %s4693_s11 }
   0xd   :  { %4727 = sst [smem:[#allocation46_spill]] %s4694_s12 }
   0xe   :  { %4728 = sst [smem:[#allocation47_spill]] %s4695_s13 }
   0xf   :  { %4729 = sst [smem:[#allocation48_spill]] %s4696_s14 }
  0x10   :  { %4730 = sst [smem:[#allocation49_spill]] %s4700_s18 }
  0x11   :  { %4731 = sst [smem:[#allocation50_spill]] %s4701_s19 }
  0x12   :  { %4732 = sst [smem:[#allocation51_spill]] %s4702_s20 }
  0x13   :  { %4733 = sst [smem:[#allocation52_spill]] %s4703_s21 }
  0x14   :  { %4734 = sst [smem:[#allocation53_spill]] %s4704_s22 }
  0x15   :  { %4735 = sst [smem:[#allocation54_spill]] %s4705_s23 }
  0x16   :  { %4736 = sst [smem:[#allocation55_spill]] %s4706_s24 }
  0x17   :  { %4737 = sst [smem:[#allocation56_spill]] %s4707_s25 }
  0x18   :  { %30 = vsyncpa [#allocation3], 0 }
  0x19   :  { %32 = vsyncpa [#allocation3 + $0x1], 0 }
  0x1a   :  { %33 = vsyncpa [#allocation6], 0 }
  0x1b   :  { %35 = vsyncpa [#allocation6 + $0x1], 0 }
  0x1c   :  { %36 = vsyncpa [#allocation9], 0 }
  0x1d   :  { %37 = vsyncpa [#allocation12], 0 }
  0x1e   :  { %38 = vsyncpa [#allocation15], 0 }
  0x1f   :  { %39 = vsyncpa [#allocation18], 0 }
  0x20   :  { %40 = vsyncpa [#allocation21], 0 }
  0x21   :  { %41 = vsyncpa [#allocation4], 0 }
  0x22   :  { %43 = vsyncpa [#allocation4 + $0x1], 0  ;;  %s3946_s29 = smov 0   ;;  %s3948_s2 = smov 0  }
  0x23   :  { %s3950_s6 = smov 0   ;;  %s3952_s30 = smov 0  }
  0x24 LB: > { %4738 = sst [smem:[#allocation32_spill]] %s3785_s6  ;;  %s3970_s8 = sadd.s32 4294967295, %s3789_s30   ;;  %s3789_s30 = sphi %s3952_s30, %s4784_s30   ;;  %s3785_s6 = sphi %s3950_s6, %s4781_s6   ;;  %s3781_s2 = sphi %s3948_s2, %s4783_s2   ;;  %s3777_s29 = sphi %s3946_s29, %s4782_s29  }
  0x25   : > { %s4739_s26 = sld [smem:[#allocation39_spill]]  ;;  %p2882_p0 = scmp.ge.s32.totalorder %s3789_s30, 1 }
  0x26   : > { %p148_p1 = scmp.eq.s32.totalorder %s3970_s8, 0  ;;  %p630_p2 = scmp.lt.s32.totalorder %s3789_s30, 3 }
  0x27   : > { %s3791_s4 = smov [#allocation7]   ;;  %s4741_s0 = sld [smem:[#allocation41_spill]] }
  0x28   : > { %p3975_p3 = pnand %p2882_p0, %p630_p2  ;;  %s643_s28 = sshll.u32 %s3791_s4, 4  ;;  %s644_s28 = int_to_ptr.vmem [resolvable:$true] %s643_s28 }
  0x29   : > { %s4743_s4 = sld [smem:[#allocation43_spill]]  ;;  %s3792_s23 = smov [#allocation8]  }
  0x2a   : > { %p3091_p4 = pneg %p3975_p3  ;;  %s660_s22 = sshll.u32 %s3792_s23, 4  ;;  %s661_s22 = int_to_ptr.vmem [resolvable:$true] %s660_s22 }
  0x2b   : > { %s641_s1 = sshll.u32 %s4739_s26, 4  ;;  %s3793_s20 = smov 64   ;;  %s642_s1 = int_to_ptr.hbm [resolvable:$true] %s641_s1 }
  0x2c   : > { %p3987_p6 = pnand %p3091_p4, %p148_p1  ;;  %s3794_s21 = smov 4  }
  0x2d   : > { %s658_s7 = sshll.u32 %s4741_s0, 4  ;;  %s4744_s11 = sld [smem:[#allocation45_spill]]  ;;  %s659_s7 = int_to_ptr.hbm [resolvable:$true] %s658_s7 }
  0x2e   : > { %3094 = dma.hbm_to_vmem [thread:$0]  (!%p3987_p6), %s642_s1, 256, %s644_s28, [#allocation6], %s3793_s20, %s3793_s20, %s3794_s21  }
  0x2f   : > { %s685_s24 = sshll.u32 %s4743_s4, 4  ;;  %s3795_s23 = smov [#allocation11]   ;;  %s686_s24 = int_to_ptr.hbm [resolvable:$true] %s685_s24 }
  0x30   : > { %3097 = dma.hbm_to_vmem [thread:$0]  (!%p3987_p6), %s659_s7, 256, %s661_s22, [#allocation9], %s3793_s20, %s3793_s20, %s3794_s21  }
  0x31   : > { %s687_s0 = sshll.u32 %s3795_s23, 4  ;;  %s3796_s26 = smov [#allocation14]   ;;  %s688_s0 = int_to_ptr.vmem [resolvable:$true] %s687_s0 }
  0x32   : > { %3103 = dma.hbm_to_vmem [thread:$0]  (!%p3987_p6), %s686_s24, 16, %s688_s0, [#allocation12]  }
  0x33   : > { %s708_s5 = sshll.u32 %s4744_s11, 4  ;;  %s710_s1 = sshll.u32 %s3796_s26, 4  ;;  %s709_s5 = int_to_ptr.hbm [resolvable:$true] %s708_s5  ;;  %s711_s1 = int_to_ptr.vmem [resolvable:$true] %s710_s1 }
  0x34   : > { %s4745_s13 = sld [smem:[#allocation47_spill]]  ;;  %s3797_s23 = smov [#allocation17]  }
  0x35   : > { %3109 = dma.hbm_to_vmem [thread:$0]  (!%p3987_p6), %s709_s5, 256, %s711_s1, [#allocation15], %s3793_s20, %s3793_s20, %s3794_s21  }
  0x36   : > { %s4746_s9 = sld [smem:[#allocation42_spill]]  ;;  %s736_s24 = sshll.u32 %s3797_s23, 4  ;;  %s737_s24 = int_to_ptr.vmem [resolvable:$true] %s736_s24 }
  0x37   : > { %s3798_s0 = smov [#allocation10]   ;;  %s4747_s10 = sld [smem:[#allocation44_spill]] }
  0x38   : > { %s675_s26 = sshll.u32 %s3798_s0, 4  ;;  %s4748_s12 = sld [smem:[#allocation46_spill]]  ;;  %s676_s26 = int_to_ptr.vmem [resolvable:$true] %s675_s26 }
  0x39   : > { %s4749_s14 = sld [smem:[#allocation48_spill]]  ;;  %s3801_s1 = smov [#allocation19]  }
  0x3a   : > { %s734_s18 = sshll.u32 %s4745_s13, 4  ;;  %s4750_s19 = sld [smem:[#allocation50_spill]]  ;;  %s735_s18 = int_to_ptr.hbm [resolvable:$true] %s734_s18 }
  0x3b   : > { %3115 = dma.hbm_to_vmem [thread:$0]  (!%p3987_p6), %s735_s18, 256, %s737_s24, [#allocation18], %s3793_s20, %s3793_s20, %s3794_s21  }
  0x3c   : > { %s673_s25 = sshll.u32 %s4746_s9, 4  ;;  %s3799_s9 = smov [#allocation13]   ;;  %s674_s25 = int_to_ptr.hbm [resolvable:$true] %s673_s25 }
  0x3d   : > { %s697_s5 = sshll.u32 %s4747_s10, 4  ;;  %s699_s23 = sshll.u32 %s3799_s9, 4  ;;  %s698_s5 = int_to_ptr.hbm [resolvable:$true] %s697_s5  ;;  %s700_s23 = int_to_ptr.vmem [resolvable:$true] %s699_s23 }
  0x3e   : > { %3100 = dma.hbm_to_vmem [thread:$0]  (!%p3987_p6), %s674_s25, 16, %s676_s26, [#allocation9]  }
  0x3f   : > { %s723_s7 = sshll.u32 %s4748_s12, 4  ;;  %s3800_s18 = smov [#allocation16]   ;;  %s724_s7 = int_to_ptr.hbm [resolvable:$true] %s723_s7 }
  0x40   : > { %3106 = dma.hbm_to_vmem [thread:$0]  (!%p3987_p6), %s698_s5, 16, %s700_s23, [#allocation12]  }
  0x41   : > { %s725_s24 = sshll.u32 %s3800_s18, 4  ;;  %s749_s25 = sshll.u32 %s4749_s14, 4  ;;  %s726_s24 = int_to_ptr.vmem [resolvable:$true] %s725_s24  ;;  %s750_s25 = int_to_ptr.hbm [resolvable:$true] %s749_s25 }
  0x42   : > { %3112 = dma.hbm_to_vmem [thread:$0]  (!%p3987_p6), %s724_s7, 16, %s726_s24, [#allocation15]  }
  0x43   : > { %s772_s5 = sshll.u32 %s4750_s19, 4  ;;  %s751_s22 = sshll.u32 %s3801_s1, 4  ;;  %s773_s5 = int_to_ptr.hbm [resolvable:$true] %s772_s5  ;;  %s752_s22 = int_to_ptr.vmem [resolvable:$true] %s751_s22 }
  0x44   : > { %3118 = dma.hbm_to_vmem [thread:$0]  (!%p3987_p6), %s750_s25, 16, %s752_s22, [#allocation18]  }
  0x45   : > { %s3802_s9 = smov [#allocation20]   ;;  %s2881_s23 = sadd.s32 4294967294, %s3789_s30  }
  0x46   : > { %s774_s7 = sshll.u32 %s3802_s9, 4  ;;  %s4052_s18 = sadd.s32 1, %s3789_s30   ;;  %s775_s7 = int_to_ptr.vmem [resolvable:$true] %s774_s7 }
  0x47   : > { %3121 = dma.hbm_to_vmem [thread:$0]  (!%p3987_p6), %s773_s5, 256, %s775_s7, [#allocation21], %s3793_s20, %s3793_s20, %s3794_s21  }
  0x48   : > { %s131_s24 = ssub.s32 %s3789_s30, %s4052_s18  ;;  %s134_s0 = sadd.s32 1, %s3785_s6 }
  0x49   : > { %p132_p7 = scmp.eq.s32.totalorder %s131_s24, 0  ;;  %p141_p8 = scmp.ne.s32.totalorder %s3785_s6, %s3781_s2 }
  0x4a   : > { %p142_p9 = scmp.eq.s32.totalorder %s3789_s30, 0  ;;  %p147_p10 = scmp.ne.s32.totalorder %s3781_s2, %s3777_s29 }
  0x4b   : > { %s4063_s28 = scalar_select %p132_p7, %s3785_s6, %s134_s0  }
  0x4c   : > { %p4065_p11 = por %p142_p9, %p141_p8  ;;  %p4071_p12 = por %p148_p1, %p147_p10 }
  0x4d   : > { %4751 = sst [smem:[#allocation33_spill]] %s4063_s28  ;;  %p617_p13 = scmp.eq.s32.totalorder %s3970_s8, 1 }
  0x4e   : > { %p623_p0 = scmp.eq.s32.totalorder %s2881_s23, 1  ;;  %p3143_p2 = scmp.lt.s32.totalorder %s3789_s30, 2 }
  0x4f   : > { %s830_s21 = sand.u32 1, %s3785_s6   ;;  %p4078_p4 = por %p617_p13, %p141_p8 }
  0x50   : > { %p4082_p6 = por %p623_p0, %p147_p10  ;;  %s4086_s4 = sshll.u32 %s830_s21, 1 }
  0x51   : > { %s4712_s5 = sshll.u32 %s3789_s30, 1  ;;  %s4756_s9 = sld [smem:[#allocation37_spill]] }
  0x52   : > { %s834_s23 = scalar_lea.vmem [#allocation2], %s4086_s4  ;;  %p4097_p7 = pnand %p3143_p2, %p4065_p11 }
  0x53   : > { %s841_s24 = sshll.u32 %s834_s23, 4  ;;  %s831_s11 = scalar_lea.sflag [#allocation3], %s830_s21  ;;  %s842_s24 = int_to_ptr.vmem [resolvable:$true] %s841_s24 }
  0x54   : > { %p3639_p9 = pneg %p4097_p7 }
  0x57   : > { %s838_s7 = scalar_lea.hbm %s4756_s9, %s4712_s5  ;;  %s3642_s3 = scalar_lea.hbm %s4756_s9, 4 }
  0x58   : > { %s839_s0 = sshll.u32 %s838_s7, 4  ;;  %s840_s0 = int_to_ptr.hbm [resolvable:$true] %s839_s0 }
  0x59   : > { %s3635_s12 = sshra.s32 %s840_s0, 4  ;;  %s3636_s12 = int_to_ptr.hbm [resolvable:$true] %s3635_s12 }
  0x5a   : > { %s3637_s13 = scalar_lea.hbm %s3636_s12, 2  ;;  %p3643_p11 = scmp.lt.s32.totalorder %s3636_s12, %s4756_s9 }
  0x5b   : > { %p3638_p8 = scmp.ne.s32.totalorder %s3636_s12, %s3637_s13  ;;  %p3644_p0 = scmp.lt.s32.totalorder %s3642_s3, %s3637_s13 }
  0x5d   : > { %p3640_p10 = pnand %p3639_p9, %p3638_p8  ;;  %p3645_p2 = por %p3644_p0, %p3643_p11 }
  0x5f   : > { %p3641_p13 = pneg %p3640_p10 }
  0x61   : > { %p3646_p5 = pnand %p3645_p2, %p3641_p13 }
  0x63   : > { %3649 = shalt.err (!%p3646_p5)
}
  0x64   : > { %s3803_s21 = smov 16   ;;  %s3804_s5 = smov 1  }
  0x65   : > { %3125 = dma.hbm_to_vmem [thread:$0]  (!%p4097_p7), %s840_s0, 32, %s842_s24, %s831_s11, %s3803_s21, %s3803_s21, %s3804_s5  }
  0x66   : > { %s4758_s14 = sshll.u32 %s3789_s30, 1  ;;  %s4759_s19 = sld [smem:[#allocation38_spill]] }
  0x67   : > { %s855_s7 = scalar_lea.vmem [#allocation5], %s4086_s4  ;;  %s851_s3 = sand.u32 1, %s3789_s30  }
  0x68   : > { %s862_s12 = sshll.u32 %s855_s7, 4  ;;  %s852_s23 = scalar_lea.sflag [#allocation6], %s851_s3  ;;  %s863_s12 = int_to_ptr.vmem [resolvable:$true] %s862_s12 }
  0x6c   : > { %s859_s28 = scalar_lea.hbm %s4759_s19, %s4758_s14  ;;  %s3672_s0 = scalar_lea.hbm %s4759_s19, 4 }
  0x6d   : > { %s860_s13 = sshll.u32 %s859_s28, 4  ;;  %s861_s13 = int_to_ptr.hbm [resolvable:$true] %s860_s13 }
  0x6e   : > { %s3665_s9 = sshra.s32 %s861_s13, 4  ;;  %s3666_s9 = int_to_ptr.hbm [resolvable:$true] %s3665_s9 }
  0x6f   : > { %s3667_s6 = scalar_lea.hbm %s3666_s9, 2  ;;  %p3673_p13 = scmp.lt.s32.totalorder %s3666_s9, %s4759_s19 }
  0x70   : > { %p3668_p5 = scmp.ne.s32.totalorder %s3666_s9, %s3667_s6  ;;  %p3674_p11 = scmp.lt.s32.totalorder %s3672_s0, %s3667_s6 }
  0x72   : > { %p3670_p8 = pnand %p3668_p5, %p3639_p9  ;;  %p3675_p0 = por %p3674_p11, %p3673_p13 }
  0x74   : > { %p3671_p10 = pneg %p3670_p8 }
  0x76   : > { %p3676_p2 = pnand %p3675_p0, %p3671_p10 }
  0x78   : > { %3679 = shalt.err (!%p3676_p2)
}
  0x79   : > { %3128 = dma.hbm_to_vmem [thread:$0]  (!%p4097_p7), %s861_s13, 32, %s863_s12, %s852_s23, %s3803_s21, %s3803_s21, %s3804_s5  }
  0x7a   : > { %874 = sbr.rel (%p3975_p3) target bundleno = 3757 (0xead), region = 120  ;;  %s4135_s28 = sand.u32 (!%p3975_p3), 1, %s3781_s2  }
  0x7b   : > { %s2899_s1 = sshll.u32 (!%p3975_p3), %s4135_s28, 1  ;;  %s877_s22 = scalar_lea.sflag (!%p3975_p3), [#allocation3], %s4135_s28 }
  0x7c   : > { %s4139_s7 = scalar_lea.vmem (!%p3975_p3), [#allocation2], %s2899_s1 }
  0x7f   : > { %3740 = dma.done.wait (%p4071_p12), %s877_s22, 32  }
  0x80   : > { %3742 = vsyncadd (%p4071_p12), %s877_s22, 4294967264  ;;  %s886_s10 = sand.u32 1, %s3970_s8   ;;  %s4146_s27 = scalar_lea.vmem [#allocation5], %s2899_s1 }
  0x81   : > { %s887_s6 = scalar_lea.sflag [#allocation6], %s886_s10 }
  0x82   : > { %3744 = dma.done.wait (%p4071_p12), %s887_s6, 32  }
  0x83   : > { %3746 = vsyncadd (%p4071_p12), %s887_s6, 4294967264 }
  0x84   : > { %3748 = dma.done.wait (%p148_p1), [#allocation6], 256  }
  0x85   : > { %3750 = vsyncadd (%p148_p1), [#allocation6], 4294967040 }
  0x86   : > { %3752 = dma.done.wait (%p148_p1), [#allocation9], 272  }
  0x87   : > { %3754 = vsyncadd (%p148_p1), [#allocation9], 4294967024 }
  0x88   : > { %3756 = dma.done.wait (%p148_p1), [#allocation12], 32  }
  0x89   : > { %3758 = vsyncadd (%p148_p1), [#allocation12], 4294967264 }
  0x8a   : > { %3760 = dma.done.wait (%p148_p1), [#allocation15], 272  }
  0x8b   : > { %3762 = vsyncadd (%p148_p1), [#allocation15], 4294967024 }
  0x8c   : > { %3764 = dma.done.wait (%p148_p1), [#allocation18], 272  }
  0x8d   : > { %3766 = vsyncadd (%p148_p1), [#allocation18], 4294967024 }
  0x8e   : > { %3768 = dma.done.wait (%p148_p1), [#allocation21], 256  }
  0x8f   : > { %3770 = vsyncadd (%p148_p1), [#allocation21], 4294967040  ;;  %s2912_s20 = sshll.u32 %s3970_s8, 1  ;;  %s4760_s12 = sld [smem:[#allocation34_spill]]  ;;  %v3029_v0 = vld [vmem:[#allocation7 + $0x8] sm:$0xff]  ;;  %v3028_v1 = vld [vmem:[#allocation7] sm:$0xff]  ;;  %v1056_v49 = vlaneseq }
  0x90   : > { %p1029_p3 = scmp.lt.s32.totalorder %s2912_s20, 3  ;;  %1092 = vmatpush.bf16.msra.mxu0 %v3029_v0  ;;  %vm1082_vm0 = vcmask 261120   ;;  %s4761_s11 = sld [smem:[#allocation40_spill]]  ;;  %vm1125_vm1 = vcmask 64512   ;;  %v3810_v28 = vmov 0   ;;  %vm1272_vm2 = vcmask 1043456  }
  0x91   : > { %s3805_s24 = smov 104   ;;  %s3806_s0 = smov 120   ;;  %3227 = vset.pattern.permute.xlu0 %v3810_v28  ;;  %3228 = vset.pattern.permute.xlu1 %v3810_v28  ;;  %v1110_v48 = vld [vmem:[%s4139_s7] sm:$0x1]  ;;  %v4238_v51 = vshrl.u32 %v1056_v49, 7  ;;  %v4240_v52 = vand.u32 127, %v1056_v49 }
  0x92   : > { %s4786_s20 = smov (!%p1029_p3, %s2912_s20), 3  ;;  %s3807_s14 = smov 112   ;;  %vm1111_vm3 = vcmp.ne.f32.partialorder %v1110_v48, 0.0  ;;  %v2935_v49 = vld [vmem:[%s4139_s7 + $0x1] sm:$0x1]  ;;  %vm1369_vm10 = vcmask 130048  }
  0x93   : > { %s4177_s5 = sshll.u32 %s4786_s20, 3  ;;  %s3808_s4 = smov 96   ;;  %v1112_v50 = vsel %vm1111_vm3, 1, %v3810_v28  ;;  %vm1060_vm4 = vcmp.le.s32.totalorder %v4240_v52, %v4238_v51  ;;  %vm1385_vm7 = vcmp.ne.f32.partialorder %v2935_v49, 0.0  ;;  %vm1371_vm11 = vcmask 195584  }
  0x94   : > { %1093 = vmatpush.bf16.msra.mxu0 %v3028_v1  ;;  %s3809_s1 = smov 64   ;;  %v1113_v53 = vperm.slane %v1112_v50, 0  ;;  %s3811_s22 = smov 24  }
  0x95   : > { %s1032_s13 = scalar_lea.vmem %s4760_s12, %s4177_s5  ;;  %s3812_s7 = smov 8  }
  0x96   : > { %v4183_v2 = vld [vmem:[%s1032_s13] sm:$0xff]  ;;  %v4185_v3 = vld [vmem:[%s1032_s13 + $0x8] sm:$0xff]  ;;  %vm1114_vm5 = vcmp.eq.s32.totalorder %v1113_v53, 1  ;;  %v1386_v53 = vsel %vm1385_vm7, 1, %v3810_v28  ;;  %s3813_s10 = smov 16   ;;  %s4766_s9 = sld [smem:[#allocation36_spill]] }
  0x97   : > { %v1061_v4 = vpack.c.bf16 %v4185_v3, %v4183_v2  ;;  %v3244_v5 = vld [vmem:[%s4761_s11] ss:$0 sm:$0xff]  ;;  %vm4247_vm6 = vmand %vm1060_vm4, %vm1114_vm5  ;;  %v1387_v54 = vperm.slane %v1386_v53, 0  ;;  %s4767_s3 = sld [smem:[#allocation35_spill]]  ;;  %s2911_s13 = sshll.u32 %s4135_s28, 4 }
  0x98   : > { %s4772_s6 = sld [smem:[#allocation49_spill]] }
  0x99   : > { %2926 = vmatmul.msk.bf16.vlgmr.msra.gmra.mxu0 %vm1082_vm0, %v1061_v4  ;;  %vm1388_vm8 = vcmp.eq.s32.totalorder %v1387_v54, 1  ;;  %s4777_s12 = sld [smem:[#allocation55_spill]] }
  0x9a   : > { %vm4316_vm9 = vmand %vm1060_vm4, %vm1388_vm8  ;;  %s4778_s11 = sld [smem:[#allocation56_spill]] }
  0x9c   : > { %s1044_s21 = scalar_lea.vmem %s4766_s9, %s4177_s5 }
  0x9d   : > { %s1038_s23 = scalar_lea.vmem %s4767_s3, %s4177_s5  ;;  %s3044_s3 = sshll.u32 %s3970_s8, 4 }
  0x9e   : > { %s2639_s8 = scalar_lea.sflag [#allocation4], %s4135_s28 }
 0x116   : > { %v1095_v6 = vpop.f32.mrf.mxu0 }
 0x117   : > { %v1096_v7 = vadd.f32 %v3244_v5, %v1095_v6 }
 0x119   : > { %1107 = vrot.lane.b32.xlu1 %v1096_v7, %s3805_s24  ;;  %1101 = vrot.lane.b32.xlu0 %v1096_v7, %s3806_s0  ;;  %v1116_v8 = vpack.c.bf16 %v1096_v7, %v1096_v7 }
 0x11b   : > { %v1121_v9 = vunpack.c.l.b16 %v1116_v8 }
 0x11d   : > { %v4196_v10 = vpack.c.b16 %v1121_v9, %v1121_v9 }
 0x11e   : > { %v1097_v11 = vpop.f32.mrf.mxu0 }
 0x11f   : > { %v4200_v12 = vadd.f32 %v3244_v5, %v1097_v11 }
 0x121   : > { %1104 = vrot.lane.b32.xlu0 %v1096_v7, %s3807_s14 }
 0x129   : > { %1123 = vrot.lane.b32.xlu0 %v4196_v10, %s3808_s4 }
 0x131   : > { %1380 = vrot.lane.b32.xlu0 %v4200_v12, %s3805_s24 }
 0x18b   : > { %v1102_v13 = vpop.permute.xlu0 %1101  ;;  %v1108_v19 = vpop.permute.xlu1 %1107 }
 0x18c   : > { %v1117_v14 = vpack.c.bf16 %v1102_v13, %v1102_v13  ;;  %v1119_v21 = vpack.c.bf16 %v1108_v19, %v1108_v19 }
 0x18e   : > { %v1146_v15 = vunpack.c.l.b16 %v1117_v14  ;;  %v1194_v24 = vunpack.c.l.b16 %v1119_v21 }
 0x190   : > { %v1147_v16 = vpack.c.b16 %v1146_v15, %v1146_v15  ;;  %v4211_v26 = vpack.c.b16 %v1194_v24, %v1194_v24 }
 0x192   : > { %1148 = vrot.lane.b32.xlu1 %v1147_v16, %s3808_s4  ;;  %1289 = vrot.lane.b32.xlu0 %v1147_v16, %s3809_s1 }
 0x193   : > { %v1105_v17 = vpop.permute.xlu0 %1104 }
 0x194   : > { %v1118_v18 = vpack.c.bf16 %v1105_v17, %v1105_v17 }
 0x196   : > { %v1170_v20 = vunpack.c.l.b16 %v1118_v18 }
 0x198   : > { %v1171_v22 = vpack.c.b16 %v1170_v20, %v1170_v20 }
 0x19a   : > { %1374 = vrot.lane.b32.xlu1 %v4200_v12, %s3806_s0  ;;  %1172 = vrot.lane.b32.xlu2 %v1171_v22, %s3808_s4 }
 0x19b   : > { %1310 = vrot.lane.b32.xlu0 %v1171_v22, %s3809_s1  ;;  %v1124_v23 = vpop.permute.xlu0 %1123 }
 0x19c   : > { %v1130_v25 = vsel %vm1125_vm1, %v1124_v23, 0 }
 0x19d   : > { %1139 = vmatpush.bf16.xpose.msra.mxu1 %v1130_v25 }
 0x1a2   : > { %1196 = vrot.lane.b32.xlu2 %v4211_v26, %s3808_s4 }
 0x1a3   : > { %v1381_v31 = vpop.permute.xlu0 %1380 }
 0x1a4   : > { %2927 = vmatmul.msk.bf16.vlgmr.msra.gmra.mxu1 %vm1125_vm1, %v1116_v8  ;;  %v1393_v63 = vpack.c.bf16 %v1381_v31, %v1381_v31  ;;  %v1390_v8 = vpack.c.bf16 %v4200_v12, %v4200_v12 }
 0x1a6   : > { %v1467_v5 = vunpack.c.l.b16 %v1393_v63  ;;  %v1395_v11 = vunpack.c.l.b16 %v1390_v8 }
 0x1a8   : > { %v4260_v6 = vpack.c.b16 %v1467_v5, %v1467_v5 }
 0x1aa   : > { %1377 = vrot.lane.b32.xlu2 %v4200_v12, %s3807_s14 }
 0x1f4   : > { %v1173_v27 = vpop.permute.xlu2 %1172 }
 0x1f5   : > { %v1178_v29 = vsel %vm1125_vm1, %v1173_v27, 0 }
 0x1f6   : > { %1187 = vmatpush.bf16.xpose.msra.mxu3 %v1178_v29 }
 0x1fc   : > { %v1197_v30 = vpop.permute.xlu2 %1196 }
 0x1fd   : > { %2929 = vmatmul.msk.bf16.vlgmr.msra.gmra.mxu3 %vm1125_vm1, %v1118_v18  ;;  %v1202_v32 = vsel %vm1125_vm1, %v1197_v30, 0 }
 0x1fe   : > { %1211 = vmatpush.bf16.xpose.msrb.mxu0 %v1202_v32 }
 0x204   : > { %v1149_v33 = vpop.permute.xlu1 %1148  ;;  %v1290_v34 = vpop.permute.xlu0 %1289 }
 0x205   : > { %2930 = vmatmul.msk.bf16.vlgmr.msrb.gmra.mxu0 %vm1125_vm1, %v1119_v21  ;;  %v1154_v35 = vsel %vm1125_vm1, %v1149_v33, 0  ;;  %v1295_v36 = vsel %vm1272_vm2, %v1290_v34, 0  ;;  %v1378_v45 = vpop.permute.xlu2 %1377 }
 0x206   : > { %1163 = vmatpush.bf16.xpose.msra.mxu2 %v1154_v35  ;;  %v1392_v9 = vpack.c.bf16 %v1378_v45, %v1378_v45 }
 0x208   : > { %v1443_v13 = vunpack.c.l.b16 %v1392_v9 }
 0x20a   : > { %v4272_v15 = vpack.c.b16 %v1443_v13, %v1443_v13 }
 0x20c   : > { %v1375_v37 = vpop.permute.xlu1 %1374 }
 0x20d   : > { %v4226_v38 = vpack.c.bf16 %v1375_v37, %v1375_v37  ;;  %v1311_v39 = vpop.permute.xlu0 %1310  ;;  %2928 = vmatmul.msk.bf16.vlgmr.msra.gmra.mxu2 %vm1125_vm1, %v1117_v14  ;;  %v4270_v14 = vpack.c.b16 %v1395_v11, %v1395_v11 }
 0x20e   : > { %1304 = vmatpush.bf16.msrb.mxu2 %v1295_v36  ;;  %v1316_v40 = vsel %vm1272_vm2, %v1311_v39, 0 }
 0x20f   : > { %v1419_v41 = vunpack.c.l.b16 %v4226_v38  ;;  %1325 = vmatpush.bf16.msrb.mxu3 %v1316_v40 }
 0x211   : > { %v4231_v42 = vpack.c.b16 %v1419_v41, %v1419_v41 }
 0x213   : > { %1421 = vrot.lane.b32.xlu2 %v4231_v42, %s3808_s4 }
 0x221   : > { %v1141_v43 = vpop.f32.mrf.mxu1 }
 0x222   : > { %v1219_v16 = vsel %vm4247_vm6, %v1141_v43, -1e+30 }
 0x223   : > { %v1223_v12 = vsel %vm1125_vm1, %v1219_v16, -inf }
 0x229   : > { %v1143_v44 = vpop.f32.mrf.mxu1 }
 0x26d   : > { %v1422_v46 = vpop.permute.xlu2 %1421 }
 0x26e   : > { %v1427_v47 = vsel %vm1125_vm1, %v1422_v46, 0 }
 0x26f   : > { %1436 = vmatpush.bf16.xpose.msra.mxu2 %v1427_v47 }
 0x280   : > { %v1189_v55 = vpop.f32.mrf.mxu3 }
 0x281   : > { %v1221_v56 = vsel %vm4247_vm6, %v1189_v55, -1e+30 }
 0x282   : > { %v1213_v57 = vpop.f32.mrf.mxu0  ;;  %v1229_v58 = vsel %vm1125_vm1, %v1221_v56, -inf }
 0x283   : > { %v1222_v59 = vsel %vm4247_vm6, %v1213_v57, -1e+30  ;;  %1230 = vmax.xlane.f32.xlu2 %v1229_v58 }
 0x284   : > { %v1232_v60 = vsel %vm1125_vm1, %v1222_v59, -inf }
 0x285   : > { %1233 = vmax.xlane.f32.xlu0 %v1232_v60 }
 0x288   : > { %v1191_v61 = vpop.f32.mrf.mxu3 }
 0x28a   : > { %v1215_v62 = vpop.f32.mrf.mxu0 }
 0x290   : > { %v1165_v0 = vpop.f32.mrf.mxu2 }
 0x291   : > { %v1220_v1 = vsel %vm4247_vm6, %v1165_v0, -1e+30 }
 0x292   : > { %v1226_v4 = vsel %vm1125_vm1, %v1220_v1, -inf }
 0x293   : > { %1227 = vmax.xlane.f32.xlu1 %v1226_v4 }
 0x298   : > { %v1167_v7 = vpop.f32.mrf.mxu2 }
 0x299   : > { %1469 = vrot.lane.b32.xlu0 %v4260_v6, %s3808_s4 }
 0x29b   : > { %1331 = vrot.lane.b32.xlu2 %v4211_v26, %s3809_s1 }
 0x2a3   : > { %1267 = vrot.lane.b32.xlu2 %v4196_v10, %s3809_s1 }
 0x2ab   : > { %1397 = vrot.lane.b32.xlu2 %v4270_v14, %s3808_s4 }
 0x2ac   : > { %1445 = vrot.lane.b32.xlu1 %v4272_v15, %s3808_s4 }
 0x2d6   : > { %1224 = vmax.xlane.f32.xlu1 %v1223_v12 }
 0x2f6   : > { %v1231_v17 = vpop.xlane.xlu2 %1230 }
 0x2f7   : > { %v1237_v10 = vsub.f32 %v1221_v56, %v1231_v17 }
 0x2f8   : > { %v1234_v18 = vpop.xlane.xlu0 %1233 }
 0x2f9   : > { %v1243_v19 = vmul.f32 1.442695, %v1237_v10  ;;  %v1238_v20 = vsub.f32 %v1222_v59, %v1234_v18 }
 0x2fb   : > { %3257 = vpow2.f32 %v1243_v19  ;;  %v1245_v21 = vmul.f32 1.442695, %v1238_v20 }
 0x2fd   : > { %3259 = vpow2.f32 %v1245_v21 }
 0x2fe   : > { %v1332_v22 = vpop.permute.xlu2 %1331 }
 0x2ff   : > { %v1337_v23 = vsel %vm1272_vm2, %v1332_v22, 0 }
 0x300   : > { %1346 = vmatpush.bf16.msra.mxu0 %v1337_v23 }
 0x301   : > { %v4282_v24 = vpop.eup %3257 }
 0x302   : > { %v1265_v25 = vpack.c.bf16 %v4282_v24, %v4282_v24 }
 0x303   : > { %v4286_v26 = vpop.eup %3259 }
 0x304   : > { %v1266_v27 = vpack.c.bf16 %v4286_v26, %v4286_v26  ;;  %2933 = vmatmul.msk.bf16.vlgmr.msrb.gmra.mxu3 %vm1125_vm1, %v1265_v25 }
 0x306   : > { %v1228_v29 = vpop.xlane.xlu1 %1227  ;;  %v1268_v30 = vpop.permute.xlu2 %1267  ;;  %2934 = vmatmul.msk.bf16.vlgmr.msra.gmra.mxu0 %vm1125_vm1, %v1266_v27 }
 0x307   : > { %v1236_v31 = vsub.f32 %v1220_v1, %v1228_v29  ;;  %v1274_v32 = vsel %vm1272_vm2, %v1268_v30, 0 }
 0x308   : > { %1283 = vmatpush.bf16.msrb.mxu1 %v1274_v32 }
 0x309   : > { %v1241_v33 = vmul.f32 1.442695, %v1236_v31 }
 0x30b   : > { %3261 = vpow2.f32 %v1241_v33  ;;  %v1470_v34 = vpop.permute.xlu0 %1469 }
 0x30c   : > { %v1475_v35 = vsel %vm1125_vm1, %v1470_v34, 0 }
 0x30d   : > { %1484 = vmatpush.bf16.xpose.msrb.mxu0 %v1475_v35 }
 0x30e   : > { %v1398_v36 = vpop.permute.xlu2 %1397 }
 0x30f   : > { %v1403_v37 = vsel %vm1125_vm1, %v1398_v36, 0 }
 0x310   : > { %1412 = vmatpush.bf16.xpose.msra.mxu1 %v1403_v37 }
 0x311   : > { %v3262_v39 = vpop.eup %3261 }
 0x312   : > { %v1264_v40 = vpack.c.bf16 %v3262_v39, %v3262_v39  ;;  %v1250_v17 = vsel %vm1125_vm1, %v3262_v39, 0.0 }
 0x314   : > { %2932 = vmatmul.msk.bf16.vlgmr.msrb.gmra.mxu2 %vm1125_vm1, %v1264_v40 }
 0x316   : > { %2939 = vmatmul.msk.bf16.vlgmr.msrb.gmra.mxu0 %vm1125_vm1, %v1393_v63 }
 0x31e   : > { %v1446_v41 = vpop.permute.xlu1 %1445 }
 0x31f   : > { %v1451_v43 = vsel %vm1125_vm1, %v1446_v41, 0 }
 0x320   : > { %1460 = vmatpush.bf16.xpose.msra.mxu3 %v1451_v43 }
 0x324   : > { %2937 = vmatmul.msk.bf16.vlgmr.msra.gmra.mxu2 %vm1125_vm1, %v4226_v38 }
 0x327   : > { %2938 = vmatmul.msk.bf16.vlgmr.msra.gmra.mxu3 %vm1125_vm1, %v1392_v9 }
 0x349   : > { %v1225_v44 = vpop.xlane.xlu1 %1224 }
 0x34a   : > { %v1235_v45 = vsub.f32 %v1219_v16, %v1225_v44 }
 0x34c   : > { %v1239_v46 = vmul.f32 1.442695, %v1235_v45 }
 0x34e   : > { %3263 = vpow2.f32 %v1239_v46 }
 0x354   : > { %v4301_v47 = vpop.eup %3263 }
 0x355   : > { %v1263_v48 = vpack.c.bf16 %v4301_v47, %v4301_v47  ;;  %v1247_v43 = vsel %vm1125_vm1, %v4301_v47, 0.0 }
 0x357   : > { %2931 = vmatmul.msk.bf16.vlgmr.msrb.gmra.mxu1 %vm1125_vm1, %v1263_v48 }
 0x367   : > { %2936 = vmatmul.msk.bf16.vlgmr.msra.gmra.mxu1 %vm1125_vm1, %v1390_v8 }
 0x383   : > { %v4308_v50 = vpop.f32.mrf.mxu0 }
 0x387   : > { %v4310_v38 = vpop.f32.mrf.mxu3 }
 0x38b   : > { %v1350_v55 = vpop.f32.mrf.mxu0 }
 0x38f   : > { %v1329_v56 = vpop.f32.mrf.mxu3 }
 0x393   : > { %v1486_v58 = vpop.f32.mrf.mxu0 }
 0x394   : > { %v1495_v59 = vsel %vm4316_vm9, %v1486_v58, -1e+30 }
 0x395   : > { %v1505_v60 = vsel %vm1125_vm1, %v1495_v59, -inf }
 0x396   : > { %1506 = vmax.xlane.f32.xlu1 %v1505_v60 }
 0x397   : > { %v4323_v61 = vpop.f32.mrf.mxu2 }
 0x39b   : > { %v1488_v62 = vpop.f32.mrf.mxu0 }
 0x39f   : > { %v1308_v63 = vpop.f32.mrf.mxu2 }
 0x3a7   : > { %v1438_v0 = vpop.f32.mrf.mxu2 }
 0x3a8   : > { %v1493_v1 = vsel %vm4316_vm9, %v1438_v0, -1e+30 }
 0x3a9   : > { %v1499_v51 = vsel %vm1125_vm1, %v1493_v1, -inf }
 0x3aa   : > { %1500 = vmax.xlane.f32.xlu0 %v1499_v51  ;;  %v1462_v52 = vpop.f32.mrf.mxu3 }
 0x3ab   : > { %v1494_v4 = vsel %vm4316_vm9, %v1462_v52, -1e+30 }
 0x3ac   : > { %v1502_v5 = vsel %vm1125_vm1, %v1494_v4, -inf }
 0x3ad   : > { %1503 = vmax.xlane.f32.xlu2 %v1502_v5 }
 0x3af   : > { %v1440_v7 = vpop.f32.mrf.mxu2  ;;  %1561 = vrot.lane.b32.xlu1 %v4231_v42, %s3809_s1 }
 0x3b2   : > { %v1464_v8 = vpop.f32.mrf.mxu3 }
 0x3be   : > { %1582 = vrot.lane.b32.xlu0 %v4272_v15, %s3809_s1 }
 0x3c5   : > { %1603 = vrot.lane.b32.xlu2 %v4260_v6, %s3809_s1  ;;  %v1253_v6 = vsel %vm1125_vm1, %v4282_v24, 0.0 }
 0x3c6   : > { %1540 = vrot.lane.b32.xlu0 %v4270_v14, %s3809_s1  ;;  %v1256_v14 = vsel %vm1125_vm1, %v4286_v26, 0.0  ;;  %s4775_s1 = sld [smem:[#allocation53_spill]] }
 0x3d4   : > { %v4339_v9 = vpop.f32.mrf.mxu1 }
 0x3dc   : > { %v1287_v11 = vpop.f32.mrf.mxu1 }
 0x3e4   : > { %v1414_v13 = vpop.f32.mrf.mxu1 }
 0x3e5   : > { %v1492_v16 = vsel %vm4316_vm9, %v1414_v13, -1e+30 }
 0x3e6   : > { %v1496_v12 = vsel %vm1125_vm1, %v1492_v16, -inf }
 0x3e7   : > { %1497 = vmax.xlane.f32.xlu1 %v1496_v12 }
 0x3ec   : > { %v1416_v42 = vpop.f32.mrf.mxu1 }
 0x3ee   : > { %1251 = vadd.xlane.f32.xlu2 %v1250_v17 }
 0x3ef   : > { %1254 = vadd.xlane.f32.xlu1 %v1253_v6 }
 0x3f6   : > { %1257 = vadd.xlane.f32.xlu2 %v1256_v14 }
 0x409   : > { %v1507_v15 = vpop.xlane.xlu1 %1506 }
 0x40a   : > { %v1511_v10 = vsub.f32 %v1495_v59, %v1507_v15 }
 0x40c   : > { %v1518_v18 = vmul.f32 1.442695, %v1511_v10 }
 0x40e   : > { %3265 = vpow2.f32 %v1518_v18 }
 0x414   : > { %v3266_v24 = vpop.eup %3265 }
 0x415   : > { %v1539_v35 = vpack.c.bf16 %v3266_v24, %v3266_v24  ;;  %v1529_v40 = vsel %vm1125_vm1, %v3266_v24, 0.0 }
 0x41d   : > { %v1501_v19 = vpop.xlane.xlu0 %1500 }
 0x41e   : > { %v1509_v20 = vsub.f32 %v1493_v1, %v1501_v19  ;;  %v3031_v19 = vld [vmem:[#allocation8 + $0x8] sm:$0xff] }
 0x420   : > { %v1514_v21 = vmul.f32 1.442695, %v1509_v20  ;;  %v1504_v22 = vpop.xlane.xlu2 %1503  ;;  %v3030_v20 = vld [vmem:[#allocation8] sm:$0xff] }
 0x421   : > { %v1510_v23 = vsub.f32 %v1494_v4, %v1504_v22  ;;  %v1562_v25 = vpop.permute.xlu1 %1561  ;;  %v1055_v22 = vld [vmem:[%s1044_s21 + $0x8] sm:$0xff] }
 0x422   : > { %3267 = vpow2.f32 %v1514_v21  ;;  %v1567_v27 = vsel %vm1272_vm2, %v1562_v25, 0  ;;  %v1054_v21 = vld [vmem:[%s1044_s21] sm:$0xff]  ;;  %s4773_s21 = sld [smem:[#allocation52_spill]] }
 0x423   : > { %v1516_v29 = vmul.f32 1.442695, %v1510_v23  ;;  %1576 = vmatpush.bf16.msrb.mxu2 %v1567_v27 }
 0x425   : > { %3269 = vpow2.f32 %v1516_v29 }
 0x428   : > { %v3268_v30 = vpop.eup %3267  ;;  %v1604_v26 = vpop.permute.xlu2 %1603 }
 0x429   : > { %v1537_v31 = vpack.c.bf16 %v3268_v30, %v3268_v30  ;;  %v1609_v32 = vsel %vm1272_vm2, %v1604_v26, 0  ;;  %v1523_v33 = vsel %vm1125_vm1, %v3268_v30, 0.0 }
 0x42a   : > { %1618 = vmatpush.bf16.msra.mxu0 %v1609_v32  ;;  %1524 = vadd.xlane.f32.xlu0 %v1523_v33 }
 0x42b   : > { %v3270_v34 = vpop.eup %3269  ;;  %2941 = vmatmul.msk.bf16.vlgmr.msrb.gmra.mxu2 %vm1125_vm1, %v1537_v31 }
 0x42c   : > { %v1526_v36 = vsel %vm1125_vm1, %v3270_v34, 0.0  ;;  %v1538_v41 = vpack.c.bf16 %v3270_v34, %v3270_v34 }
 0x42d   : > { %1527 = vadd.xlane.f32.xlu1 %v1526_v36  ;;  %2943 = vmatmul.msk.bf16.vlgmr.msra.gmra.mxu0 %vm1125_vm1, %v1539_v35 }
 0x430   : > { %v1583_v37 = vpop.permute.xlu0 %1582 }
 0x431   : > { %v1588_v39 = vsel %vm1272_vm2, %v1583_v37, 0 }
 0x432   : > { %1530 = vadd.xlane.f32.xlu0 %v1529_v40  ;;  %1597 = vmatpush.bf16.msrb.mxu3 %v1588_v39 }
 0x435   : > { %1248 = vadd.xlane.f32.xlu1 %v1247_v43  ;;  %2942 = vmatmul.msk.bf16.vlgmr.msrb.gmra.mxu3 %vm1125_vm1, %v1538_v41 }
 0x438   : > { %v1541_v44 = vpop.permute.xlu0 %1540 }
 0x439   : > { %v1546_v45 = vsel %vm1272_vm2, %v1541_v44, 0 }
 0x43a   : > { %1555 = vmatpush.bf16.msrb.mxu1 %v1546_v45 }
 0x43e   : > { %1673 = vmatpush.bf16.msra.mxu1 %v3031_v19 }
 0x442   : > { %1674 = vmatpush.bf16.msra.mxu1 %v3030_v20 }
 0x45a   : > { %v1498_v46 = vpop.xlane.xlu1 %1497 }
 0x45b   : > { %v1508_v48 = vsub.f32 %v1492_v16, %v1498_v46  ;;  %v3245_v46 = vld [vmem:[#allocation10] ss:$0 sm:$0xff] }
 0x45d   : > { %v1512_v49 = vmul.f32 1.442695, %v1508_v48 }
 0x45f   : > { %3271 = vpow2.f32 %v1512_v49 }
 0x461   : > { %v1252_v56 = vpop.xlane.xlu2 %1251 }
 0x462   : > { %v1255_v59 = vpop.xlane.xlu1 %1254 }
 0x465   : > { %v3272_v53 = vpop.eup %3271 }
 0x466   : > { %v1536_v54 = vpack.c.bf16 %v3272_v53, %v3272_v53  ;;  %v1520_v55 = vsel %vm1125_vm1, %v3272_v53, 0.0 }
 0x467   : > { %1521 = vadd.xlane.f32.xlu2 %v1520_v55 }
 0x468   : > { %2940 = vmatmul.msk.bf16.vlgmr.msrb.gmra.mxu1 %vm1125_vm1, %v1536_v54 }
 0x469   : > { %v1258_v57 = vpop.xlane.xlu2 %1257 }
 0x46a   : > { %3273 = vrcp.f32 %v1258_v57 }
 0x46b   : > { %3275 = vrcp.f32 %v1252_v56 }
 0x470   : > { %v3274_v60 = vpop.eup %3273 }
 0x471   : > { %v3276_v63 = vpop.eup %3275  ;;  %v1355_v1 = vmul.f32 %v3274_v60, %v4308_v50 }
 0x472   : > { %v1353_v8 = vmul.f32 %v3276_v63, %v4323_v61  ;;  %v3814_v63 = vmov 32.0  }
 0x49d   : > { %v1525_v47 = vpop.xlane.xlu0 %1524 }
 0x4a0   : > { %v1528_v5 = vpop.xlane.xlu1 %1527 }
 0x4a5   : > { %v1531_v58 = vpop.xlane.xlu0 %1530 }
 0x4a6   : > { %3277 = vrcp.f32 %v1531_v58 }
 0x4a7   : > { %3279 = vrcp.f32 %v1525_v47 }
 0x4a8   : > { %3281 = vrcp.f32 %v1255_v59 }
 0x4a9   : > { %3283 = vrcp.f32 %v1528_v5  ;;  %v3034_v5 = vld [vmem:[#allocation17] sm:$0xff] }
 0x4aa   : > { %v1620_v62 = vpop.f32.mrf.mxu0 }
 0x4ac   : > { %v3278_v0 = vpop.eup %3277 }
 0x4ad   : > { %v1627_v51 = vmul.f32 %v3278_v0, %v1620_v62  ;;  %v3280_v52 = vpop.eup %3279 }
 0x4ae   : > { %v1578_v4 = vpop.f32.mrf.mxu2  ;;  %v3282_v50 = vpop.eup %3281 }
 0x4af   : > { %v3222_v7 = vpack.i.bf16 %v1627_v51, %v1355_v1  ;;  %v1625_v11 = vmul.f32 %v3280_v52, %v1578_v4  ;;  %v3284_v42 = vpop.eup %3283  ;;  %v1354_v6 = vmul.f32 %v3282_v50, %v4310_v38  ;;  %v1249_v38 = vpop.xlane.xlu1 %1248  ;;  %v1052_v51 = vld [vmem:[%s1038_s23] sm:$0xff]  ;;  %v1053_v52 = vld [vmem:[%s1038_s23 + $0x8] sm:$0xff]  ;;  %s1027_s23 = scalar_lea.vmem [#allocation22], %s2911_s13 }
 0x4b0   : > { %3285 = vrcp.f32 %v1249_v38 }
 0x4b1   : > { %v3212_v13 = vpack.i.bf16 %v1625_v11, %v1353_v8  ;;  %3223 = vrot.lane.b32.xlu2 %v3222_v7, %s3811_s22  ;;  %v1796_v7 = vpack.c.bf16 %v1053_v52, %v1052_v51 }
 0x4b2   : > { %v1622_v16 = vpop.f32.mrf.mxu0 }
 0x4b3   : > { %3213 = vrot.lane.b32.xlu0 %v3212_v13, %s3812_s7 }
 0x4b6   : > { %v1580_v12 = vpop.f32.mrf.mxu2  ;;  %v3286_v27 = vpop.eup %3285 }
 0x4b7   : > { %v1352_v31 = vmul.f32 %v3286_v27, %v4339_v9 }
 0x4b8   : > { %v1599_v17 = vpop.f32.mrf.mxu3 }
 0x4b9   : > { %v1626_v14 = vmul.f32 %v3284_v42, %v1599_v17 }
 0x4bb   : > { %v3217_v61 = vpack.i.bf16 %v1626_v14, %v1354_v6  ;;  %1683 = vperm.xlu0 %3227, %v1054_v21   ;;  %v3032_v21 = vld [vmem:[#allocation14] sm:$0xff] }
 0x4bd   : > { %3218 = vrot.lane.b32.xlu1 %v3217_v61, %s3813_s10 }
 0x4c0   : > { %v1601_v15 = vpop.f32.mrf.mxu3 }
 0x4c5   : > { %1688 = vperm.xlu1 %3228, %v1055_v22   ;;  %v3248_v22 = vld [vmem:[#allocation19] ss:$0 sm:$0xff] }
 0x4da   : > { %v1522_v23 = vpop.xlane.xlu2 %1521 }
 0x4db   : > { %3287 = vrcp.f32 %v1522_v23 }
 0x4dc   : > { %3289 = vrcp.f32 %v3814_v63 }
 0x4e1   : > { %v3288_v30 = vpop.eup %3287 }
 0x4e2   : > { %v3290_v0 = vpop.eup %3289 }
 0x4e3   : > { %v1702_v1 = vmul.f32 32.0, %v3290_v0  ;;  %vm1706_vm12 = vweird.f32 %v3290_v0 }
 0x4e5   : > { %v1557_v10 = vpop.f32.mrf.mxu1  ;;  %v1703_v4 = vsub.f32 1.0, %v1702_v1 }
 0x4e6   : > { %v1624_v32 = vmul.f32 %v3288_v30, %v1557_v10  ;;  %v3033_v10 = vld [vmem:[#allocation14 + $0x8] sm:$0xff] }
 0x4e7   : > { %v1704_v8 = vmul.f32 %v3290_v0, %v1703_v4  ;;  %1788 = vmatpush.bf16.msra.mxu2 %v3033_v10 }
 0x4eb   : > { %1789 = vmatpush.bf16.msra.mxu2 %v3032_v21 }
 0x4ed   : > { %v1559_v18 = vpop.f32.mrf.mxu1 }
 0x50b   : > { %v3224_v26 = vpop.permute.xlu2 %3223 }
 0x50c   : > { %v3226_v36 = vunpack.i.h.bf16 %v3224_v26  ;;  %v3225_v37 = vunpack.i.l.bf16 %v3224_v26 }
 0x525   : > { %v3214_v25 = vpop.permute.xlu0 %3213 }
 0x526   : > { %v3216_v29 = vunpack.i.h.bf16 %v3214_v25  ;;  %v3215_v24 = vunpack.i.l.bf16 %v3214_v25 }
 0x528   : > { %v1640_v39 = vsel %vm1125_vm1, %v1624_v32, %v3216_v29  ;;  %v1368_v40 = vsel %vm1125_vm1, %v1352_v31, %v3215_v24 }
 0x52d   : > { %v4381_v49 = vpop.permute.xlu0 %1683 }
 0x52f   : > { %v3219_v33 = vpop.permute.xlu1 %3218 }
 0x530   : > { %v3221_v34 = vunpack.i.h.bf16 %v3219_v33  ;;  %v3220_v35 = vunpack.i.l.bf16 %v3219_v33 }
 0x532   : > { %v1370_v41 = vsel %vm1369_vm10, %v1368_v40, %v3220_v35  ;;  %v1641_v43 = vsel %vm1369_vm10, %v1640_v39, %v3221_v34 }
 0x533   : > { %v1372_v44 = vsel %vm1371_vm11, %v1370_v41, %v3225_v37  ;;  %v1642_v9 = vsel %vm1371_vm11, %v1641_v43, %v3226_v36 }
 0x534   : > { %v1643_v45 = vpack.c.bf16 %v1642_v9, %v1372_v44 }
 0x536   : > { %2952 = vmatmul.msk.bf16.vlgmr.msra.gmra.mxu1 %vm1082_vm0, %v1643_v45  ;;  %v3246_v45 = vld [vmem:[#allocation11] ss:$0 sm:$0xff] }
 0x537   : > { %v4386_v57 = vpop.permute.xlu1 %1688 }
 0x5b3   : > { %v1676_v48 = vpop.f32.mrf.mxu1 }
 0x5b4   : > { %v1677_v53 = vadd.f32 %v3245_v46, %v1676_v48 }
 0x5b6   : > { %v1691_v54 = vmul.f32 %v4381_v49, %v1677_v53 }
 0x5b8   : > { %v1693_v55 = vadd.f32 %v1691_v54, %v4183_v2  ;;  %v3035_v2 = vld [vmem:[#allocation17 + $0x8] sm:$0xff] }
 0x5b9   : > { %1826 = vmatpush.bf16.msra.mxu3 %v3035_v2  ;;  %v3247_v54 = vld [vmem:[#allocation13] ss:$0 sm:$0xff] }
 0x5ba   : > { %v1695_v56 = vsel %vm1082_vm0, %v1693_v55, 0.0 }
 0x5bb   : > { %v1678_v47 = vpop.f32.mrf.mxu1  ;;  %1696 = vadd.xlane.f32.xlu2 %v1695_v56 }
 0x5bc   : > { %v1679_v58 = vadd.f32 %v3245_v46, %v1678_v47 }
 0x5bd   : > { %1827 = vmatpush.bf16.msra.mxu3 %v3034_v5  ;;  %v3249_v5 = vld [vmem:[#allocation16] ss:$0 sm:$0xff] }
 0x5be   : > { %v1692_v59 = vmul.f32 %v4386_v57, %v1679_v58 }
 0x5c0   : > { %v1694_v60 = vadd.f32 %v1692_v59, %v4185_v3  ;;  %2970 = vmatmul.msk.bf16.vlgmr.msra.gmra.mxu3 %vm1082_vm0, %v1796_v7  ;;  %v1705_v3 = vadd.f32 %v3290_v0, %v1704_v8 }
 0x5c2   : > { %v1698_v62 = vsel %vm1082_vm0, %v1694_v60, 0.0  ;;  %v4396_v11 = vsel %vm1706_vm12, %v3290_v0, %v1705_v3 }
 0x5c3   : > { %1699 = vadd.xlane.f32.xlu1 %v1698_v62 }
 0x62e   : > { %v1697_v13 = vpop.xlane.xlu2 %1696 }
 0x62f   : > { %v1708_v16 = vmul.f32 %v4396_v11, %v1697_v13 }
 0x631   : > { %v1710_v50 = vsub.f32 %v1693_v55, %v1708_v16 }
 0x633   : > { %v1712_v12 = vmul.f32 %v1710_v50, %v1710_v50 }
 0x635   : > { %v1714_v42 = vsel %vm1082_vm0, %v1712_v12, 0.0 }
 0x636   : > { %v1700_v17 = vpop.xlane.xlu1 %1699  ;;  %1715 = vadd.xlane.f32.xlu0 %v1714_v42 }
 0x637   : > { %v1709_v6 = vmul.f32 %v4396_v11, %v1700_v17 }
 0x639   : > { %v1711_v14 = vsub.f32 %v1694_v60, %v1709_v6 }
 0x63b   : > { %v1713_v61 = vmul.f32 %v1711_v14, %v1711_v14 }
 0x63d   : > { %v1717_v15 = vsel %vm1082_vm0, %v1713_v61, 0.0 }
 0x63e   : > { %1718 = vadd.xlane.f32.xlu2 %v1717_v15 }
 0x643   : > { %v1829_v38 = vpop.f32.mrf.mxu3 }
 0x644   : > { %v1830_v27 = vadd.f32 %v3248_v22, %v1829_v38 }
 0x646   : > { %1848 = vrot.lane.b32.xlu1 %v1830_v27, %s3807_s14  ;;  %v4406_v30 = vpack.c.bf16 %v1830_v27, %v1830_v27 }
 0x648   : > { %v1868_v31 = vsel %vm1125_vm1, %v4406_v30, 0 }
 0x649   : > { %1877 = vmatpush.bf16.xpose.msrb.mxu0 %v1868_v31 }
 0x64a   : > { %1851 = vrot.lane.b32.xlu0 %v1830_v27, %s3805_s24 }
 0x64b   : > { %v1831_v39 = vpop.f32.mrf.mxu3 }
 0x64c   : > { %v4411_v41 = vadd.f32 %v3248_v22, %v1831_v39 }
 0x64e   : > { %1845 = vrot.lane.b32.xlu1 %v1830_v27, %s3806_s0 }
 0x656   : > { %2120 = vrot.lane.b32.xlu1 %v4411_v41, %s3807_s14 }
 0x6a9   : > { %v1716_v18 = vpop.xlane.xlu0 %1715 }
 0x6aa   : > { %v1720_v19 = vmul.f32 %v1716_v18, %v4396_v11 }
 0x6ac   : > { %v1722_v20 = vadd.f32 1e-05, %v1720_v19 }
 0x6ae   : > { %3291 = vrsqrt.f32 %v1722_v20  ;;  %vm1730_vm14 = vweird.f32 %v1722_v20 }
 0x6b1   : > { %v1719_v23 = vpop.xlane.xlu2 %1718 }
 0x6b2   : > { %v1721_v25 = vmul.f32 %v1719_v23, %v4396_v11 }
 0x6b4   : > { %v3292_v29 = vpop.eup %3291  ;;  %v1723_v24 = vadd.f32 1e-05, %v1721_v25 }
 0x6b5   : > { %v1725_v26 = vmul.f32 %v3292_v29, %v1722_v20  ;;  %vm1731_vm13 = vweird.f32 %v3292_v29 }
 0x6b6   : > { %3293 = vrsqrt.f32 %v1723_v24  ;;  %vm1732_vm15 = vmor %vm1730_vm14, %vm1731_vm13  ;;  %vm1740_vm4 = vweird.f32 %v1723_v24 }
 0x6b7   : > { %v1726_v32 = vmul.f32 %v3292_v29, %v1725_v26 }
 0x6b8   : > { %v1849_v1 = vpop.permute.xlu1 %1848 }
 0x6b9   : > { %v1727_v33 = vmul.f32 0.5, %v1726_v32  ;;  %v1862_v2 = vpack.c.bf16 %v1849_v1, %v1849_v1 }
 0x6bb   : > { %v1728_v34 = vsub.f32 1.5, %v1727_v33  ;;  %v1906_v51 = vsel %vm1125_vm1, %v1862_v2, 0  ;;  %v2040_v12 = vunpack.c.l.b16 %v1862_v2 }
 0x6bc   : > { %v3294_v35 = vpop.eup %3293  ;;  %v1852_v62 = vpop.permute.xlu0 %1851  ;;  %1915 = vmatpush.bf16.xpose.msrb.mxu2 %v1906_v51 }
 0x6bd   : > { %v1729_v36 = vmul.f32 %v3292_v29, %v1728_v34  ;;  %v1735_v37 = vmul.f32 %v3294_v35, %v1723_v24  ;;  %vm1741_vm3 = vweird.f32 %v3294_v35  ;;  %v1863_v63 = vpack.c.bf16 %v1852_v62, %v1852_v62 }
 0x6be   : > { %vm1742_vm5 = vmor %vm1740_vm4, %vm1741_vm3  ;;  %v2041_v42 = vpack.c.b16 %v2040_v12, %v2040_v12  ;;  %v1992_v62 = vunpack.c.l.b16 %v4406_v30  ;;  %vm2558_vm3 = vcmask 523264  }
 0x6bf   : > { %v1736_v40 = vmul.f32 %v3294_v35, %v1735_v37  ;;  %v1733_v43 = vsel %vm1732_vm15, %v3292_v29, %v1729_v36  ;;  %v1925_v0 = vsel %vm1125_vm1, %v1863_v63, 0  ;;  %v2064_v16 = vunpack.c.l.b16 %v1863_v63  ;;  %v1854_v37 = vld [vmem:[%s4146_s27] sm:$0x1] }
 0x6c0   : > { %v1744_v46 = vmul.f32 %v1733_v43, %v1710_v50  ;;  %1934 = vmatpush.bf16.xpose.msrb.mxu3 %v1925_v0  ;;  %v1846_v52 = vpop.permute.xlu1 %1845  ;;  %vm1855_vm6 = vcmp.ne.f32.partialorder %v1854_v37, 0.0  ;;  %v1993_v0 = vpack.c.b16 %v1992_v62, %v1992_v62  ;;  %v2979_v37 = vld [vmem:[%s4146_s27 + $0x1] sm:$0x1] }
 0x6c1   : > { %v1737_v44 = vmul.f32 0.5, %v1736_v40  ;;  %v1861_v4 = vpack.c.bf16 %v1846_v52, %v1846_v52  ;;  %v2065_v50 = vpack.c.b16 %v2064_v16, %v2064_v16  ;;  %v1940_v39 = vsel %vm1855_vm6, 1, %v3810_v28 }
 0x6c2   : > { %v1750_v55 = vmul.f32 %v3246_v45, %v1744_v46  ;;  %v1941_v40 = vperm.slane %v1940_v39, 0  ;;  %vm2128_vm8 = vcmp.ne.f32.partialorder %v2979_v37, 0.0 }
 0x6c3   : > { %v1738_v9 = vsub.f32 1.5, %v1737_v44  ;;  %v1887_v7 = vsel %vm1125_vm1, %v1861_v4, 0  ;;  %v2016_v17 = vunpack.c.l.b16 %v1861_v4 }
 0x6c4   : > { %v4415_v58 = vadd.f32 %v3247_v54, %v1750_v55  ;;  %1896 = vmatpush.bf16.xpose.msrb.mxu1 %v1887_v7  ;;  %vm4454_vm7 = vcmp.eq.s32.totalorder %v1941_v40, 1  ;;  %v2213_v40 = vsel %vm2128_vm8, 1, %v3810_v28 }
 0x6c5   : > { %v1739_v48 = vmul.f32 %v3294_v35, %v1738_v9 }
 0x6c7   : > { %v1743_v53 = vsel %vm1742_vm5, %v3294_v35, %v1739_v48 }
 0x6c8   : > { %v1745_v56 = vmul.f32 %v1743_v53, %v1711_v14  ;;  %v2017_v14 = vpack.c.b16 %v2016_v17, %v2016_v17  ;;  %v2121_v20 = vpop.permute.xlu1 %2120 }
 0x6c9   : > { %v4440_v21 = vpack.c.bf16 %v2121_v20, %v2121_v20 }
 0x6ca   : > { %v1751_v47 = vmul.f32 %v3246_v45, %v1745_v56 }
 0x6cb   : > { %v2179_v23 = vsel %vm1125_vm1, %v4440_v21, 0  ;;  %v2313_v62 = vunpack.c.l.b16 %v4440_v21 }
 0x6cc   : > { %v4417_v59 = vadd.f32 %v3247_v54, %v1751_v47 }
 0x6ce   : > { %v1758_v60 = vpack.c.bf16 %v4417_v59, %v4415_v58 }
 0x6d0   : > { %2961 = vmatmul.msk.bf16.vlgmr.msra.gmra.mxu2 %vm1082_vm0, %v1758_v60 }
 0x753   : > { %v1791_v8 = vpop.f32.mrf.mxu2 }
 0x754   : > { %v1792_v3 = vadd.f32 %v3249_v5, %v1791_v8 }
 0x756   : > { %v1856_v13 = vpack.c.bf16 %v1792_v3, %v1792_v3  ;;  %1841 = vrot.lane.b32.xlu0 %v1792_v3, %s3805_s24  ;;  %1838 = vrot.lane.b32.xlu2 %v1792_v3, %s3807_s14 }
 0x758   : > { %2971 = vmatmul.msk.bf16.vlgmr.msrb.gmra.mxu0 %vm1125_vm1, %v1856_v13 }
 0x75b   : > { %v1793_v6 = vpop.f32.mrf.mxu2 }
 0x75c   : > { %v4433_v61 = vadd.f32 %v3249_v5, %v1793_v6  ;;  %v4494_v6 = vpack.c.bf16 %v4411_v41, %v4411_v41 }
 0x75e   : > { %2066 = vrot.lane.b32.xlu0 %v2065_v50, %s3808_s4  ;;  %1835 = vrot.lane.b32.xlu2 %v1792_v3, %s3806_s0 }
 0x766   : > { %2123 = vrot.lane.b32.xlu0 %v4411_v41, %s3805_s24  ;;  %2042 = vrot.lane.b32.xlu2 %v2041_v42, %s3808_s4 }
 0x76e   : > { %2110 = vrot.lane.b32.xlu0 %v4433_v61, %s3807_s14  ;;  %2018 = vrot.lane.b32.xlu2 %v2017_v14, %s3808_s4 }
 0x7b0   : > { %v1839_v15 = vpop.permute.xlu2 %1838 }
 0x7b1   : > { %v1858_v10 = vpack.c.bf16 %v1839_v15, %v1839_v15 }
 0x7b3   : > { %2973 = vmatmul.msk.bf16.vlgmr.msrb.gmra.mxu2 %vm1125_vm1, %v1858_v10  ;;  %v2141_v10 = vsel %vm1125_vm1, %v4494_v6, 0 }
 0x7b8   : > { %v1836_v18 = vpop.permute.xlu2 %1835 }
 0x7b9   : > { %v1857_v19 = vpack.c.bf16 %v1836_v18, %v1836_v18 }
 0x7bb   : > { %2972 = vmatmul.msk.bf16.vlgmr.msrb.gmra.mxu1 %vm1125_vm1, %v1857_v19 }
 0x7c0   : > { %v2043_v22 = vpop.permute.xlu2 %2042 }
 0x7c1   : > { %v2048_v38 = vsel %vm1272_vm2, %v2043_v22, 0 }
 0x7c2   : > { %2057 = vmatpush.bf16.msra.mxu2 %v2048_v38 }
 0x7c6   : > { %2188 = vmatpush.bf16.xpose.msrb.mxu2 %v2179_v23 }
 0x7c8   : > { %v1842_v25 = vpop.permute.xlu0 %1841  ;;  %v2019_v27 = vpop.permute.xlu2 %2018 }
 0x7c9   : > { %v1859_v29 = vpack.c.bf16 %v1842_v25, %v1842_v25  ;;  %v2024_v24 = vsel %vm1272_vm2, %v2019_v27, 0 }
 0x7ca   : > { %2033 = vmatpush.bf16.msra.mxu1 %v2024_v24 }
 0x7cb   : > { %2974 = vmatmul.msk.bf16.vlgmr.msrb.gmra.mxu3 %vm1125_vm1, %v1859_v29 }
 0x7d0   : > { %v2067_v26 = vpop.permute.xlu0 %2066 }
 0x7d1   : > { %v2072_v31 = vsel %vm1272_vm2, %v2067_v26, 0 }
 0x7d2   : > { %2081 = vmatpush.bf16.msra.mxu3 %v2072_v31 }
 0x7d5   : > { %v1879_v32 = vpop.f32.mrf.mxu0 }
 0x7d6   : > { %v1943_v1 = vsel %vm4454_vm7, %v1879_v32, -1e+30 }
 0x7d7   : > { %v1947_v2 = vsel %vm1125_vm1, %v1943_v1, -inf }
 0x7d8   : > { %v2124_v33 = vpop.permute.xlu0 %2123 }
 0x7d9   : > { %v4448_v34 = vpack.c.bf16 %v2124_v33, %v2124_v33 }
 0x7db   : > { %v2198_v35 = vsel %vm1125_vm1, %v4448_v34, 0 }
 0x7dc   : > { %2207 = vmatpush.bf16.xpose.msrb.mxu3 %v2198_v35  ;;  %v2129_v35 = vpack.c.bf16 %v4433_v61, %v4433_v61 }
 0x7dd   : > { %v1881_v36 = vpop.f32.mrf.mxu0 }
 0x7e0   : > { %v2111_v51 = vpop.permute.xlu0 %2110 }
 0x7e1   : > { %v2131_v38 = vpack.c.bf16 %v2111_v51, %v2111_v51 }
 0x836   : > { %v1917_v44 = vpop.f32.mrf.mxu2 }
 0x837   : > { %v1945_v9 = vsel %vm4454_vm7, %v1917_v44, -1e+30  ;;  %v2214_v44 = vperm.slane %v2213_v40, 0 }
 0x838   : > { %v1898_v45 = vpop.f32.mrf.mxu1  ;;  %v1953_v46 = vsel %vm1125_vm1, %v1945_v9, -inf }
 0x839   : > { %v1944_v48 = vsel %vm4454_vm7, %v1898_v45, -1e+30  ;;  %1954 = vmax.xlane.f32.xlu0 %v1953_v46  ;;  %vm4521_vm9 = vcmp.eq.s32.totalorder %v2214_v44, 1 }
 0x83a   : > { %v1950_v53 = vsel %vm1125_vm1, %v1944_v48, -inf }
 0x83b   : > { %1951 = vmax.xlane.f32.xlu2 %v1950_v53 }
 0x83e   : > { %v1919_v54 = vpop.f32.mrf.mxu2 }
 0x840   : > { %v1900_v55 = vpop.f32.mrf.mxu1 }
 0x84d   : > { %2107 = vrot.lane.b32.xlu0 %v4433_v61, %s3806_s0 }
 0x84e   : > { %v1936_v56 = vpop.f32.mrf.mxu3 }
 0x84f   : > { %v1946_v47 = vsel %vm4454_vm7, %v1936_v56, -1e+30 }
 0x850   : > { %v1956_v60 = vsel %vm1125_vm1, %v1946_v47, -inf }
 0x851   : > { %1957 = vmax.xlane.f32.xlu1 %v1956_v60 }
 0x853   : > { %2117 = vrot.lane.b32.xlu2 %v4411_v41, %s3806_s0  ;;  %s4774_s0 = sld [smem:[#allocation51_spill]] }
 0x856   : > { %v1938_v63 = vpop.f32.mrf.mxu3 }
 0x857   : > { %v2337_v63 = vunpack.c.l.b16 %v4448_v34 }
 0x85b   : > { %1994 = vrot.lane.b32.xlu2 %v1993_v0, %s3808_s4  ;;  %v2314_v0 = vpack.c.b16 %v2313_v62, %v2313_v62 }
 0x86a   : > { %2113 = vrot.lane.b32.xlu1 %v4433_v61, %s3805_s24  ;;  %s2650_s24 = scalar_lea.hbm %s4778_s11, %s3044_s3 }
 0x86b   : > { %s2653_s14 = sshll.u32 %s2650_s24, 4  ;;  %s2654_s14 = int_to_ptr.hbm [resolvable:$true] %s2653_s14 }
 0x894   : > { %1948 = vmax.xlane.f32.xlu1 %v1947_v2 }
 0x8ac   : > { %v1955_v52 = vpop.xlane.xlu0 %1954 }
 0x8ad   : > { %v1961_v4 = vsub.f32 %v1945_v9, %v1955_v52 }
 0x8ae   : > { %v1952_v5 = vpop.xlane.xlu2 %1951 }
 0x8af   : > { %v1967_v7 = vmul.f32 1.442695, %v1961_v4  ;;  %v1960_v8 = vsub.f32 %v1944_v48, %v1952_v5  ;;  %v2265_v4 = vunpack.c.l.b16 %v4494_v6 }
 0x8b1   : > { %3295 = vpow2.f32 %v1967_v7  ;;  %v1965_v30 = vmul.f32 1.442695, %v1960_v8  ;;  %v2266_v5 = vpack.c.b16 %v2265_v4, %v2265_v4 }
 0x8b3   : > { %3297 = vpow2.f32 %v1965_v30 }
 0x8b6   : > { %v2118_v3 = vpop.permute.xlu2 %2117 }
 0x8b7   : > { %v4478_v13 = vpop.eup %3295  ;;  %v4480_v16 = vpack.c.bf16 %v2118_v3, %v2118_v3 }
 0x8b8   : > { %v1989_v50 = vpack.c.bf16 %v4478_v13, %v4478_v13 }
 0x8b9   : > { %v4484_v12 = vpop.eup %3297  ;;  %v2160_v42 = vsel %vm1125_vm1, %v4480_v16, 0  ;;  %v2289_v21 = vunpack.c.l.b16 %v4480_v16  ;;  %v1977_v16 = vsel %vm1125_vm1, %v4478_v13, 0.0 }
 0x8ba   : > { %v1988_v17 = vpack.c.bf16 %v4484_v12, %v4484_v12  ;;  %2977 = vmatmul.msk.bf16.vlgmr.msra.gmra.mxu2 %vm1125_vm1, %v1989_v50  ;;  %2169 = vmatpush.bf16.xpose.msrb.mxu1 %v2160_v42 }
 0x8bb   : > { %v2290_v34 = vpack.c.b16 %v2289_v21, %v2289_v21 }
 0x8bc   : > { %2976 = vmatmul.msk.bf16.vlgmr.msra.gmra.mxu1 %vm1125_vm1, %v1988_v17  ;;  %v1974_v17 = vsel %vm1125_vm1, %v4484_v12, 0.0 }
 0x8be   : > { %v1995_v14 = vpop.permute.xlu2 %1994 }
 0x8bf   : > { %v2000_v15 = vsel %vm1272_vm2, %v1995_v14, 0  ;;  %v2108_v20 = vpop.permute.xlu0 %2107 }
 0x8c0   : > { %2009 = vmatpush.bf16.msra.mxu0 %v2000_v15  ;;  %v2130_v23 = vpack.c.bf16 %v2108_v20, %v2108_v20 }
 0x8c4   : > { %2150 = vmatpush.bf16.xpose.msrb.mxu0 %v2141_v10  ;;  %v1958_v18 = vpop.xlane.xlu1 %1957 }
 0x8c5   : > { %v1962_v19 = vsub.f32 %v1946_v47, %v1958_v18 }
 0x8c7   : > { %v1969_v22 = vmul.f32 1.442695, %v1962_v19 }
 0x8c9   : > { %3299 = vpow2.f32 %v1969_v22 }
 0x8ca   : > { %2982 = vmatmul.msk.bf16.vlgmr.msrb.gmra.mxu2 %vm1125_vm1, %v2131_v38 }
 0x8cc   : > { %2981 = vmatmul.msk.bf16.vlgmr.msrb.gmra.mxu1 %vm1125_vm1, %v2130_v23 }
 0x8cf   : > { %v4501_v41 = vpop.eup %3299 }
 0x8d0   : > { %v1990_v25 = vpack.c.bf16 %v4501_v41, %v4501_v41  ;;  %v1980_v14 = vsel %vm1125_vm1, %v4501_v41, 0.0 }
 0x8d2   : > { %2978 = vmatmul.msk.bf16.vlgmr.msra.gmra.mxu3 %vm1125_vm1, %v1990_v25 }
 0x8dc   : > { %v2114_v27 = vpop.permute.xlu1 %2113 }
 0x8dd   : > { %v2132_v29 = vpack.c.bf16 %v2114_v27, %v2114_v27 }
 0x8e2   : > { %2983 = vmatmul.msk.bf16.vlgmr.msrb.gmra.mxu3 %vm1125_vm1, %v2132_v29 }
 0x907   : > { %v1949_v24 = vpop.xlane.xlu1 %1948 }
 0x908   : > { %v1959_v26 = vsub.f32 %v1943_v1, %v1949_v24  ;;  %v2338_v1 = vpack.c.b16 %v2337_v63, %v2337_v63 }
 0x90a   : > { %v1963_v31 = vmul.f32 1.442695, %v1959_v26 }
 0x90c   : > { %3301 = vpow2.f32 %v1963_v31 }
 0x912   : > { %v4507_v32 = vpop.eup %3301 }
 0x913   : > { %v1987_v33 = vpack.c.bf16 %v4507_v32, %v4507_v32  ;;  %v1971_v29 = vsel %vm1125_vm1, %v4507_v32, 0.0 }
 0x915   : > { %2975 = vmatmul.msk.bf16.vlgmr.msra.gmra.mxu0 %vm1125_vm1, %v1987_v33 }
 0x925   : > { %2980 = vmatmul.msk.bf16.vlgmr.msrb.gmra.mxu0 %vm1125_vm1, %v2129_v35 }
 0x939   : > { %v4515_v36 = vpop.f32.mrf.mxu1 }
 0x93d   : > { %v4518_v39 = vpop.f32.mrf.mxu2 }
 0x941   : > { %v2037_v43 = vpop.f32.mrf.mxu1 }
 0x945   : > { %v2061_v9 = vpop.f32.mrf.mxu2 }
 0x949   : > { %v2171_v46 = vpop.f32.mrf.mxu1 }
 0x94a   : > { %v2217_v61 = vsel %vm4521_vm9, %v2171_v46, -1e+30 }
 0x94b   : > { %v2223_v48 = vsel %vm1125_vm1, %v2217_v61, -inf }
 0x94c   : > { %2224 = vmax.xlane.f32.xlu1 %v2223_v48 }
 0x94d   : > { %v2190_v53 = vpop.f32.mrf.mxu2 }
 0x94e   : > { %v2218_v54 = vsel %vm4521_vm9, %v2190_v53, -1e+30 }
 0x94f   : > { %v2226_v28 = vsel %vm1125_vm1, %v2218_v54, -inf }
 0x950   : > { %2227 = vmax.xlane.f32.xlu0 %v2226_v28 }
 0x951   : > { %v2173_v55 = vpop.f32.mrf.mxu1 }
 0x955   : > { %v4531_v56 = vpop.f32.mrf.mxu3  ;;  %v2192_v47 = vpop.f32.mrf.mxu2 }
 0x95d   : > { %v2085_v60 = vpop.f32.mrf.mxu3 }
 0x964   : > { %2315 = vrot.lane.b32.xlu0 %v2314_v0, %s3808_s4 }
 0x965   : > { %v2209_v2 = vpop.f32.mrf.mxu3  ;;  %2339 = vrot.lane.b32.xlu1 %v2338_v1, %s3808_s4 }
 0x966   : > { %v2219_v51 = vsel %vm4521_vm9, %v2209_v2, -1e+30 }
 0x967   : > { %v2229_v52 = vsel %vm1125_vm1, %v2219_v51, -inf }
 0x968   : > { %2230 = vmax.xlane.f32.xlu2 %v2229_v52 }
 0x96d   : > { %v2211_v7 = vpop.f32.mrf.mxu3  ;;  %2267 = vrot.lane.b32.xlu1 %v2266_v5, %s3808_s4 }
 0x980   : > { %2291 = vrot.lane.b32.xlu2 %v2290_v34, %s3808_s4  ;;  %s3709_s4 = sshra.s32 %s2654_s14, 4  ;;  %s3710_s4 = int_to_ptr.hbm [resolvable:$true] %s3709_s4 }
 0x981   : > { %p3716_p9 = scmp.lt.s32.totalorder %s3710_s4, %s4778_s11 }
 0x992   : > { %v4544_v8 = vpop.f32.mrf.mxu0 }
 0x99a   : > { %v2013_v30 = vpop.f32.mrf.mxu0 }
 0x9a2   : > { %v2152_v3 = vpop.f32.mrf.mxu0 }
 0x9a3   : > { %v2216_v50 = vsel %vm4521_vm9, %v2152_v3, -1e+30 }
 0x9a4   : > { %v2220_v42 = vsel %vm1125_vm1, %v2216_v50, -inf }
 0x9a5   : > { %2221 = vmax.xlane.f32.xlu0 %v2220_v42 }
 0x9a9   : > { %1975 = vadd.xlane.f32.xlu2 %v1974_v17 }
 0x9aa   : > { %v2154_v6 = vpop.f32.mrf.mxu0 }
 0x9ad   : > { %1978 = vadd.xlane.f32.xlu0 %v1977_v16 }
 0x9b1   : > { %1981 = vadd.xlane.f32.xlu2 %v1980_v14 }
 0x9bf   : > { %v2225_v15 = vpop.xlane.xlu1 %2224 }
 0x9c0   : > { %v2233_v10 = vsub.f32 %v2217_v61, %v2225_v15 }
 0x9c2   : > { %v2238_v18 = vmul.f32 1.442695, %v2233_v10 }
 0x9c3   : > { %v2228_v19 = vpop.xlane.xlu0 %2227 }
 0x9c4   : > { %3303 = vpow2.f32 %v2238_v18  ;;  %v2234_v20 = vsub.f32 %v2218_v54, %v2228_v19 }
 0x9c6   : > { %v2240_v22 = vmul.f32 1.442695, %v2234_v20 }
 0x9c8   : > { %3305 = vpow2.f32 %v2240_v22 }
 0x9ca   : > { %v3304_v38 = vpop.eup %3303 }
 0x9cb   : > { %v2247_v12 = vsel %vm1125_vm1, %v3304_v38, 0.0  ;;  %v2261_v9 = vpack.c.bf16 %v3304_v38, %v3304_v38  ;;  %v3036_v38 = vld [vmem:[%s4697_s15] sm:$0xff] }
 0x9cc   : > { %2248 = vadd.xlane.f32.xlu1 %v2247_v12 }
 0x9ce   : > { %v3306_v23 = vpop.eup %3305 }
 0x9cf   : > { %v2250_v13 = vsel %vm1125_vm1, %v3306_v23, 0.0  ;;  %v2262_v26 = vpack.c.bf16 %v3306_v23, %v3306_v23 }
 0x9d0   : > { %2251 = vadd.xlane.f32.xlu0 %v2250_v13 }
 0x9d6   : > { %v2316_v25 = vpop.permute.xlu0 %2315 }
 0x9d7   : > { %v2321_v41 = vsel %vm1272_vm2, %v2316_v25, 0  ;;  %v2340_v27 = vpop.permute.xlu1 %2339 }
 0x9d8   : > { %v2345_v24 = vsel %vm1272_vm2, %v2340_v27, 0  ;;  %2330 = vmatpush.bf16.msra.mxu2 %v2321_v41  ;;  %1972 = vadd.xlane.f32.xlu0 %v1971_v29 }
 0x9d9   : > { %2354 = vmatpush.bf16.msra.mxu3 %v2345_v24 }
 0x9db   : > { %2986 = vmatmul.msk.bf16.vlgmr.msra.gmra.mxu2 %vm1125_vm1, %v2262_v26  ;;  %v2231_v31 = vpop.xlane.xlu2 %2230 }
 0x9dc   : > { %v2235_v33 = vsub.f32 %v2219_v51, %v2231_v31 }
 0x9de   : > { %v2242_v35 = vmul.f32 1.442695, %v2235_v33 }
 0x9df   : > { %v2268_v37 = vpop.permute.xlu1 %2267 }
 0x9e0   : > { %3307 = vpow2.f32 %v2242_v35  ;;  %v2273_v40 = vsel %vm1272_vm2, %v2268_v37, 0 }
 0x9e1   : > { %2282 = vmatpush.bf16.msra.mxu0 %v2273_v40 }
 0x9e3   : > { %v2292_v43 = vpop.permute.xlu2 %2291 }
 0x9e4   : > { %v2297_v44 = vsel %vm1272_vm2, %v2292_v43, 0 }
 0x9e5   : > { %2306 = vmatpush.bf16.msra.mxu1 %v2297_v44 }
 0x9e6   : > { %v3308_v32 = vpop.eup %3307 }
 0x9e7   : > { %v2263_v45 = vpack.c.bf16 %v3308_v32, %v3308_v32  ;;  %v2253_v46 = vsel %vm1125_vm1, %v3308_v32, 0.0 }
 0x9e8   : > { %2985 = vmatmul.msk.bf16.vlgmr.msra.gmra.mxu1 %vm1125_vm1, %v2261_v9  ;;  %2254 = vadd.xlane.f32.xlu1 %v2253_v46 }
 0x9e9   : > { %2987 = vmatmul.msk.bf16.vlgmr.msra.gmra.mxu3 %vm1125_vm1, %v2263_v45 }
 0xa18   : > { %v2222_v61 = vpop.xlane.xlu0 %2221 }
 0xa19   : > { %v2232_v48 = vsub.f32 %v2216_v50, %v2222_v61  ;;  %v3250_v61 = vld [vmem:[%s4698_s16] ss:$0 sm:$0xff] }
 0xa1b   : > { %v2236_v53 = vmul.f32 1.442695, %v2232_v48 }
 0xa1c   : > { %v1976_v62 = vpop.xlane.xlu2 %1975 }
 0xa1d   : > { %3309 = vpow2.f32 %v2236_v53 }
 0xa20   : > { %v1979_v47 = vpop.xlane.xlu0 %1978 }
 0xa21   : > { %3311 = vrcp.f32 %v1979_v47 }
 0xa23   : > { %v3310_v54 = vpop.eup %3309 }
 0xa24   : > { %v2260_v28 = vpack.c.bf16 %v3310_v54, %v3310_v54  ;;  %v2244_v55 = vsel %vm1125_vm1, %v3310_v54, 0.0  ;;  %v1982_v4 = vpop.xlane.xlu2 %1981 }
 0xa25   : > { %2245 = vadd.xlane.f32.xlu2 %v2244_v55 }
 0xa26   : > { %2984 = vmatmul.msk.bf16.vlgmr.msra.gmra.mxu0 %vm1125_vm1, %v2260_v28 }
 0xa27   : > { %v3312_v0 = vpop.eup %3311 }
 0xa28   : > { %v2089_v51 = vmul.f32 %v3312_v0, %v4518_v39 }
 0xa3f   : > { %v2249_v63 = vpop.xlane.xlu1 %2248 }
 0xa43   : > { %v2252_v60 = vpop.xlane.xlu0 %2251 }
 0xa44   : > { %3313 = vrcp.f32 %v2252_v60 }
 0xa45   : > { %3315 = vrcp.f32 %v1976_v62 }
 0xa46   : > { %3317 = vrcp.f32 %v2249_v63 }
 0xa47   : > { %3319 = vrcp.f32 %v1982_v4 }
 0xa4a   : > { %v3314_v1 = vpop.eup %3313 }
 0xa4b   : > { %v3316_v7 = vpop.eup %3315  ;;  %v1973_v12 = vpop.xlane.xlu0 %1972 }
 0xa4c   : > { %v3318_v34 = vpop.eup %3317  ;;  %v2088_v3 = vmul.f32 %v3316_v7, %v4515_v36  ;;  %v3037_v36 = vld [vmem:[%s4697_s15 + $0x8] sm:$0xff] }
 0xa4d   : > { %v3320_v6 = vpop.eup %3319  ;;  %2409 = vmatpush.bf16.msrb.mxu0 %v3037_v36 }
 0xa4e   : > { %v2090_v14 = vmul.f32 %v3320_v6, %v4531_v56 }
 0xa51   : > { %2410 = vmatpush.bf16.msrb.mxu0 %v3036_v38 }
 0xa5b   : > { %v2255_v21 = vpop.xlane.xlu1 %2254 }
 0xa5c   : > { %3321 = vrcp.f32 %v2255_v21 }
 0xa5d   : > { %3323 = vrcp.f32 %v1973_v12 }
 0xa5e   : > { %v2332_v2 = vpop.f32.mrf.mxu2 }
 0xa5f   : > { %v2362_v52 = vmul.f32 %v3314_v1, %v2332_v2 }
 0xa61   : > { %v3234_v5 = vpack.i.bf16 %v2362_v52, %v2089_v51 }
 0xa62   : > { %v3322_v39 = vpop.eup %3321 }
 0xa63   : > { %3235 = vrot.lane.b32.xlu0 %v3234_v5, %s3813_s10  ;;  %v3324_v23 = vpop.eup %3323 }
 0xa64   : > { %v2087_v29 = vmul.f32 %v3324_v23, %v4544_v8  ;;  %v3251_v23 = vld [vmem:[%s4699_s17] ss:$0 sm:$0xff] }
 0xa65   : > { %v2308_v30 = vpop.f32.mrf.mxu1 }
 0xa66   : > { %v2361_v50 = vmul.f32 %v3318_v34, %v2308_v30  ;;  %v2334_v42 = vpop.f32.mrf.mxu2 }
 0xa67   : > { %v3038_v42 = vld [vmem:[#allocation20] sm:$0xff] }
 0xa68   : > { %v3229_v17 = vpack.i.bf16 %v2361_v50, %v2088_v3 }
 0xa6a   : > { %3230 = vrot.lane.b32.xlu1 %v3229_v17, %s3812_s7 }
 0xa6c   : > { %v2356_v16 = vpop.f32.mrf.mxu3 }
 0xa6d   : > { %v2363_v15 = vmul.f32 %v3322_v39, %v2356_v16  ;;  %v2310_v10 = vpop.f32.mrf.mxu1 }
 0xa6f   : > { %v3239_v18 = vpack.i.bf16 %v2363_v15, %v2090_v14 }
 0xa71   : > { %3240 = vrot.lane.b32.xlu2 %v3239_v18, %s3811_s22 }
 0xa74   : > { %v2358_v19 = vpop.f32.mrf.mxu3 }
 0xa98   : > { %v2246_v56 = vpop.xlane.xlu2 %2245 }
 0xa99   : > { %3325 = vrcp.f32 %v2246_v56 }
 0xa9f   : > { %v3326_v25 = vpop.eup %3325 }
 0xaa3   : > { %v2284_v20 = vpop.f32.mrf.mxu0 }
 0xaa4   : > { %v2360_v24 = vmul.f32 %v3326_v25, %v2284_v20 }
 0xaab   : > { %v2286_v22 = vpop.f32.mrf.mxu0 }
 0xacb   : > { %v3241_v41 = vpop.permute.xlu2 %3240 }
 0xacc   : > { %v3243_v37 = vunpack.i.h.bf16 %v3241_v41  ;;  %v3242_v40 = vunpack.i.l.bf16 %v3241_v41 }
 0xad5   : > { %v3236_v13 = vpop.permute.xlu0 %3235 }
 0xad6   : > { %v3238_v33 = vunpack.i.h.bf16 %v3236_v13  ;;  %v3237_v35 = vunpack.i.l.bf16 %v3236_v13 }
 0xadc   : > { %v3231_v27 = vpop.permute.xlu1 %3230 }
 0xadd   : > { %v3233_v26 = vunpack.i.h.bf16 %v3231_v27  ;;  %v3232_v31 = vunpack.i.l.bf16 %v3231_v27  ;;  %v3252_v27 = vld [vmem:[%s4772_s6] ss:$0 sm:$0xff]  ;;  %s4776_s6 = sld [smem:[#allocation54_spill]] }
 0xadf   : > { %v2103_v43 = vsel %vm1125_vm1, %v2087_v29, %v3232_v31  ;;  %v2376_v44 = vsel %vm1125_vm1, %v2360_v24, %v3233_v26 }
 0xae0   : > { %v2104_v32 = vsel %vm1369_vm10, %v2103_v43, %v3237_v35  ;;  %v2377_v9 = vsel %vm1369_vm10, %v2376_v44, %v3238_v33  ;;  %v3041_v43 = vld [vmem:[%s4773_s21 + $0x8] sm:$0xff]  ;;  %v3040_v44 = vld [vmem:[%s4773_s21] sm:$0xff] }
 0xae1   : > { %v2105_v45 = vsel %vm1371_vm11, %v2104_v32, %v3242_v40  ;;  %v2378_v46 = vsel %vm1371_vm11, %v2377_v9, %v3243_v37  ;;  %v3043_v37 = vld [vmem:[%s4773_s21 + $0x18] sm:$0xff]  ;;  %v3042_v40 = vld [vmem:[%s4773_s21 + $0x10] sm:$0xff]  ;;  %v3253_v9 = vld [vmem:[%s4774_s0] ss:$0 sm:$0xff]  ;;  %s2651_s0 = sshll.u32 %s1027_s23, 4  ;;  %s2652_s0 = int_to_ptr.vmem [resolvable:$true] %s2651_s0 }
 0xae2   : > { %v2379_v8 = vpack.c.bf16 %v2378_v46, %v2105_v45  ;;  %2566 = vmatpush.bf16.msrb.mxu2 %v3043_v37 }
 0xae4   : > { %2996 = vmatmul.msk.bf16.vlgmr.msrb.gmra.mxu0 %vm1082_vm0, %v2379_v8 }
 0xae6   : > { %2567 = vmatpush.bf16.msrb.mxu2 %v3042_v40 }
 0xaea   : > { %2568 = vmatpush.bf16.msrb.mxu2 %v3041_v43 }
 0xaee   : > { %2569 = vmatpush.bf16.msrb.mxu2 %v3040_v44 }
 0xb61   : > { %v2412_v48 = vpop.f32.mrf.mxu0 }
 0xb62   : > { %v2413_v53 = vadd.f32 %v3250_v61, %v2412_v48 }
 0xb64   : > { %v2417_v54 = vmul.f32 %v2413_v53, %v4381_v49 }
 0xb66   : > { %v2419_v28 = vadd.f32 %v2417_v54, %v4415_v58 }
 0xb68   : > { %v2421_v55 = vsel %vm1082_vm0, %v2419_v28, 0.0 }
 0xb69   : > { %v2414_v47 = vpop.f32.mrf.mxu0  ;;  %2422 = vadd.xlane.f32.xlu0 %v2421_v55  ;;  %v3254_v55 = vld [vmem:[%s4775_s1] ss:$0 sm:$0xff]  ;;  %s3711_s1 = scalar_lea.hbm %s3710_s4, 16 }
 0xb6a   : > { %v2415_v60 = vadd.f32 %v3250_v61, %v2414_v47  ;;  %p3712_p1 = scmp.ne.s32.totalorder %s3710_s4, %s3711_s1 }
 0xb6c   : > { %v2418_v62 = vmul.f32 %v2415_v60, %v4386_v57  ;;  %p3713_p12 = pnand %p3712_p1, %p4078_p4 }
 0xb6e   : > { %v2420_v63 = vadd.f32 %v2418_v62, %v4417_v59  ;;  %v3039_v59 = vld [vmem:[#allocation20 + $0x8] sm:$0xff]  ;;  %p3714_p7 = pneg %p3713_p12 }
 0xb6f   : > { %2507 = vmatpush.bf16.msrb.mxu1 %v3039_v59 }
 0xb70   : > { %v2424_v0 = vsel %vm1082_vm0, %v2420_v63, 0.0 }
 0xb71   : > { %2425 = vadd.xlane.f32.xlu1 %v2424_v0 }
 0xb73   : > { %2508 = vmatpush.bf16.msrb.mxu1 %v3038_v42 }
 0xbdc   : > { %v2423_v1 = vpop.xlane.xlu0 %2422 }
 0xbdd   : > { %v2427_v2 = vmul.f32 %v2423_v1, %v4396_v11 }
 0xbdf   : > { %v2429_v51 = vsub.f32 %v2419_v28, %v2427_v2 }
 0xbe1   : > { %v2431_v52 = vmul.f32 %v2429_v51, %v2429_v51 }
 0xbe3   : > { %v2433_v4 = vsel %vm1082_vm0, %v2431_v52, 0.0 }
 0xbe4   : > { %v2426_v58 = vpop.xlane.xlu1 %2425  ;;  %2434 = vadd.xlane.f32.xlu2 %v2433_v4 }
 0xbe5   : > { %v2428_v5 = vmul.f32 %v2426_v58, %v4396_v11 }
 0xbe7   : > { %v2430_v7 = vsub.f32 %v2420_v63, %v2428_v5 }
 0xbe9   : > { %v2432_v21 = vmul.f32 %v2430_v7, %v2430_v7 }
 0xbeb   : > { %v2436_v34 = vsel %vm1082_vm0, %v2432_v21, 0.0 }
 0xbec   : > { %2437 = vadd.xlane.f32.xlu0 %v2436_v34 }
 0xc57   : > { %v2435_v30 = vpop.xlane.xlu2 %2434 }
 0xc58   : > { %v2439_v3 = vmul.f32 %v2435_v30, %v4396_v11 }
 0xc5a   : > { %v2441_v50 = vadd.f32 1e-05, %v2439_v3 }
 0xc5c   : > { %3327 = vrsqrt.f32 %v2441_v50  ;;  %vm2449_vm2 = vweird.f32 %v2441_v50 }
 0xc5f   : > { %v2438_v17 = vpop.xlane.xlu0 %2437 }
 0xc60   : > { %v2440_v6 = vmul.f32 %v2438_v17, %v4396_v11 }
 0xc62   : > { %v3328_v39 = vpop.eup %3327  ;;  %v2442_v16 = vadd.f32 1e-05, %v2440_v6 }
 0xc63   : > { %v2444_v14 = vmul.f32 %v3328_v39, %v2441_v50  ;;  %vm2450_vm1 = vweird.f32 %v3328_v39 }
 0xc64   : > { %3329 = vrsqrt.f32 %v2442_v16  ;;  %vm2451_vm10 = vmor %vm2449_vm2, %vm2450_vm1  ;;  %vm2459_vm12 = vweird.f32 %v2442_v16 }
 0xc65   : > { %v2445_v15 = vmul.f32 %v3328_v39, %v2444_v14 }
 0xc67   : > { %v2446_v10 = vmul.f32 0.5, %v2445_v15 }
 0xc69   : > { %v2447_v18 = vsub.f32 1.5, %v2446_v10 }
 0xc6a   : > { %v3330_v19 = vpop.eup %3329 }
 0xc6b   : > { %v2448_v20 = vmul.f32 %v3328_v39, %v2447_v18  ;;  %v2454_v22 = vmul.f32 %v3330_v19, %v2442_v16  ;;  %vm2460_vm11 = vweird.f32 %v3330_v19 }
 0xc6c   : > { %vm2461_vm13 = vmor %vm2459_vm12, %vm2460_vm11 }
 0xc6d   : > { %v2455_v36 = vmul.f32 %v3330_v19, %v2454_v22  ;;  %v2452_v38 = vsel %vm2451_vm10, %v3328_v39, %v2448_v20 }
 0xc6e   : > { %v2463_v13 = vmul.f32 %v2452_v38, %v2429_v51  ;;  %v3255_v38 = vld [vmem:[%s4776_s6] ss:$0 sm:$0xff]  ;;  %s3715_s6 = scalar_lea.hbm %s4778_s11, 32 }
 0xc6f   : > { %v2456_v12 = vmul.f32 0.5, %v2455_v36  ;;  %p3717_p5 = scmp.lt.s32.totalorder %s3715_s6, %s3711_s1 }
 0xc70   : > { %v2469_v29 = vmul.f32 %v3251_v23, %v2463_v13 }
 0xc71   : > { %v2457_v56 = vsub.f32 1.5, %v2456_v12  ;;  %p3718_p8 = por %p3717_p5, %p3716_p9 }
 0xc72   : > { %v2475_v31 = vadd.f32 %v3252_v27, %v2469_v29 }
 0xc73   : > { %v2458_v25 = vmul.f32 %v3330_v19, %v2457_v56  ;;  %v3256_v56 = vld [vmem:[%s4777_s12] ss:$0 sm:$0xff]  ;;  %p3719_p10 = pnand %p3718_p8, %p3714_p7 }
 0xc75   : > { %v2462_v41 = vsel %vm2461_vm13, %v3330_v19, %v2458_v25 }
 0xc76   : > { %v2464_v24 = vmul.f32 %v2462_v41, %v2430_v7 }
 0xc78   : > { %v2470_v26 = vmul.f32 %v3251_v23, %v2464_v24 }
 0xc7a   : > { %v2476_v33 = vadd.f32 %v3252_v27, %v2470_v26 }
 0xc7c   : > { %v2477_v35 = vpack.c.bf16 %v2476_v33, %v2475_v31 }
 0xc7e   : > { %3005 = vmatmul.msk.bf16.vlgmr.msrb.gmra.mxu1 %vm1082_vm0, %v2477_v35 }
 0xcfb   : > { %v2510_v32 = vpop.f32.mrf.mxu1 }
 0xcfc   : > { %v2511_v45 = vadd.f32 %v3253_v9, %v2510_v32 }
 0xcfe   : > { %v2517_v8 = vmul.f32 0.01, %v2511_v45  ;;  %vm2515_vm14 = vcmp.gt.f32.partialorder %v2511_v45, 0.0 }
 0xd00   : > { %v2519_v53 = vsel %vm2515_vm14, %v2511_v45, %v2517_v8 }
 0xd03   : > { %v2512_v46 = vpop.f32.mrf.mxu1 }
 0xd04   : > { %v2513_v61 = vadd.f32 %v3253_v9, %v2512_v46 }
 0xd06   : > { %vm2516_vm15 = vcmp.gt.f32.partialorder %v2513_v61, 0.0  ;;  %v2518_v48 = vmul.f32 0.01, %v2513_v61 }
 0xd08   : > { %v2520_v54 = vsel %vm2516_vm15, %v2513_v61, %v2518_v48 }
 0xd09   : > { %v2521_v28 = vpack.c.bf16 %v2520_v54, %v2519_v53 }
 0xd0b   : > { %3022 = vmatmul.msk.bf16.vlgmr.msrb.gmra.mxu2 %vm2558_vm3, %v2521_v28 }
 0xd8e   : > { %v2571_v47 = vpop.f32.mrf.mxu2 }
 0xd8f   : > { %v2572_v60 = vadd.f32 %v3254_v55, %v2571_v47 }
 0xd91   : > { %v2576_v62 = vmul.f32 %v2572_v60, %v4381_v49 }
 0xd93   : > { %v2578_v63 = vadd.f32 %v2576_v62, %v2475_v31 }
 0xd95   : > { %v2580_v0 = vsel %vm1082_vm0, %v2578_v63, 0.0 }
 0xd96   : > { %v2573_v1 = vpop.f32.mrf.mxu2  ;;  %2581 = vadd.xlane.f32.xlu1 %v2580_v0 }
 0xd97   : > { %v2574_v2 = vadd.f32 %v3254_v55, %v2573_v1 }
 0xd99   : > { %v2577_v51 = vmul.f32 %v2574_v2, %v4386_v57 }
 0xd9b   : > { %v2579_v52 = vadd.f32 %v2577_v51, %v2476_v33 }
 0xd9d   : > { %v2583_v4 = vsel %vm1082_vm0, %v2579_v52, 0.0 }
 0xd9e   : > { %2584 = vadd.xlane.f32.xlu2 %v2583_v4 }
 0xe09   : > { %v2582_v58 = vpop.xlane.xlu1 %2581 }
 0xe0a   : > { %v2586_v5 = vmul.f32 %v2582_v58, %v4396_v11 }
 0xe0c   : > { %v2588_v7 = vsub.f32 %v2578_v63, %v2586_v5 }
 0xe0e   : > { %v2590_v21 = vmul.f32 %v2588_v7, %v2588_v7 }
 0xe10   : > { %v2592_v34 = vsel %vm1082_vm0, %v2590_v21, 0.0 }
 0xe11   : > { %v2585_v49 = vpop.xlane.xlu2 %2584  ;;  %2593 = vadd.xlane.f32.xlu0 %v2592_v34 }
 0xe12   : > { %v2587_v59 = vmul.f32 %v2585_v49, %v4396_v11 }
 0xe14   : > { %v2589_v30 = vsub.f32 %v2579_v52, %v2587_v59 }
 0xe16   : > { %v2591_v3 = vmul.f32 %v2589_v30, %v2589_v30 }
 0xe18   : > { %v2595_v50 = vsel %vm1082_vm0, %v2591_v3, 0.0 }
 0xe19   : > { %2596 = vadd.xlane.f32.xlu1 %v2595_v50 }
 0xe84   : > { %v2594_v57 = vpop.xlane.xlu0 %2593 }
 0xe85   : > { %v2598_v42 = vmul.f32 %v2594_v57, %v4396_v11 }
 0xe87   : > { %v2600_v17 = vadd.f32 1e-05, %v2598_v42 }
 0xe89   : > { %3331 = vrsqrt.f32 %v2600_v17  ;;  %vm2608_vm5 = vweird.f32 %v2600_v17 }
 0xe8c   : > { %v2597_v6 = vpop.xlane.xlu1 %2596 }
 0xe8d   : > { %v2599_v39 = vmul.f32 %v2597_v6, %v4396_v11 }
 0xe8f   : > { %v3332_v16 = vpop.eup %3331  ;;  %v2601_v14 = vadd.f32 1e-05, %v2599_v39 }
 0xe90   : > { %v2603_v15 = vmul.f32 %v3332_v16, %v2600_v17  ;;  %vm2609_vm4 = vweird.f32 %v3332_v16 }
 0xe91   : > { %3333 = vrsqrt.f32 %v2601_v14  ;;  %vm2610_vm6 = vmor %vm2608_vm5, %vm2609_vm4  ;;  %vm2618_vm8 = vweird.f32 %v2601_v14 }
 0xe92   : > { %v2604_v10 = vmul.f32 %v3332_v16, %v2603_v15 }
 0xe94   : > { %v2605_v18 = vmul.f32 0.5, %v2604_v10 }
 0xe96   : > { %v2606_v19 = vsub.f32 1.5, %v2605_v18 }
 0xe97   : > { %v3334_v20 = vpop.eup %3333 }
 0xe98   : > { %v2607_v22 = vmul.f32 %v3332_v16, %v2606_v19  ;;  %v2613_v36 = vmul.f32 %v3334_v20, %v2601_v14  ;;  %vm2619_vm7 = vweird.f32 %v3334_v20 }
 0xe99   : > { %vm2620_vm9 = vmor %vm2618_vm8, %vm2619_vm7 }
 0xe9a   : > { %v2611_v11 = vsel %vm2610_vm6, %v3332_v16, %v2607_v22  ;;  %v2614_v12 = vmul.f32 %v3334_v20, %v2613_v36 }
 0xe9b   : > { %v2622_v23 = vmul.f32 %v2611_v11, %v2588_v7 }
 0xe9c   : > { %v2615_v13 = vmul.f32 0.5, %v2614_v12 }
 0xe9d   : > { %v2628_v25 = vmul.f32 %v3255_v38, %v2622_v23 }
 0xe9e   : > { %v2616_v41 = vsub.f32 1.5, %v2615_v13 }
 0xe9f   : > { %v2634_v27 = vadd.f32 %v3256_v56, %v2628_v25 }
 0xea0   : > { %v2617_v29 = vmul.f32 %v3334_v20, %v2616_v41 }
 0xea1   : > { %2636 = vst.msk [vmem:[%s1027_s23] sm:$0xff] %vm1082_vm0, %v2634_v27 }
 0xea2   : > { %v2621_v24 = vsel %vm2620_vm9, %v3334_v20, %v2617_v29 }
 0xea3   : > { %v2623_v26 = vmul.f32 %v2621_v24, %v2589_v30 }
 0xea5   : > { %v2629_v31 = vmul.f32 %v3255_v38, %v2623_v26 }
 0xea7   : > { %v2635_v33 = vadd.f32 %v3256_v56, %v2629_v31 }
 0xea9   : > { %2637 = vst.msk [vmem:[%s1027_s23 + $0x8] sm:$0xff] %vm1082_vm0, %v2635_v33 }
 0xeaa   : > { %3722 = shalt.err (!%p3719_p10)
}
 0xeab   : > { %s3815_s28 = smov 128  }
 0xeac   : > { %3089 = dma.vmem_to_hbm [thread:$0]  (%p4078_p4), %s2652_s0, 256, %s2654_s14, %s2639_s8, %s3815_s28, %s3815_s28, %s3812_s7  }
 0xead PF: > { %s2668_s12 = sand.u32 1, %s3777_s29   ;;  %p4779_p13 = scmp.ge.s32.totalorder %s3789_s30, 2 }
 0xeae   : > { %s2669_s13 = scalar_lea.sflag [#allocation4], %s2668_s12 }
 0xeaf   : > { %p3130_p11 = pnand %p4779_p13, %p4082_p6 }
 0xeb1   : > { %p3131_p0 = pneg %p3130_p11 }
 0xeb3   : > { %3772 = dma.done.wait (%p3131_p0), %s2669_s13, 256  }
 0xeb4   : > { %3774 = vsyncadd (%p3131_p0), %s2669_s13, 4294967040  ;;  %s4780_s3 = sld [smem:[#allocation32_spill]]  ;;  %p46_p2 = scmp.ge.s32.totalorder %s4052_s18, 4  }
 0xeb5   : > { %s4781_s6 = sld [smem:[#allocation33_spill]]  ;;  %s4782_s29 = smov %s3781_s2 }
 0xeb6   : > { %s4784_s30 = smov %s4052_s18  ;;  %48 = sbr.rel (!%p46_p2) target bundleno = 36 (0x24), region = 229 }
 0xeba   : > { %s4783_s2 = smov %s4780_s3 }
 0xebb   :  { %2675 = vsyncpa [#allocation3], 1 }
 0xebc   :  { %2677 = vsyncpa [#allocation3 + $0x1], 1 }
 0xebd   :  { %2678 = vsyncpa [#allocation6], 1 }
 0xebe   :  { %2680 = vsyncpa [#allocation6 + $0x1], 1 }
 0xebf   :  { %2681 = vsyncpa [#allocation9], 1 }
 0xec0   :  { %2682 = vsyncpa [#allocation12], 1 }
 0xec1   :  { %2683 = vsyncpa [#allocation15], 1 }
 0xec2   :  { %2684 = vsyncpa [#allocation18], 1 }
 0xec3   :  { %2685 = vsyncpa [#allocation21], 1 }
 0xec4   :  { %2686 = vsyncpa [#allocation4], 1 }
 0xec5   :  { %2688 = vsyncpa [#allocation4 + $0x1], 1 }

// kernel: tpu_custom_call.1
= control target key start
LH: loop header
LB: loop body
LE: loop exit
PB: predicated region body
PF: predicated region fallthrough
CT: control target
= control target key end

     0   :  { %s4682_s0 = inlined_call_operand.vmem [shape: f32[4,8,32], index: 0, kind: input, shape index: {}]   ;;  %s4683_s1 = inlined_call_operand.vmem [shape: f32[4,8,32], index: 1, kind: input, shape index: {}]   ;;  %s4684_s2 = inlined_call_operand.vmem [shape: f32[4,8,1], index: 2, kind: input, shape index: {}]   ;;  %s4685_s3 = inlined_call_operand.hbm [shape: f32[4,1,8], index: 3, kind: input, shape index: {}]   ;;  %s4686_s4 = inlined_call_operand.hbm [shape: f32[4,1,8], index: 4, kind: input, shape index: {}]   ;;  %s4687_s5 = inlined_call_operand.hbm [shape: bf16[32,96], index: 5, kind: input, shape index: {}]   ;;  %s4688_s6 = inlined_call_operand.vmem [shape: f32[1,96], index: 6, kind: input, shape index: {}]   ;;  %s4689_s7 = inlined_call_operand.hbm [shape: bf16[32,32], index: 7, kind: input, shape index: {}]   ;;  %s4690_s8 = inlined_call_operand.hbm [shape: f32[1,32], index: 8, kind: input, shape index: {}]   ;;  %s4691_s9 = inlined_call_operand.hbm [shape: f32[1,32], index: 9, kind: input, shape index: {}]   ;;  %s4692_s10 = inlined_call_operand.hbm [shape: f32[1,32], index: 10, kind: input, shape index: {}]   ;;  %s4693_s11 = inlined_call_operand.hbm [shape: bf16[32,32], index: 11, kind: input, shape index: {}]   ;;  %s4694_s12 = inlined_call_operand.hbm [shape: f32[1,32], index: 12, kind: input, shape index: {}]   ;;  %s4695_s13 = inlined_call_operand.hbm [shape: bf16[32,64], index: 13, kind: input, shape index: {}]   ;;  %s4696_s14 = inlined_call_operand.hbm [shape: f32[1,64], index: 14, kind: input, shape index: {}]   ;;  %s4697_s15 = inlined_call_operand.vmem [shape: bf16[32,32], index: 15, kind: input, shape index: {}]   ;;  %s4698_s16 = inlined_call_operand.vmem [shape: f32[1,32], index: 16, kind: input, shape index: {}]   ;;  %s4699_s17 = inlined_call_operand.vmem [shape: f32[1,32], index: 17, kind: input, shape index: {}]   ;;  %s4700_s18 = inlined_call_operand.vmem [shape: f32[1,32], index: 18, kind: input, shape index: {}]   ;;  %s4701_s19 = inlined_call_operand.hbm [shape: bf16[32,64], index: 19, kind: input, shape index: {}]   ;;  %s4702_s20 = inlined_call_operand.vmem [shape: f32[1,64], index: 20, kind: input, shape index: {}]   ;;  %s4703_s21 = inlined_call_operand.vmem [shape: bf16[64,32], index: 21, kind: input, shape index: {}]   ;;  %s4704_s22 = inlined_call_operand.vmem [shape: f32[1,32], index: 22, kind: input, shape index: {}]   ;;  %s4705_s23 = inlined_call_operand.vmem [shape: f32[1,32], index: 23, kind: input, shape index: {}]   ;;  %s4706_s24 = inlined_call_operand.vmem [shape: f32[1,32], index: 24, kind: input, shape index: {}]   ;;  %s4707_s25 = inlined_call_operand.hbm [shape: f32[4,8,32], index: 25, kind: output, shape index: {}]  }
   0x1   :  { %4715 = sst [smem:[#allocation34_spill]] %s4682_s0 }
   0x2   :  { %4716 = sst [smem:[#allocation35_spill]] %s4683_s1 }
   0x3   :  { %4717 = sst [smem:[#allocation36_spill]] %s4684_s2 }
   0x4   :  { %4718 = sst [smem:[#allocation37_spill]] %s4685_s3 }
   0x5   :  { %4719 = sst [smem:[#allocation38_spill]] %s4686_s4 }
   0x6   :  { %4720 = sst [smem:[#allocation39_spill]] %s4687_s5 }
   0x7   :  { %4721 = sst [smem:[#allocation40_spill]] %s4688_s6 }
   0x8   :  { %4722 = sst [smem:[#allocation41_spill]] %s4689_s7 }
   0x9   :  { %4723 = sst [smem:[#allocation42_spill]] %s4690_s8 }
   0xa   :  { %4724 = sst [smem:[#allocation43_spill]] %s4691_s9 }
   0xb   :  { %4725 = sst [smem:[#allocation44_spill]] %s4692_s10 }
   0xc   :  { %4726 = sst [smem:[#allocation45_spill]] %s4693_s11 }
   0xd   :  { %4727 = sst [smem:[#allocation46_spill]] %s4694_s12 }
   0xe   :  { %4728 = sst [smem:[#allocation47_spill]] %s4695_s13 }
   0xf   :  { %4729 = sst [smem:[#allocation48_spill]] %s4696_s14 }
  0x10   :  { %4730 = sst [smem:[#allocation49_spill]] %s4700_s18 }
  0x11   :  { %4731 = sst [smem:[#allocation50_spill]] %s4701_s19 }
  0x12   :  { %4732 = sst [smem:[#allocation51_spill]] %s4702_s20 }
  0x13   :  { %4733 = sst [smem:[#allocation52_spill]] %s4703_s21 }
  0x14   :  { %4734 = sst [smem:[#allocation53_spill]] %s4704_s22 }
  0x15   :  { %4735 = sst [smem:[#allocation54_spill]] %s4705_s23 }
  0x16   :  { %4736 = sst [smem:[#allocation55_spill]] %s4706_s24 }
  0x17   :  { %4737 = sst [smem:[#allocation56_spill]] %s4707_s25 }
  0x18   :  { %30 = vsyncpa [#allocation3], 0 }
  0x19   :  { %32 = vsyncpa [#allocation3 + $0x1], 0 }
  0x1a   :  { %33 = vsyncpa [#allocation6], 0 }
  0x1b   :  { %35 = vsyncpa [#allocation6 + $0x1], 0 }
  0x1c   :  { %36 = vsyncpa [#allocation9], 0 }
  0x1d   :  { %37 = vsyncpa [#allocation12], 0 }
  0x1e   :  { %38 = vsyncpa [#allocation15], 0 }
  0x1f   :  { %39 = vsyncpa [#allocation18], 0 }
  0x20   :  { %40 = vsyncpa [#allocation21], 0 }
  0x21   :  { %41 = vsyncpa [#allocation4], 0 }
  0x22   :  { %43 = vsyncpa [#allocation4 + $0x1], 0  ;;  %s3946_s29 = smov 0   ;;  %s3948_s2 = smov 0  }
  0x23   :  { %s3950_s6 = smov 0   ;;  %s3952_s30 = smov 0  }
  0x24 LB: > { %4738 = sst [smem:[#allocation32_spill]] %s3785_s6  ;;  %s3970_s8 = sadd.s32 4294967295, %s3789_s30   ;;  %s3789_s30 = sphi %s3952_s30, %s4784_s30   ;;  %s3785_s6 = sphi %s3950_s6, %s4781_s6   ;;  %s3781_s2 = sphi %s3948_s2, %s4783_s2   ;;  %s3777_s29 = sphi %s3946_s29, %s4782_s29  }
  0x25   : > { %s4739_s26 = sld [smem:[#allocation39_spill]]  ;;  %p2882_p0 = scmp.ge.s32.totalorder %s3789_s30, 1 }
  0x26   : > { %p148_p1 = scmp.eq.s32.totalorder %s3970_s8, 0  ;;  %p630_p2 = scmp.lt.s32.totalorder %s3789_s30, 3 }
  0x27   : > { %s3791_s4 = smov [#allocation7]   ;;  %s4741_s0 = sld [smem:[#allocation41_spill]] }
  0x28   : > { %p3975_p3 = pnand %p2882_p0, %p630_p2  ;;  %s643_s28 = sshll.u32 %s3791_s4, 4  ;;  %s644_s28 = int_to_ptr.vmem [resolvable:$true] %s643_s28 }
  0x29   : > { %s4743_s4 = sld [smem:[#allocation43_spill]]  ;;  %s3792_s23 = smov [#allocation8]  }
  0x2a   : > { %p3091_p4 = pneg %p3975_p3  ;;  %s660_s22 = sshll.u32 %s3792_s23, 4  ;;  %s661_s22 = int_to_ptr.vmem [resolvable:$true] %s660_s22 }
  0x2b   : > { %s641_s1 = sshll.u32 %s4739_s26, 4  ;;  %s3793_s20 = smov 64   ;;  %s642_s1 = int_to_ptr.hbm [resolvable:$true] %s641_s1 }
  0x2c   : > { %p3987_p6 = pnand %p3091_p4, %p148_p1  ;;  %s3794_s21 = smov 4  }
  0x2d   : > { %s658_s7 = sshll.u32 %s4741_s0, 4  ;;  %s4744_s11 = sld [smem:[#allocation45_spill]]  ;;  %s659_s7 = int_to_ptr.hbm [resolvable:$true] %s658_s7 }
  0x2e   : > { %3094 = dma.hbm_to_vmem [thread:$0]  (!%p3987_p6), %s642_s1, 256, %s644_s28, [#allocation6], %s3793_s20, %s3793_s20, %s3794_s21  }
  0x2f   : > { %s685_s24 = sshll.u32 %s4743_s4, 4  ;;  %s3795_s23 = smov [#allocation11]   ;;  %s686_s24 = int_to_ptr.hbm [resolvable:$true] %s685_s24 }
  0x30   : > { %3097 = dma.hbm_to_vmem [thread:$0]  (!%p3987_p6), %s659_s7, 256, %s661_s22, [#allocation9], %s3793_s20, %s3793_s20, %s3794_s21  }
  0x31   : > { %s687_s0 = sshll.u32 %s3795_s23, 4  ;;  %s3796_s26 = smov [#allocation14]   ;;  %s688_s0 = int_to_ptr.vmem [resolvable:$true] %s687_s0 }
  0x32   : > { %3103 = dma.hbm_to_vmem [thread:$0]  (!%p3987_p6), %s686_s24, 16, %s688_s0, [#allocation12]  }
  0x33   : > { %s708_s5 = sshll.u32 %s4744_s11, 4  ;;  %s710_s1 = sshll.u32 %s3796_s26, 4  ;;  %s709_s5 = int_to_ptr.hbm [resolvable:$true] %s708_s5  ;;  %s711_s1 = int_to_ptr.vmem [resolvable:$true] %s710_s1 }
  0x34   : > { %s4745_s13 = sld [smem:[#allocation47_spill]]  ;;  %s3797_s23 = smov [#allocation17]  }
  0x35   : > { %3109 = dma.hbm_to_vmem [thread:$0]  (!%p3987_p6), %s709_s5, 256, %s711_s1, [#allocation15], %s3793_s20, %s3793_s20, %s3794_s21  }
  0x36   : > { %s4746_s9 = sld [smem:[#allocation42_spill]]  ;;  %s736_s24 = sshll.u32 %s3797_s23, 4  ;;  %s737_s24 = int_to_ptr.vmem [resolvable:$true] %s736_s24 }
  0x37   : > { %s3798_s0 = smov [#allocation10]   ;;  %s4747_s10 = sld [smem:[#allocation44_spill]] }
  0x38   : > { %s675_s26 = sshll.u32 %s3798_s0, 4  ;;  %s4748_s12 = sld [smem:[#allocation46_spill]]  ;;  %s676_s26 = int_to_ptr.vmem [resolvable:$true] %s675_s26 }
  0x39   : > { %s4749_s14 = sld [smem:[#allocation48_spill]]  ;;  %s3801_s1 = smov [#allocation19]  }
  0x3a   : > { %s734_s18 = sshll.u32 %s4745_s13, 4  ;;  %s4750_s19 = sld [smem:[#allocation50_spill]]  ;;  %s735_s18 = int_to_ptr.hbm [resolvable:$true] %s734_s18 }
  0x3b   : > { %3115 = dma.hbm_to_vmem [thread:$0]  (!%p3987_p6), %s735_s18, 256, %s737_s24, [#allocation18], %s3793_s20, %s3793_s20, %s3794_s21  }
  0x3c   : > { %s673_s25 = sshll.u32 %s4746_s9, 4  ;;  %s3799_s9 = smov [#allocation13]   ;;  %s674_s25 = int_to_ptr.hbm [resolvable:$true] %s673_s25 }
  0x3d   : > { %s697_s5 = sshll.u32 %s4747_s10, 4  ;;  %s699_s23 = sshll.u32 %s3799_s9, 4  ;;  %s698_s5 = int_to_ptr.hbm [resolvable:$true] %s697_s5  ;;  %s700_s23 = int_to_ptr.vmem [resolvable:$true] %s699_s23 }
  0x3e   : > { %3100 = dma.hbm_to_vmem [thread:$0]  (!%p3987_p6), %s674_s25, 16, %s676_s26, [#allocation9]  }
  0x3f   : > { %s723_s7 = sshll.u32 %s4748_s12, 4  ;;  %s3800_s18 = smov [#allocation16]   ;;  %s724_s7 = int_to_ptr.hbm [resolvable:$true] %s723_s7 }
  0x40   : > { %3106 = dma.hbm_to_vmem [thread:$0]  (!%p3987_p6), %s698_s5, 16, %s700_s23, [#allocation12]  }
  0x41   : > { %s725_s24 = sshll.u32 %s3800_s18, 4  ;;  %s749_s25 = sshll.u32 %s4749_s14, 4  ;;  %s726_s24 = int_to_ptr.vmem [resolvable:$true] %s725_s24  ;;  %s750_s25 = int_to_ptr.hbm [resolvable:$true] %s749_s25 }
  0x42   : > { %3112 = dma.hbm_to_vmem [thread:$0]  (!%p3987_p6), %s724_s7, 16, %s726_s24, [#allocation15]  }
  0x43   : > { %s772_s5 = sshll.u32 %s4750_s19, 4  ;;  %s751_s22 = sshll.u32 %s3801_s1, 4  ;;  %s773_s5 = int_to_ptr.hbm [resolvable:$true] %s772_s5  ;;  %s752_s22 = int_to_ptr.vmem [resolvable:$true] %s751_s22 }
  0x44   : > { %3118 = dma.hbm_to_vmem [thread:$0]  (!%p3987_p6), %s750_s25, 16, %s752_s22, [#allocation18]  }
  0x45   : > { %s3802_s9 = smov [#allocation20]   ;;  %s2881_s23 = sadd.s32 4294967294, %s3789_s30  }
  0x46   : > { %s774_s7 = sshll.u32 %s3802_s9, 4  ;;  %s4052_s18 = sadd.s32 1, %s3789_s30   ;;  %s775_s7 = int_to_ptr.vmem [resolvable:$true] %s774_s7 }
  0x47   : > { %3121 = dma.hbm_to_vmem [thread:$0]  (!%p3987_p6), %s773_s5, 256, %s775_s7, [#allocation21], %s3793_s20, %s3793_s20, %s3794_s21  }
  0x48   : > { %s131_s24 = ssub.s32 %s3789_s30, %s4052_s18  ;;  %s134_s0 = sadd.s32 1, %s3785_s6 }
  0x49   : > { %p132_p7 = scmp.eq.s32.totalorder %s131_s24, 0  ;;  %p141_p8 = scmp.ne.s32.totalorder %s3785_s6, %s3781_s2 }
  0x4a   : > { %p142_p9 = scmp.eq.s32.totalorder %s3789_s30, 0  ;;  %p147_p10 = scmp.ne.s32.totalorder %s3781_s2, %s3777_s29 }
  0x4b   : > { %s4063_s28 = scalar_select %p132_p7, %s3785_s6, %s134_s0  }
  0x4c   : > { %p4065_p11 = por %p142_p9, %p141_p8  ;;  %p4071_p12 = por %p148_p1, %p147_p10 }
  0x4d   : > { %4751 = sst [smem:[#allocation33_spill]] %s4063_s28  ;;  %p617_p13 = scmp.eq.s32.totalorder %s3970_s8, 1 }
  0x4e   : > { %p623_p0 = scmp.eq.s32.totalorder %s2881_s23, 1  ;;  %p3143_p2 = scmp.lt.s32.totalorder %s3789_s30, 2 }
  0x4f   : > { %s830_s21 = sand.u32 1, %s3785_s6   ;;  %p4078_p4 = por %p617_p13, %p141_p8 }
  0x50   : > { %p4082_p6 = por %p623_p0, %p147_p10  ;;  %s4086_s4 = sshll.u32 %s830_s21, 1 }
  0x51   : > { %s4712_s5 = sshll.u32 %s3789_s30, 1  ;;  %s4756_s9 = sld [smem:[#allocation37_spill]] }
  0x52   : > { %s834_s23 = scalar_lea.vmem [#allocation2], %s4086_s4  ;;  %p4097_p7 = pnand %p3143_p2, %p4065_p11 }
  0x53   : > { %s841_s24 = sshll.u32 %s834_s23, 4  ;;  %s831_s11 = scalar_lea.sflag [#allocation3], %s830_s21  ;;  %s842_s24 = int_to_ptr.vmem [resolvable:$true] %s841_s24 }
  0x54   : > { %p3639_p9 = pneg %p4097_p7 }
  0x57   : > { %s838_s7 = scalar_lea.hbm %s4756_s9, %s4712_s5  ;;  %s3642_s3 = scalar_lea.hbm %s4756_s9, 4 }
  0x58   : > { %s839_s0 = sshll.u32 %s838_s7, 4  ;;  %s840_s0 = int_to_ptr.hbm [resolvable:$true] %s839_s0 }
  0x59   : > { %s3635_s12 = sshra.s32 %s840_s0, 4  ;;  %s3636_s12 = int_to_ptr.hbm [resolvable:$true] %s3635_s12 }
  0x5a   : > { %s3637_s13 = scalar_lea.hbm %s3636_s12, 2  ;;  %p3643_p11 = scmp.lt.s32.totalorder %s3636_s12, %s4756_s9 }
  0x5b   : > { %p3638_p8 = scmp.ne.s32.totalorder %s3636_s12, %s3637_s13  ;;  %p3644_p0 = scmp.lt.s32.totalorder %s3642_s3, %s3637_s13 }
  0x5d   : > { %p3640_p10 = pnand %p3639_p9, %p3638_p8  ;;  %p3645_p2 = por %p3644_p0, %p3643_p11 }
  0x5f   : > { %p3641_p13 = pneg %p3640_p10 }
  0x61   : > { %p3646_p5 = pnand %p3645_p2, %p3641_p13 }
  0x63   : > { %3649 = shalt.err (!%p3646_p5)
}
  0x64   : > { %s3803_s21 = smov 16   ;;  %s3804_s5 = smov 1  }
  0x65   : > { %3125 = dma.hbm_to_vmem [thread:$0]  (!%p4097_p7), %s840_s0, 32, %s842_s24, %s831_s11, %s3803_s21, %s3803_s21, %s3804_s5  }
  0x66   : > { %s4758_s14 = sshll.u32 %s3789_s30, 1  ;;  %s4759_s19 = sld [smem:[#allocation38_spill]] }
  0x67   : > { %s855_s7 = scalar_lea.vmem [#allocation5], %s4086_s4  ;;  %s851_s3 = sand.u32 1, %s3789_s30  }
  0x68   : > { %s862_s12 = sshll.u32 %s855_s7, 4  ;;  %s852_s23 = scalar_lea.sflag [#allocation6], %s851_s3  ;;  %s863_s12 = int_to_ptr.vmem [resolvable:$true] %s862_s12 }
  0x6c   : > { %s859_s28 = scalar_lea.hbm %s4759_s19, %s4758_s14  ;;  %s3672_s0 = scalar_lea.hbm %s4759_s19, 4 }
  0x6d   : > { %s860_s13 = sshll.u32 %s859_s28, 4  ;;  %s861_s13 = int_to_ptr.hbm [resolvable:$true] %s860_s13 }
  0x6e   : > { %s3665_s9 = sshra.s32 %s861_s13, 4  ;;  %s3666_s9 = int_to_ptr.hbm [resolvable:$true] %s3665_s9 }
  0x6f   : > { %s3667_s6 = scalar_lea.hbm %s3666_s9, 2  ;;  %p3673_p13 = scmp.lt.s32.totalorder %s3666_s9, %s4759_s19 }
  0x70   : > { %p3668_p5 = scmp.ne.s32.totalorder %s3666_s9, %s3667_s6  ;;  %p3674_p11 = scmp.lt.s32.totalorder %s3672_s0, %s3667_s6 }
  0x72   : > { %p3670_p8 = pnand %p3668_p5, %p3639_p9  ;;  %p3675_p0 = por %p3674_p11, %p3673_p13 }
  0x74   : > { %p3671_p10 = pneg %p3670_p8 }
  0x76   : > { %p3676_p2 = pnand %p3675_p0, %p3671_p10 }
  0x78   : > { %3679 = shalt.err (!%p3676_p2)
}
  0x79   : > { %3128 = dma.hbm_to_vmem [thread:$0]  (!%p4097_p7), %s861_s13, 32, %s863_s12, %s852_s23, %s3803_s21, %s3803_s21, %s3804_s5  }
  0x7a   : > { %874 = sbr.rel (%p3975_p3) target bundleno = 3757 (0xead), region = 120  ;;  %s4135_s28 = sand.u32 (!%p3975_p3), 1, %s3781_s2  }
  0x7b   : > { %s2899_s1 = sshll.u32 (!%p3975_p3), %s4135_s28, 1  ;;  %s877_s22 = scalar_lea.sflag (!%p3975_p3), [#allocation3], %s4135_s28 }
  0x7c   : > { %s4139_s7 = scalar_lea.vmem (!%p3975_p3), [#allocation2], %s2899_s1 }
  0x7f   : > { %3740 = dma.done.wait (%p4071_p12), %s877_s22, 32  }
  0x80   : > { %3742 = vsyncadd (%p4071_p12), %s877_s22, 4294967264  ;;  %s886_s10 = sand.u32 1, %s3970_s8   ;;  %s4146_s27 = scalar_lea.vmem [#allocation5], %s2899_s1 }
  0x81   : > { %s887_s6 = scalar_lea.sflag [#allocation6], %s886_s10 }
  0x82   : > { %3744 = dma.done.wait (%p4071_p12), %s887_s6, 32  }
  0x83   : > { %3746 = vsyncadd (%p4071_p12), %s887_s6, 4294967264 }
  0x84   : > { %3748 = dma.done.wait (%p148_p1), [#allocation6], 256  }
  0x85   : > { %3750 = vsyncadd (%p148_p1), [#allocation6], 4294967040 }
  0x86   : > { %3752 = dma.done.wait (%p148_p1), [#allocation9], 272  }
  0x87   : > { %3754 = vsyncadd (%p148_p1), [#allocation9], 4294967024 }
  0x88   : > { %3756 = dma.done.wait (%p148_p1), [#allocation12], 32  }
  0x89   : > { %3758 = vsyncadd (%p148_p1), [#allocation12], 4294967264 }
  0x8a   : > { %3760 = dma.done.wait (%p148_p1), [#allocation15], 272  }
  0x8b   : > { %3762 = vsyncadd (%p148_p1), [#allocation15], 4294967024 }
  0x8c   : > { %3764 = dma.done.wait (%p148_p1), [#allocation18], 272  }
  0x8d   : > { %3766 = vsyncadd (%p148_p1), [#allocation18], 4294967024 }
  0x8e   : > { %3768 = dma.done.wait (%p148_p1), [#allocation21], 256  }
  0x8f   : > { %3770 = vsyncadd (%p148_p1), [#allocation21], 4294967040  ;;  %s2912_s20 = sshll.u32 %s3970_s8, 1  ;;  %s4760_s12 = sld [smem:[#allocation34_spill]]  ;;  %v3029_v0 = vld [vmem:[#allocation7 + $0x8] sm:$0xff]  ;;  %v3028_v1 = vld [vmem:[#allocation7] sm:$0xff]  ;;  %v1056_v49 = vlaneseq }
  0x90   : > { %p1029_p3 = scmp.lt.s32.totalorder %s2912_s20, 3  ;;  %1092 = vmatpush.bf16.msra.mxu0 %v3029_v0  ;;  %vm1082_vm0 = vcmask 261120   ;;  %s4761_s11 = sld [smem:[#allocation40_spill]]  ;;  %vm1125_vm1 = vcmask 64512   ;;  %v3810_v28 = vmov 0   ;;  %vm1272_vm2 = vcmask 1043456  }
  0x91   : > { %s3805_s24 = smov 104   ;;  %s3806_s0 = smov 120   ;;  %3227 = vset.pattern.permute.xlu0 %v3810_v28  ;;  %3228 = vset.pattern.permute.xlu1 %v3810_v28  ;;  %v1110_v48 = vld [vmem:[%s4139_s7] sm:$0x1]  ;;  %v4238_v51 = vshrl.u32 %v1056_v49, 7  ;;  %v4240_v52 = vand.u32 127, %v1056_v49 }
  0x92   : > { %s4786_s20 = smov (!%p1029_p3, %s2912_s20), 3  ;;  %s3807_s14 = smov 112   ;;  %vm1111_vm3 = vcmp.ne.f32.partialorder %v1110_v48, 0.0  ;;  %v2935_v49 = vld [vmem:[%s4139_s7 + $0x1] sm:$0x1]  ;;  %vm1369_vm10 = vcmask 130048  }
  0x93   : > { %s4177_s5 = sshll.u32 %s4786_s20, 3  ;;  %s3808_s4 = smov 96   ;;  %v1112_v50 = vsel %vm1111_vm3, 1, %v3810_v28  ;;  %vm1060_vm4 = vcmp.le.s32.totalorder %v4240_v52, %v4238_v51  ;;  %vm1385_vm7 = vcmp.ne.f32.partialorder %v2935_v49, 0.0  ;;  %vm1371_vm11 = vcmask 195584  }
  0x94   : > { %1093 = vmatpush.bf16.msra.mxu0 %v3028_v1  ;;  %s3809_s1 = smov 64   ;;  %v1113_v53 = vperm.slane %v1112_v50, 0  ;;  %s3811_s22 = smov 24  }
  0x95   : > { %s1032_s13 = scalar_lea.vmem %s4760_s12, %s4177_s5  ;;  %s3812_s7 = smov 8  }
  0x96   : > { %v4183_v2 = vld [vmem:[%s1032_s13] sm:$0xff]  ;;  %v4185_v3 = vld [vmem:[%s1032_s13 + $0x8] sm:$0xff]  ;;  %vm1114_vm5 = vcmp.eq.s32.totalorder %v1113_v53, 1  ;;  %v1386_v53 = vsel %vm1385_vm7, 1, %v3810_v28  ;;  %s3813_s10 = smov 16   ;;  %s4766_s9 = sld [smem:[#allocation36_spill]] }
  0x97   : > { %v1061_v4 = vpack.c.bf16 %v4185_v3, %v4183_v2  ;;  %v3244_v5 = vld [vmem:[%s4761_s11] ss:$0 sm:$0xff]  ;;  %vm4247_vm6 = vmand %vm1060_vm4, %vm1114_vm5  ;;  %v1387_v54 = vperm.slane %v1386_v53, 0  ;;  %s4767_s3 = sld [smem:[#allocation35_spill]]  ;;  %s2911_s13 = sshll.u32 %s4135_s28, 4 }
  0x98   : > { %s4772_s6 = sld [smem:[#allocation49_spill]] }
  0x99   : > { %2926 = vmatmul.msk.bf16.vlgmr.msra.gmra.mxu0 %vm1082_vm0, %v1061_v4  ;;  %vm1388_vm8 = vcmp.eq.s32.totalorder %v1387_v54, 1  ;;  %s4777_s12 = sld [smem:[#allocation55_spill]] }
  0x9a   : > { %vm4316_vm9 = vmand %vm1060_vm4, %vm1388_vm8  ;;  %s4778_s11 = sld [smem:[#allocation56_spill]] }
  0x9c   : > { %s1044_s21 = scalar_lea.vmem %s4766_s9, %s4177_s5 }
  0x9d   : > { %s1038_s23 = scalar_lea.vmem %s4767_s3, %s4177_s5  ;;  %s3044_s3 = sshll.u32 %s3970_s8, 4 }
  0x9e   : > { %s2639_s8 = scalar_lea.sflag [#allocation4], %s4135_s28 }
 0x116   : > { %v1095_v6 = vpop.f32.mrf.mxu0 }
 0x117   : > { %v1096_v7 = vadd.f32 %v3244_v5, %v1095_v6 }
 0x119   : > { %1107 = vrot.lane.b32.xlu1 %v1096_v7, %s3805_s24  ;;  %1101 = vrot.lane.b32.xlu0 %v1096_v7, %s3806_s0  ;;  %v1116_v8 = vpack.c.bf16 %v1096_v7, %v1096_v7 }
 0x11b   : > { %v1121_v9 = vunpack.c.l.b16 %v1116_v8 }
 0x11d   : > { %v4196_v10 = vpack.c.b16 %v1121_v9, %v1121_v9 }
 0x11e   : > { %v1097_v11 = vpop.f32.mrf.mxu0 }
 0x11f   : > { %v4200_v12 = vadd.f32 %v3244_v5, %v1097_v11 }
 0x121   : > { %1104 = vrot.lane.b32.xlu0 %v1096_v7, %s3807_s14 }
 0x129   : > { %1123 = vrot.lane.b32.xlu0 %v4196_v10, %s3808_s4 }
 0x131   : > { %1380 = vrot.lane.b32.xlu0 %v4200_v12, %s3805_s24 }
 0x18b   : > { %v1102_v13 = vpop.permute.xlu0 %1101  ;;  %v1108_v19 = vpop.permute.xlu1 %1107 }
 0x18c   : > { %v1117_v14 = vpack.c.bf16 %v1102_v13, %v1102_v13  ;;  %v1119_v21 = vpack.c.bf16 %v1108_v19, %v1108_v19 }
 0x18e   : > { %v1146_v15 = vunpack.c.l.b16 %v1117_v14  ;;  %v1194_v24 = vunpack.c.l.b16 %v1119_v21 }
 0x190   : > { %v1147_v16 = vpack.c.b16 %v1146_v15, %v1146_v15  ;;  %v4211_v26 = vpack.c.b16 %v1194_v24, %v1194_v24 }
 0x192   : > { %1148 = vrot.lane.b32.xlu1 %v1147_v16, %s3808_s4  ;;  %1289 = vrot.lane.b32.xlu0 %v1147_v16, %s3809_s1 }
 0x193   : > { %v1105_v17 = vpop.permute.xlu0 %1104 }
 0x194   : > { %v1118_v18 = vpack.c.bf16 %v1105_v17, %v1105_v17 }
 0x196   : > { %v1170_v20 = vunpack.c.l.b16 %v1118_v18 }
 0x198   : > { %v1171_v22 = vpack.c.b16 %v1170_v20, %v1170_v20 }
 0x19a   : > { %1374 = vrot.lane.b32.xlu1 %v4200_v12, %s3806_s0  ;;  %1172 = vrot.lane.b32.xlu2 %v1171_v22, %s3808_s4 }
 0x19b   : > { %1310 = vrot.lane.b32.xlu0 %v1171_v22, %s3809_s1  ;;  %v1124_v23 = vpop.permute.xlu0 %1123 }
 0x19c   : > { %v1130_v25 = vsel %vm1125_vm1, %v1124_v23, 0 }
 0x19d   : > { %1139 = vmatpush.bf16.xpose.msra.mxu1 %v1130_v25 }
 0x1a2   : > { %1196 = vrot.lane.b32.xlu2 %v4211_v26, %s3808_s4 }
 0x1a3   : > { %v1381_v31 = vpop.permute.xlu0 %1380 }
 0x1a4   : > { %2927 = vmatmul.msk.bf16.vlgmr.msra.gmra.mxu1 %vm1125_vm1, %v1116_v8  ;;  %v1393_v63 = vpack.c.bf16 %v1381_v31, %v1381_v31  ;;  %v1390_v8 = vpack.c.bf16 %v4200_v12, %v4200_v12 }
 0x1a6   : > { %v1467_v5 = vunpack.c.l.b16 %v1393_v63  ;;  %v1395_v11 = vunpack.c.l.b16 %v1390_v8 }
 0x1a8   : > { %v4260_v6 = vpack.c.b16 %v1467_v5, %v1467_v5 }
 0x1aa   : > { %1377 = vrot.lane.b32.xlu2 %v4200_v12, %s3807_s14 }
 0x1f4   : > { %v1173_v27 = vpop.permute.xlu2 %1172 }
 0x1f5   : > { %v1178_v29 = vsel %vm1125_vm1, %v1173_v27, 0 }
 0x1f6   : > { %1187 = vmatpush.bf16.xpose.msra.mxu3 %v1178_v29 }
 0x1fc   : > { %v1197_v30 = vpop.permute.xlu2 %1196 }
 0x1fd   : > { %2929 = vmatmul.msk.bf16.vlgmr.msra.gmra.mxu3 %vm1125_vm1, %v1118_v18  ;;  %v1202_v32 = vsel %vm1125_vm1, %v1197_v30, 0 }
 0x1fe   : > { %1211 = vmatpush.bf16.xpose.msrb.mxu0 %v1202_v32 }
 0x204   : > { %v1149_v33 = vpop.permute.xlu1 %1148  ;;  %v1290_v34 = vpop.permute.xlu0 %1289 }
 0x205   : > { %2930 = vmatmul.msk.bf16.vlgmr.msrb.gmra.mxu0 %vm1125_vm1, %v1119_v21  ;;  %v1154_v35 = vsel %vm1125_vm1, %v1149_v33, 0  ;;  %v1295_v36 = vsel %vm1272_vm2, %v1290_v34, 0  ;;  %v1378_v45 = vpop.permute.xlu2 %1377 }
 0x206   : > { %1163 = vmatpush.bf16.xpose.msra.mxu2 %v1154_v35  ;;  %v1392_v9 = vpack.c.bf16 %v1378_v45, %v1378_v45 }
 0x208   : > { %v1443_v13 = vunpack.c.l.b16 %v1392_v9 }
 0x20a   : > { %v4272_v15 = vpack.c.b16 %v1443_v13, %v1443_v13 }
 0x20c   : > { %v1375_v37 = vpop.permute.xlu1 %1374 }
 0x20d   : > { %v4226_v38 = vpack.c.bf16 %v1375_v37, %v1375_v37  ;;  %v1311_v39 = vpop.permute.xlu0 %1310  ;;  %2928 = vmatmul.msk.bf16.vlgmr.msra.gmra.mxu2 %vm1125_vm1, %v1117_v14  ;;  %v4270_v14 = vpack.c.b16 %v1395_v11, %v1395_v11 }
 0x20e   : > { %1304 = vmatpush.bf16.msrb.mxu2 %v1295_v36  ;;  %v1316_v40 = vsel %vm1272_vm2, %v1311_v39, 0 }
 0x20f   : > { %v1419_v41 = vunpack.c.l.b16 %v4226_v38  ;;  %1325 = vmatpush.bf16.msrb.mxu3 %v1316_v40 }
 0x211   : > { %v4231_v42 = vpack.c.b16 %v1419_v41, %v1419_v41 }
 0x213   : > { %1421 = vrot.lane.b32.xlu2 %v4231_v42, %s3808_s4 }
 0x221   : > { %v1141_v43 = vpop.f32.mrf.mxu1 }
 0x222   : > { %v1219_v16 = vsel %vm4247_vm6, %v1141_v43, -1e+30 }
 0x223   : > { %v1223_v12 = vsel %vm1125_vm1, %v1219_v16, -inf }
 0x229   : > { %v1143_v44 = vpop.f32.mrf.mxu1 }
 0x26d   : > { %v1422_v46 = vpop.permute.xlu2 %1421 }
 0x26e   : > { %v1427_v47 = vsel %vm1125_vm1, %v1422_v46, 0 }
 0x26f   : > { %1436 = vmatpush.bf16.xpose.msra.mxu2 %v1427_v47 }
 0x280   : > { %v1189_v55 = vpop.f32.mrf.mxu3 }
 0x281   : > { %v1221_v56 = vsel %vm4247_vm6, %v1189_v55, -1e+30 }
 0x282   : > { %v1213_v57 = vpop.f32.mrf.mxu0  ;;  %v1229_v58 = vsel %vm1125_vm1, %v1221_v56, -inf }
 0x283   : > { %v1222_v59 = vsel %vm4247_vm6, %v1213_v57, -1e+30  ;;  %1230 = vmax.xlane.f32.xlu2 %v1229_v58 }
 0x284   : > { %v1232_v60 = vsel %vm1125_vm1, %v1222_v59, -inf }
 0x285   : > { %1233 = vmax.xlane.f32.xlu0 %v1232_v60 }
 0x288   : > { %v1191_v61 = vpop.f32.mrf.mxu3 }
 0x28a   : > { %v1215_v62 = vpop.f32.mrf.mxu0 }
 0x290   : > { %v1165_v0 = vpop.f32.mrf.mxu2 }
 0x291   : > { %v1220_v1 = vsel %vm4247_vm6, %v1165_v0, -1e+30 }
 0x292   : > { %v1226_v4 = vsel %vm1125_vm1, %v1220_v1, -inf }
 0x293   : > { %1227 = vmax.xlane.f32.xlu1 %v1226_v4 }
 0x298   : > { %v1167_v7 = vpop.f32.mrf.mxu2 }
 0x299   : > { %1469 = vrot.lane.b32.xlu0 %v4260_v6, %s3808_s4 }
 0x29b   : > { %1331 = vrot.lane.b32.xlu2 %v4211_v26, %s3809_s1 }
 0x2a3   : > { %1267 = vrot.lane.b32.xlu2 %v4196_v10, %s3809_s1 }
 0x2ab   : > { %1397 = vrot.lane.b32.xlu2 %v4270_v14, %s3808_s4 }
 0x2ac   : > { %1445 = vrot.lane.b32.xlu1 %v4272_v15, %s3808_s4 }
 0x2d6   : > { %1224 = vmax.xlane.f32.xlu1 %v1223_v12 }
 0x2f6   : > { %v1231_v17 = vpop.xlane.xlu2 %1230 }
 0x2f7   : > { %v1237_v10 = vsub.f32 %v1221_v56, %v1231_v17 }
 0x2f8   : > { %v1234_v18 = vpop.xlane.xlu0 %1233 }
 0x2f9   : > { %v1243_v19 = vmul.f32 1.442695, %v1237_v10  ;;  %v1238_v20 = vsub.f32 %v1222_v59, %v1234_v18 }
 0x2fb   : > { %3257 = vpow2.f32 %v1243_v19  ;;  %v1245_v21 = vmul.f32 1.442695, %v1238_v20 }
 0x2fd   : > { %3259 = vpow2.f32 %v1245_v21 }
 0x2fe   : > { %v1332_v22 = vpop.permute.xlu2 %1331 }
 0x2ff   : > { %v1337_v23 = vsel %vm1272_vm2, %v1332_v22, 0 }
 0x300   : > { %1346 = vmatpush.bf16.msra.mxu0 %v1337_v23 }
 0x301   : > { %v4282_v24 = vpop.eup %3257 }
 0x302   : > { %v1265_v25 = vpack.c.bf16 %v4282_v24, %v4282_v24 }
 0x303   : > { %v4286_v26 = vpop.eup %3259 }
 0x304   : > { %v1266_v27 = vpack.c.bf16 %v4286_v26, %v4286_v26  ;;  %2933 = vmatmul.msk.bf16.vlgmr.msrb.gmra.mxu3 %vm1125_vm1, %v1265_v25 }
 0x306   : > { %v1228_v29 = vpop.xlane.xlu1 %1227  ;;  %v1268_v30 = vpop.permute.xlu2 %1267  ;;  %2934 = vmatmul.msk.bf16.vlgmr.msra.gmra.mxu0 %vm1125_vm1, %v1266_v27 }
 0x307   : > { %v1236_v31 = vsub.f32 %v1220_v1, %v1228_v29  ;;  %v1274_v32 = vsel %vm1272_vm2, %v1268_v30, 0 }
 0x308   : > { %1283 = vmatpush.bf16.msrb.mxu1 %v1274_v32 }
 0x309   : > { %v1241_v33 = vmul.f32 1.442695, %v1236_v31 }
 0x30b   : > { %3261 = vpow2.f32 %v1241_v33  ;;  %v1470_v34 = vpop.permute.xlu0 %1469 }
 0x30c   : > { %v1475_v35 = vsel %vm1125_vm1, %v1470_v34, 0 }
 0x30d   : > { %1484 = vmatpush.bf16.xpose.msrb.mxu0 %v1475_v35 }
 0x30e   : > { %v1398_v36 = vpop.permute.xlu2 %1397 }
 0x30f   : > { %v1403_v37 = vsel %vm1125_vm1, %v1398_v36, 0 }
 0x310   : > { %1412 = vmatpush.bf16.xpose.msra.mxu1 %v1403_v37 }
 0x311   : > { %v3262_v39 = vpop.eup %3261 }
 0x312   : > { %v1264_v40 = vpack.c.bf16 %v3262_v39, %v3262_v39  ;;  %v1250_v17 = vsel %vm1125_vm1, %v3262_v39, 0.0 }
 0x314   : > { %2932 = vmatmul.msk.bf16.vlgmr.msrb.gmra.mxu2 %vm1125_vm1, %v1264_v40 }
 0x316   : > { %2939 = vmatmul.msk.bf16.vlgmr.msrb.gmra.mxu0 %vm1125_vm1, %v1393_v63 }
 0x31e   : > { %v1446_v41 = vpop.permute.xlu1 %1445 }
 0x31f   : > { %v1451_v43 = vsel %vm1125_vm1, %v1446_v41, 0 }
 0x320   : > { %1460 = vmatpush.bf16.xpose.msra.mxu3 %v1451_v43 }
 0x324   : > { %2937 = vmatmul.msk.bf16.vlgmr.msra.gmra.mxu2 %vm1125_vm1, %v4226_v38 }
 0x327   : > { %2938 = vmatmul.msk.bf16.vlgmr.msra.gmra.mxu3 %vm1125_vm1, %v1392_v9 }
 0x349   : > { %v1225_v44 = vpop.xlane.xlu1 %1224 }
 0x34a   : > { %v1235_v45 = vsub.f32 %v1219_v16, %v1225_v44 }
 0x34c   : > { %v1239_v46 = vmul.f32 1.442695, %v1235_v45 }
 0x34e   : > { %3263 = vpow2.f32 %v1239_v46 }
 0x354   : > { %v4301_v47 = vpop.eup %3263 }
 0x355   : > { %v1263_v48 = vpack.c.bf16 %v4301_v47, %v4301_v47  ;;  %v1247_v43 = vsel %vm1125_vm1, %v4301_v47, 0.0 }
 0x357   : > { %2931 = vmatmul.msk.bf16.vlgmr.msrb.gmra.mxu1 %vm1125_vm1, %v1263_v48 }
 0x367   : > { %2936 = vmatmul.msk.bf16.vlgmr.msra.gmra.mxu1 %vm1125_vm1, %v1390_v8 }
 0x383   : > { %v4308_v50 = vpop.f32.mrf.mxu0 }
 0x387   : > { %v4310_v38 = vpop.f32.mrf.mxu3 }
 0x38b   : > { %v1350_v55 = vpop.f32.mrf.mxu0 }
 0x38f   : > { %v1329_v56 = vpop.f32.mrf.mxu3 }
 0x393   : > { %v1486_v58 = vpop.f32.mrf.mxu0 }
 0x394   : > { %v1495_v59 = vsel %vm4316_vm9, %v1486_v58, -1e+30 }
 0x395   : > { %v1505_v60 = vsel %vm1125_vm1, %v1495_v59, -inf }
 0x396   : > { %1506 = vmax.xlane.f32.xlu1 %v1505_v60 }
 0x397   : > { %v4323_v61 = vpop.f32.mrf.mxu2 }
 0x39b   : > { %v1488_v62 = vpop.f32.mrf.mxu0 }
 0x39f   : > { %v1308_v63 = vpop.f32.mrf.mxu2 }
 0x3a7   : > { %v1438_v0 = vpop.f32.mrf.mxu2 }
 0x3a8   : > { %v1493_v1 = vsel %vm4316_vm9, %v1438_v0, -1e+30 }
 0x3a9   : > { %v1499_v51 = vsel %vm1125_vm1, %v1493_v1, -inf }
 0x3aa   : > { %1500 = vmax.xlane.f32.xlu0 %v1499_v51  ;;  %v1462_v52 = vpop.f32.mrf.mxu3 }
 0x3ab   : > { %v1494_v4 = vsel %vm4316_vm9, %v1462_v52, -1e+30 }
 0x3ac   : > { %v1502_v5 = vsel %vm1125_vm1, %v1494_v4, -inf }
 0x3ad   : > { %1503 = vmax.xlane.f32.xlu2 %v1502_v5 }
 0x3af   : > { %v1440_v7 = vpop.f32.mrf.mxu2  ;;  %1561 = vrot.lane.b32.xlu1 %v4231_v42, %s3809_s1 }
 0x3b2   : > { %v1464_v8 = vpop.f32.mrf.mxu3 }
 0x3be   : > { %1582 = vrot.lane.b32.xlu0 %v4272_v15, %s3809_s1 }
 0x3c5   : > { %1603 = vrot.lane.b32.xlu2 %v4260_v6, %s3809_s1  ;;  %v1253_v6 = vsel %vm1125_vm1, %v4282_v24, 0.0 }
 0x3c6   : > { %1540 = vrot.lane.b32.xlu0 %v4270_v14, %s3809_s1  ;;  %v1256_v14 = vsel %vm1125_vm1, %v4286_v26, 0.0  ;;  %s4775_s1 = sld [smem:[#allocation53_spill]] }
 0x3d4   : > { %v4339_v9 = vpop.f32.mrf.mxu1 }
 0x3dc   : > { %v1287_v11 = vpop.f32.mrf.mxu1 }
 0x3e4   : > { %v1414_v13 = vpop.f32.mrf.mxu1 }
 0x3e5   : > { %v1492_v16 = vsel %vm4316_vm9, %v1414_v13, -1e+30 }
 0x3e6   : > { %v1496_v12 = vsel %vm1125_vm1, %v1492_v16, -inf }
 0x3e7   : > { %1497 = vmax.xlane.f32.xlu1 %v1496_v12 }
 0x3ec   : > { %v1416_v42 = vpop.f32.mrf.mxu1 }
 0x3ee   : > { %1251 = vadd.xlane.f32.xlu2 %v1250_v17 }
 0x3ef   : > { %1254 = vadd.xlane.f32.xlu1 %v1253_v6 }
 0x3f6   : > { %1257 = vadd.xlane.f32.xlu2 %v1256_v14 }
 0x409   : > { %v1507_v15 = vpop.xlane.xlu1 %1506 }
 0x40a   : > { %v1511_v10 = vsub.f32 %v1495_v59, %v1507_v15 }
 0x40c   : > { %v1518_v18 = vmul.f32 1.442695, %v1511_v10 }
 0x40e   : > { %3265 = vpow2.f32 %v1518_v18 }
 0x414   : > { %v3266_v24 = vpop.eup %3265 }
 0x415   : > { %v1539_v35 = vpack.c.bf16 %v3266_v24, %v3266_v24  ;;  %v1529_v40 = vsel %vm1125_vm1, %v3266_v24, 0.0 }
 0x41d   : > { %v1501_v19 = vpop.xlane.xlu0 %1500 }
 0x41e   : > { %v1509_v20 = vsub.f32 %v1493_v1, %v1501_v19  ;;  %v3031_v19 = vld [vmem:[#allocation8 + $0x8] sm:$0xff] }
 0x420   : > { %v1514_v21 = vmul.f32 1.442695, %v1509_v20  ;;  %v1504_v22 = vpop.xlane.xlu2 %1503  ;;  %v3030_v20 = vld [vmem:[#allocation8] sm:$0xff] }
 0x421   : > { %v1510_v23 = vsub.f32 %v1494_v4, %v1504_v22  ;;  %v1562_v25 = vpop.permute.xlu1 %1561  ;;  %v1055_v22 = vld [vmem:[%s1044_s21 + $0x8] sm:$0xff] }
 0x422   : > { %3267 = vpow2.f32 %v1514_v21  ;;  %v1567_v27 = vsel %vm1272_vm2, %v1562_v25, 0  ;;  %v1054_v21 = vld [vmem:[%s1044_s21] sm:$0xff]  ;;  %s4773_s21 = sld [smem:[#allocation52_spill]] }
 0x423   : > { %v1516_v29 = vmul.f32 1.442695, %v1510_v23  ;;  %1576 = vmatpush.bf16.msrb.mxu2 %v1567_v27 }
 0x425   : > { %3269 = vpow2.f32 %v1516_v29 }
 0x428   : > { %v3268_v30 = vpop.eup %3267  ;;  %v1604_v26 = vpop.permute.xlu2 %1603 }
 0x429   : > { %v1537_v31 = vpack.c.bf16 %v3268_v30, %v3268_v30  ;;  %v1609_v32 = vsel %vm1272_vm2, %v1604_v26, 0  ;;  %v1523_v33 = vsel %vm1125_vm1, %v3268_v30, 0.0 }
 0x42a   : > { %1618 = vmatpush.bf16.msra.mxu0 %v1609_v32  ;;  %1524 = vadd.xlane.f32.xlu0 %v1523_v33 }
 0x42b   : > { %v3270_v34 = vpop.eup %3269  ;;  %2941 = vmatmul.msk.bf16.vlgmr.msrb.gmra.mxu2 %vm1125_vm1, %v1537_v31 }
 0x42c   : > { %v1526_v36 = vsel %vm1125_vm1, %v3270_v34, 0.0  ;;  %v1538_v41 = vpack.c.bf16 %v3270_v34, %v3270_v34 }
 0x42d   : > { %1527 = vadd.xlane.f32.xlu1 %v1526_v36  ;;  %2943 = vmatmul.msk.bf16.vlgmr.msra.gmra.mxu0 %vm1125_vm1, %v1539_v35 }
 0x430   : > { %v1583_v37 = vpop.permute.xlu0 %1582 }
 0x431   : > { %v1588_v39 = vsel %vm1272_vm2, %v1583_v37, 0 }
 0x432   : > { %1530 = vadd.xlane.f32.xlu0 %v1529_v40  ;;  %1597 = vmatpush.bf16.msrb.mxu3 %v1588_v39 }
 0x435   : > { %1248 = vadd.xlane.f32.xlu1 %v1247_v43  ;;  %2942 = vmatmul.msk.bf16.vlgmr.msrb.gmra.mxu3 %vm1125_vm1, %v1538_v41 }
 0x438   : > { %v1541_v44 = vpop.permute.xlu0 %1540 }
 0x439   : > { %v1546_v45 = vsel %vm1272_vm2, %v1541_v44, 0 }
 0x43a   : > { %1555 = vmatpush.bf16.msrb.mxu1 %v1546_v45 }
 0x43e   : > { %1673 = vmatpush.bf16.msra.mxu1 %v3031_v19 }
 0x442   : > { %1674 = vmatpush.bf16.msra.mxu1 %v3030_v20 }
 0x45a   : > { %v1498_v46 = vpop.xlane.xlu1 %1497 }
 0x45b   : > { %v1508_v48 = vsub.f32 %v1492_v16, %v1498_v46  ;;  %v3245_v46 = vld [vmem:[#allocation10] ss:$0 sm:$0xff] }
 0x45d   : > { %v1512_v49 = vmul.f32 1.442695, %v1508_v48 }
 0x45f   : > { %3271 = vpow2.f32 %v1512_v49 }
 0x461   : > { %v1252_v56 = vpop.xlane.xlu2 %1251 }
 0x462   : > { %v1255_v59 = vpop.xlane.xlu1 %1254 }
 0x465   : > { %v3272_v53 = vpop.eup %3271 }
 0x466   : > { %v1536_v54 = vpack.c.bf16 %v3272_v53, %v3272_v53  ;;  %v1520_v55 = vsel %vm1125_vm1, %v3272_v53, 0.0 }
 0x467   : > { %1521 = vadd.xlane.f32.xlu2 %v1520_v55 }
 0x468   : > { %2940 = vmatmul.msk.bf16.vlgmr.msrb.gmra.mxu1 %vm1125_vm1, %v1536_v54 }
 0x469   : > { %v1258_v57 = vpop.xlane.xlu2 %1257 }
 0x46a   : > { %3273 = vrcp.f32 %v1258_v57 }
 0x46b   : > { %3275 = vrcp.f32 %v1252_v56 }
 0x470   : > { %v3274_v60 = vpop.eup %3273 }
 0x471   : > { %v3276_v63 = vpop.eup %3275  ;;  %v1355_v1 = vmul.f32 %v3274_v60, %v4308_v50 }
 0x472   : > { %v1353_v8 = vmul.f32 %v3276_v63, %v4323_v61  ;;  %v3814_v63 = vmov 32.0  }
 0x49d   : > { %v1525_v47 = vpop.xlane.xlu0 %1524 }
 0x4a0   : > { %v1528_v5 = vpop.xlane.xlu1 %1527 }
 0x4a5   : > { %v1531_v58 = vpop.xlane.xlu0 %1530 }
 0x4a6   : > { %3277 = vrcp.f32 %v1531_v58 }
 0x4a7   : > { %3279 = vrcp.f32 %v1525_v47 }
 0x4a8   : > { %3281 = vrcp.f32 %v1255_v59 }
 0x4a9   : > { %3283 = vrcp.f32 %v1528_v5  ;;  %v3034_v5 = vld [vmem:[#allocation17] sm:$0xff] }
 0x4aa   : > { %v1620_v62 = vpop.f32.mrf.mxu0 }
 0x4ac   : > { %v3278_v0 = vpop.eup %3277 }
 0x4ad   : > { %v1627_v51 = vmul.f32 %v3278_v0, %v1620_v62  ;;  %v3280_v52 = vpop.eup %3279 }
 0x4ae   : > { %v1578_v4 = vpop.f32.mrf.mxu2  ;;  %v3282_v50 = vpop.eup %3281 }
 0x4af   : > { %v3222_v7 = vpack.i.bf16 %v1627_v51, %v1355_v1  ;;  %v1625_v11 = vmul.f32 %v3280_v52, %v1578_v4  ;;  %v3284_v42 = vpop.eup %3283  ;;  %v1354_v6 = vmul.f32 %v3282_v50, %v4310_v38  ;;  %v1249_v38 = vpop.xlane.xlu1 %1248  ;;  %v1052_v51 = vld [vmem:[%s1038_s23] sm:$0xff]  ;;  %v1053_v52 = vld [vmem:[%s1038_s23 + $0x8] sm:$0xff]  ;;  %s1027_s23 = scalar_lea.vmem [#allocation22], %s2911_s13 }
 0x4b0   : > { %3285 = vrcp.f32 %v1249_v38 }
 0x4b1   : > { %v3212_v13 = vpack.i.bf16 %v1625_v11, %v1353_v8  ;;  %3223 = vrot.lane.b32.xlu2 %v3222_v7, %s3811_s22  ;;  %v1796_v7 = vpack.c.bf16 %v1053_v52, %v1052_v51 }
 0x4b2   : > { %v1622_v16 = vpop.f32.mrf.mxu0 }
 0x4b3   : > { %3213 = vrot.lane.b32.xlu0 %v3212_v13, %s3812_s7 }
 0x4b6   : > { %v1580_v12 = vpop.f32.mrf.mxu2  ;;  %v3286_v27 = vpop.eup %3285 }
 0x4b7   : > { %v1352_v31 = vmul.f32 %v3286_v27, %v4339_v9 }
 0x4b8   : > { %v1599_v17 = vpop.f32.mrf.mxu3 }
 0x4b9   : > { %v1626_v14 = vmul.f32 %v3284_v42, %v1599_v17 }
 0x4bb   : > { %v3217_v61 = vpack.i.bf16 %v1626_v14, %v1354_v6  ;;  %1683 = vperm.xlu0 %3227, %v1054_v21   ;;  %v3032_v21 = vld [vmem:[#allocation14] sm:$0xff] }
 0x4bd   : > { %3218 = vrot.lane.b32.xlu1 %v3217_v61, %s3813_s10 }
 0x4c0   : > { %v1601_v15 = vpop.f32.mrf.mxu3 }
 0x4c5   : > { %1688 = vperm.xlu1 %3228, %v1055_v22   ;;  %v3248_v22 = vld [vmem:[#allocation19] ss:$0 sm:$0xff] }
 0x4da   : > { %v1522_v23 = vpop.xlane.xlu2 %1521 }
 0x4db   : > { %3287 = vrcp.f32 %v1522_v23 }
 0x4dc   : > { %3289 = vrcp.f32 %v3814_v63 }
 0x4e1   : > { %v3288_v30 = vpop.eup %3287 }
 0x4e2   : > { %v3290_v0 = vpop.eup %3289 }
 0x4e3   : > { %v1702_v1 = vmul.f32 32.0, %v3290_v0  ;;  %vm1706_vm12 = vweird.f32 %v3290_v0 }
 0x4e5   : > { %v1557_v10 = vpop.f32.mrf.mxu1  ;;  %v1703_v4 = vsub.f32 1.0, %v1702_v1 }
 0x4e6   : > { %v1624_v32 = vmul.f32 %v3288_v30, %v1557_v10  ;;  %v3033_v10 = vld [vmem:[#allocation14 + $0x8] sm:$0xff] }
 0x4e7   : > { %v1704_v8 = vmul.f32 %v3290_v0, %v1703_v4  ;;  %1788 = vmatpush.bf16.msra.mxu2 %v3033_v10 }
 0x4eb   : > { %1789 = vmatpush.bf16.msra.mxu2 %v3032_v21 }
 0x4ed   : > { %v1559_v18 = vpop.f32.mrf.mxu1 }
 0x50b   : > { %v3224_v26 = vpop.permute.xlu2 %3223 }
 0x50c   : > { %v3226_v36 = vunpack.i.h.bf16 %v3224_v26  ;;  %v3225_v37 = vunpack.i.l.bf16 %v3224_v26 }
 0x525   : > { %v3214_v25 = vpop.permute.xlu0 %3213 }
 0x526   : > { %v3216_v29 = vunpack.i.h.bf16 %v3214_v25  ;;  %v3215_v24 = vunpack.i.l.bf16 %v3214_v25 }
 0x528   : > { %v1640_v39 = vsel %vm1125_vm1, %v1624_v32, %v3216_v29  ;;  %v1368_v40 = vsel %vm1125_vm1, %v1352_v31, %v3215_v24 }
 0x52d   : > { %v4381_v49 = vpop.permute.xlu0 %1683 }
 0x52f   : > { %v3219_v33 = vpop.permute.xlu1 %3218 }
 0x530   : > { %v3221_v34 = vunpack.i.h.bf16 %v3219_v33  ;;  %v3220_v35 = vunpack.i.l.bf16 %v3219_v33 }
 0x532   : > { %v1370_v41 = vsel %vm1369_vm10, %v1368_v40, %v3220_v35  ;;  %v1641_v43 = vsel %vm1369_vm10, %v1640_v39, %v3221_v34 }
 0x533   : > { %v1372_v44 = vsel %vm1371_vm11, %v1370_v41, %v3225_v37  ;;  %v1642_v9 = vsel %vm1371_vm11, %v1641_v43, %v3226_v36 }
 0x534   : > { %v1643_v45 = vpack.c.bf16 %v1642_v9, %v1372_v44 }
 0x536   : > { %2952 = vmatmul.msk.bf16.vlgmr.msra.gmra.mxu1 %vm1082_vm0, %v1643_v45  ;;  %v3246_v45 = vld [vmem:[#allocation11] ss:$0 sm:$0xff] }
 0x537   : > { %v4386_v57 = vpop.permute.xlu1 %1688 }
 0x5b3   : > { %v1676_v48 = vpop.f32.mrf.mxu1 }
 0x5b4   : > { %v1677_v53 = vadd.f32 %v3245_v46, %v1676_v48 }
 0x5b6   : > { %v1691_v54 = vmul.f32 %v4381_v49, %v1677_v53 }
 0x5b8   : > { %v1693_v55 = vadd.f32 %v1691_v54, %v4183_v2  ;;  %v3035_v2 = vld [vmem:[#allocation17 + $0x8] sm:$0xff] }
 0x5b9   : > { %1826 = vmatpush.bf16.msra.mxu3 %v3035_v2  ;;  %v3247_v54 = vld [vmem:[#allocation13] ss:$0 sm:$0xff] }
 0x5ba   : > { %v1695_v56 = vsel %vm1082_vm0, %v1693_v55, 0.0 }
 0x5bb   : > { %v1678_v47 = vpop.f32.mrf.mxu1  ;;  %1696 = vadd.xlane.f32.xlu2 %v1695_v56 }
 0x5bc   : > { %v1679_v58 = vadd.f32 %v3245_v46, %v1678_v47 }
 0x5bd   : > { %1827 = vmatpush.bf16.msra.mxu3 %v3034_v5  ;;  %v3249_v5 = vld [vmem:[#allocation16] ss:$0 sm:$0xff] }
 0x5be   : > { %v1692_v59 = vmul.f32 %v4386_v57, %v1679_v58 }
 0x5c0   : > { %v1694_v60 = vadd.f32 %v1692_v59, %v4185_v3  ;;  %2970 = vmatmul.msk.bf16.vlgmr.msra.gmra.mxu3 %vm1082_vm0, %v1796_v7  ;;  %v1705_v3 = vadd.f32 %v3290_v0, %v1704_v8 }
 0x5c2   : > { %v1698_v62 = vsel %vm1082_vm0, %v1694_v60, 0.0  ;;  %v4396_v11 = vsel %vm1706_vm12, %v3290_v0, %v1705_v3 }
 0x5c3   : > { %1699 = vadd.xlane.f32.xlu1 %v1698_v62 }
 0x62e   : > { %v1697_v13 = vpop.xlane.xlu2 %1696 }
 0x62f   : > { %v1708_v16 = vmul.f32 %v4396_v11, %v1697_v13 }
 0x631   : > { %v1710_v50 = vsub.f32 %v1693_v55, %v1708_v16 }
 0x633   : > { %v1712_v12 = vmul.f32 %v1710_v50, %v1710_v50 }
 0x635   : > { %v1714_v42 = vsel %vm1082_vm0, %v1712_v12, 0.0 }
 0x636   : > { %v1700_v17 = vpop.xlane.xlu1 %1699  ;;  %1715 = vadd.xlane.f32.xlu0 %v1714_v42 }
 0x637   : > { %v1709_v6 = vmul.f32 %v4396_v11, %v1700_v17 }
 0x639   : > { %v1711_v14 = vsub.f32 %v1694_v60, %v1709_v6 }
 0x63b   : > { %v1713_v61 = vmul.f32 %v1711_v14, %v1711_v14 }
 0x63d   : > { %v1717_v15 = vsel %vm1082_vm0, %v1713_v61, 0.0 }
 0x63e   : > { %1718 = vadd.xlane.f32.xlu2 %v1717_v15 }
 0x643   : > { %v1829_v38 = vpop.f32.mrf.mxu3 }
 0x644   : > { %v1830_v27 = vadd.f32 %v3248_v22, %v1829_v38 }
 0x646   : > { %1848 = vrot.lane.b32.xlu1 %v1830_v27, %s3807_s14  ;;  %v4406_v30 = vpack.c.bf16 %v1830_v27, %v1830_v27 }
 0x648   : > { %v1868_v31 = vsel %vm1125_vm1, %v4406_v30, 0 }
 0x649   : > { %1877 = vmatpush.bf16.xpose.msrb.mxu0 %v1868_v31 }
 0x64a   : > { %1851 = vrot.lane.b32.xlu0 %v1830_v27, %s3805_s24 }
 0x64b   : > { %v1831_v39 = vpop.f32.mrf.mxu3 }
 0x64c   : > { %v4411_v41 = vadd.f32 %v3248_v22, %v1831_v39 }
 0x64e   : > { %1845 = vrot.lane.b32.xlu1 %v1830_v27, %s3806_s0 }
 0x656   : > { %2120 = vrot.lane.b32.xlu1 %v4411_v41, %s3807_s14 }
 0x6a9   : > { %v1716_v18 = vpop.xlane.xlu0 %1715 }
 0x6aa   : > { %v1720_v19 = vmul.f32 %v1716_v18, %v4396_v11 }
 0x6ac   : > { %v1722_v20 = vadd.f32 1e-05, %v1720_v19 }
 0x6ae   : > { %3291 = vrsqrt.f32 %v1722_v20  ;;  %vm1730_vm14 = vweird.f32 %v1722_v20 }
 0x6b1   : > { %v1719_v23 = vpop.xlane.xlu2 %1718 }
 0x6b2   : > { %v1721_v25 = vmul.f32 %v1719_v23, %v4396_v11 }
 0x6b4   : > { %v3292_v29 = vpop.eup %3291  ;;  %v1723_v24 = vadd.f32 1e-05, %v1721_v25 }
 0x6b5   : > { %v1725_v26 = vmul.f32 %v3292_v29, %v1722_v20  ;;  %vm1731_vm13 = vweird.f32 %v3292_v29 }
 0x6b6   : > { %3293 = vrsqrt.f32 %v1723_v24  ;;  %vm1732_vm15 = vmor %vm1730_vm14, %vm1731_vm13  ;;  %vm1740_vm4 = vweird.f32 %v1723_v24 }
 0x6b7   : > { %v1726_v32 = vmul.f32 %v3292_v29, %v1725_v26 }
 0x6b8   : > { %v1849_v1 = vpop.permute.xlu1 %1848 }
 0x6b9   : > { %v1727_v33 = vmul.f32 0.5, %v1726_v32  ;;  %v1862_v2 = vpack.c.bf16 %v1849_v1, %v1849_v1 }
 0x6bb   : > { %v1728_v34 = vsub.f32 1.5, %v1727_v33  ;;  %v1906_v51 = vsel %vm1125_vm1, %v1862_v2, 0  ;;  %v2040_v12 = vunpack.c.l.b16 %v1862_v2 }
 0x6bc   : > { %v3294_v35 = vpop.eup %3293  ;;  %v1852_v62 = vpop.permute.xlu0 %1851  ;;  %1915 = vmatpush.bf16.xpose.msrb.mxu2 %v1906_v51 }
 0x6bd   : > { %v1729_v36 = vmul.f32 %v3292_v29, %v1728_v34  ;;  %v1735_v37 = vmul.f32 %v3294_v35, %v1723_v24  ;;  %vm1741_vm3 = vweird.f32 %v3294_v35  ;;  %v1863_v63 = vpack.c.bf16 %v1852_v62, %v1852_v62 }
 0x6be   : > { %vm1742_vm5 = vmor %vm1740_vm4, %vm1741_vm3  ;;  %v2041_v42 = vpack.c.b16 %v2040_v12, %v2040_v12  ;;  %v1992_v62 = vunpack.c.l.b16 %v4406_v30  ;;  %vm2558_vm3 = vcmask 523264  }
 0x6bf   : > { %v1736_v40 = vmul.f32 %v3294_v35, %v1735_v37  ;;  %v1733_v43 = vsel %vm1732_vm15, %v3292_v29, %v1729_v36  ;;  %v1925_v0 = vsel %vm1125_vm1, %v1863_v63, 0  ;;  %v2064_v16 = vunpack.c.l.b16 %v1863_v63  ;;  %v1854_v37 = vld [vmem:[%s4146_s27] sm:$0x1] }
 0x6c0   : > { %v1744_v46 = vmul.f32 %v1733_v43, %v1710_v50  ;;  %1934 = vmatpush.bf16.xpose.msrb.mxu3 %v1925_v0  ;;  %v1846_v52 = vpop.permute.xlu1 %1845  ;;  %vm1855_vm6 = vcmp.ne.f32.partialorder %v1854_v37, 0.0  ;;  %v1993_v0 = vpack.c.b16 %v1992_v62, %v1992_v62  ;;  %v2979_v37 = vld [vmem:[%s4146_s27 + $0x1] sm:$0x1] }
 0x6c1   : > { %v1737_v44 = vmul.f32 0.5, %v1736_v40  ;;  %v1861_v4 = vpack.c.bf16 %v1846_v52, %v1846_v52  ;;  %v2065_v50 = vpack.c.b16 %v2064_v16, %v2064_v16  ;;  %v1940_v39 = vsel %vm1855_vm6, 1, %v3810_v28 }
 0x6c2   : > { %v1750_v55 = vmul.f32 %v3246_v45, %v1744_v46  ;;  %v1941_v40 = vperm.slane %v1940_v39, 0  ;;  %vm2128_vm8 = vcmp.ne.f32.partialorder %v2979_v37, 0.0 }
 0x6c3   : > { %v1738_v9 = vsub.f32 1.5, %v1737_v44  ;;  %v1887_v7 = vsel %vm1125_vm1, %v1861_v4, 0  ;;  %v2016_v17 = vunpack.c.l.b16 %v1861_v4 }
 0x6c4   : > { %v4415_v58 = vadd.f32 %v3247_v54, %v1750_v55  ;;  %1896 = vmatpush.bf16.xpose.msrb.mxu1 %v1887_v7  ;;  %vm4454_vm7 = vcmp.eq.s32.totalorder %v1941_v40, 1  ;;  %v2213_v40 = vsel %vm2128_vm8, 1, %v3810_v28 }
 0x6c5   : > { %v1739_v48 = vmul.f32 %v3294_v35, %v1738_v9 }
 0x6c7   : > { %v1743_v53 = vsel %vm1742_vm5, %v3294_v35, %v1739_v48 }
 0x6c8   : > { %v1745_v56 = vmul.f32 %v1743_v53, %v1711_v14  ;;  %v2017_v14 = vpack.c.b16 %v2016_v17, %v2016_v17  ;;  %v2121_v20 = vpop.permute.xlu1 %2120 }
 0x6c9   : > { %v4440_v21 = vpack.c.bf16 %v2121_v20, %v2121_v20 }
 0x6ca   : > { %v1751_v47 = vmul.f32 %v3246_v45, %v1745_v56 }
 0x6cb   : > { %v2179_v23 = vsel %vm1125_vm1, %v4440_v21, 0  ;;  %v2313_v62 = vunpack.c.l.b16 %v4440_v21 }
 0x6cc   : > { %v4417_v59 = vadd.f32 %v3247_v54, %v1751_v47 }
 0x6ce   : > { %v1758_v60 = vpack.c.bf16 %v4417_v59, %v4415_v58 }
 0x6d0   : > { %2961 = vmatmul.msk.bf16.vlgmr.msra.gmra.mxu2 %vm1082_vm0, %v1758_v60 }
 0x753   : > { %v1791_v8 = vpop.f32.mrf.mxu2 }
 0x754   : > { %v1792_v3 = vadd.f32 %v3249_v5, %v1791_v8 }
 0x756   : > { %v1856_v13 = vpack.c.bf16 %v1792_v3, %v1792_v3  ;;  %1841 = vrot.lane.b32.xlu0 %v1792_v3, %s3805_s24  ;;  %1838 = vrot.lane.b32.xlu2 %v1792_v3, %s3807_s14 }
 0x758   : > { %2971 = vmatmul.msk.bf16.vlgmr.msrb.gmra.mxu0 %vm1125_vm1, %v1856_v13 }
 0x75b   : > { %v1793_v6 = vpop.f32.mrf.mxu2 }
 0x75c   : > { %v4433_v61 = vadd.f32 %v3249_v5, %v1793_v6  ;;  %v4494_v6 = vpack.c.bf16 %v4411_v41, %v4411_v41 }
 0x75e   : > { %2066 = vrot.lane.b32.xlu0 %v2065_v50, %s3808_s4  ;;  %1835 = vrot.lane.b32.xlu2 %v1792_v3, %s3806_s0 }
 0x766   : > { %2123 = vrot.lane.b32.xlu0 %v4411_v41, %s3805_s24  ;;  %2042 = vrot.lane.b32.xlu2 %v2041_v42, %s3808_s4 }
 0x76e   : > { %2110 = vrot.lane.b32.xlu0 %v4433_v61, %s3807_s14  ;;  %2018 = vrot.lane.b32.xlu2 %v2017_v14, %s3808_s4 }
 0x7b0   : > { %v1839_v15 = vpop.permute.xlu2 %1838 }
 0x7b1   : > { %v1858_v10 = vpack.c.bf16 %v1839_v15, %v1839_v15 }
 0x7b3   : > { %2973 = vmatmul.msk.bf16.vlgmr.msrb.gmra.mxu2 %vm1125_vm1, %v1858_v10  ;;  %v2141_v10 = vsel %vm1125_vm1, %v4494_v6, 0 }
 0x7b8   : > { %v1836_v18 = vpop.permute.xlu2 %1835 }
 0x7b9   : > { %v1857_v19 = vpack.c.bf16 %v1836_v18, %v1836_v18 }
 0x7bb   : > { %2972 = vmatmul.msk.bf16.vlgmr.msrb.gmra.mxu1 %vm1125_vm1, %v1857_v19 }
 0x7c0   : > { %v2043_v22 = vpop.permute.xlu2 %2042 }
 0x7c1   : > { %v2048_v38 = vsel %vm1272_vm2, %v2043_v22, 0 }
 0x7c2   : > { %2057 = vmatpush.bf16.msra.mxu2 %v2048_v38 }
 0x7c6   : > { %2188 = vmatpush.bf16.xpose.msrb.mxu2 %v2179_v23 }
 0x7c8   : > { %v1842_v25 = vpop.permute.xlu0 %1841  ;;  %v2019_v27 = vpop.permute.xlu2 %2018 }
 0x7c9   : > { %v1859_v29 = vpack.c.bf16 %v1842_v25, %v1842_v25  ;;  %v2024_v24 = vsel %vm1272_vm2, %v2019_v27, 0 }
 0x7ca   : > { %2033 = vmatpush.bf16.msra.mxu1 %v2024_v24 }
 0x7cb   : > { %2974 = vmatmul.msk.bf16.vlgmr.msrb.gmra.mxu3 %vm1125_vm1, %v1859_v29 }
 0x7d0   : > { %v2067_v26 = vpop.permute.xlu0 %2066 }
 0x7d1   : > { %v2072_v31 = vsel %vm1272_vm2, %v2067_v26, 0 }
 0x7d2   : > { %2081 = vmatpush.bf16.msra.mxu3 %v2072_v31 }
 0x7d5   : > { %v1879_v32 = vpop.f32.mrf.mxu0 }
 0x7d6   : > { %v1943_v1 = vsel %vm4454_vm7, %v1879_v32, -1e+30 }
 0x7d7   : > { %v1947_v2 = vsel %vm1125_vm1, %v1943_v1, -inf }
 0x7d8   : > { %v2124_v33 = vpop.permute.xlu0 %2123 }
 0x7d9   : > { %v4448_v34 = vpack.c.bf16 %v2124_v33, %v2124_v33 }
 0x7db   : > { %v2198_v35 = vsel %vm1125_vm1, %v4448_v34, 0 }
 0x7dc   : > { %2207 = vmatpush.bf16.xpose.msrb.mxu3 %v2198_v35  ;;  %v2129_v35 = vpack.c.bf16 %v4433_v61, %v4433_v61 }
 0x7dd   : > { %v1881_v36 = vpop.f32.mrf.mxu0 }
 0x7e0   : > { %v2111_v51 = vpop.permute.xlu0 %2110 }
 0x7e1   : > { %v2131_v38 = vpack.c.bf16 %v2111_v51, %v2111_v51 }
 0x836   : > { %v1917_v44 = vpop.f32.mrf.mxu2 }
 0x837   : > { %v1945_v9 = vsel %vm4454_vm7, %v1917_v44, -1e+30  ;;  %v2214_v44 = vperm.slane %v2213_v40, 0 }
 0x838   : > { %v1898_v45 = vpop.f32.mrf.mxu1  ;;  %v1953_v46 = vsel %vm1125_vm1, %v1945_v9, -inf }
 0x839   : > { %v1944_v48 = vsel %vm4454_vm7, %v1898_v45, -1e+30  ;;  %1954 = vmax.xlane.f32.xlu0 %v1953_v46  ;;  %vm4521_vm9 = vcmp.eq.s32.totalorder %v2214_v44, 1 }
 0x83a   : > { %v1950_v53 = vsel %vm1125_vm1, %v1944_v48, -inf }
 0x83b   : > { %1951 = vmax.xlane.f32.xlu2 %v1950_v53 }
 0x83e   : > { %v1919_v54 = vpop.f32.mrf.mxu2 }
 0x840   : > { %v1900_v55 = vpop.f32.mrf.mxu1 }
 0x84d   : > { %2107 = vrot.lane.b32.xlu0 %v4433_v61, %s3806_s0 }
 0x84e   : > { %v1936_v56 = vpop.f32.mrf.mxu3 }
 0x84f   : > { %v1946_v47 = vsel %vm4454_vm7, %v1936_v56, -1e+30 }
 0x850   : > { %v1956_v60 = vsel %vm1125_vm1, %v1946_v47, -inf }
 0x851   : > { %1957 = vmax.xlane.f32.xlu1 %v1956_v60 }
 0x853   : > { %2117 = vrot.lane.b32.xlu2 %v4411_v41, %s3806_s0  ;;  %s4774_s0 = sld [smem:[#allocation51_spill]] }
 0x856   : > { %v1938_v63 = vpop.f32.mrf.mxu3 }
 0x857   : > { %v2337_v63 = vunpack.c.l.b16 %v4448_v34 }
 0x85b   : > { %1994 = vrot.lane.b32.xlu2 %v1993_v0, %s3808_s4  ;;  %v2314_v0 = vpack.c.b16 %v2313_v62, %v2313_v62 }
 0x86a   : > { %2113 = vrot.lane.b32.xlu1 %v4433_v61, %s3805_s24  ;;  %s2650_s24 = scalar_lea.hbm %s4778_s11, %s3044_s3 }
 0x86b   : > { %s2653_s14 = sshll.u32 %s2650_s24, 4  ;;  %s2654_s14 = int_to_ptr.hbm [resolvable:$true] %s2653_s14 }
 0x894   : > { %1948 = vmax.xlane.f32.xlu1 %v1947_v2 }
 0x8ac   : > { %v1955_v52 = vpop.xlane.xlu0 %1954 }
 0x8ad   : > { %v1961_v4 = vsub.f32 %v1945_v9, %v1955_v52 }
 0x8ae   : > { %v1952_v5 = vpop.xlane.xlu2 %1951 }
 0x8af   : > { %v1967_v7 = vmul.f32 1.442695, %v1961_v4  ;;  %v1960_v8 = vsub.f32 %v1944_v48, %v1952_v5  ;;  %v2265_v4 = vunpack.c.l.b16 %v4494_v6 }
 0x8b1   : > { %3295 = vpow2.f32 %v1967_v7  ;;  %v1965_v30 = vmul.f32 1.442695, %v1960_v8  ;;  %v2266_v5 = vpack.c.b16 %v2265_v4, %v2265_v4 }
 0x8b3   : > { %3297 = vpow2.f32 %v1965_v30 }
 0x8b6   : > { %v2118_v3 = vpop.permute.xlu2 %2117 }
 0x8b7   : > { %v4478_v13 = vpop.eup %3295  ;;  %v4480_v16 = vpack.c.bf16 %v2118_v3, %v2118_v3 }
 0x8b8   : > { %v1989_v50 = vpack.c.bf16 %v4478_v13, %v4478_v13 }
 0x8b9   : > { %v4484_v12 = vpop.eup %3297  ;;  %v2160_v42 = vsel %vm1125_vm1, %v4480_v16, 0  ;;  %v2289_v21 = vunpack.c.l.b16 %v4480_v16  ;;  %v1977_v16 = vsel %vm1125_vm1, %v4478_v13, 0.0 }
 0x8ba   : > { %v1988_v17 = vpack.c.bf16 %v4484_v12, %v4484_v12  ;;  %2977 = vmatmul.msk.bf16.vlgmr.msra.gmra.mxu2 %vm1125_vm1, %v1989_v50  ;;  %2169 = vmatpush.bf16.xpose.msrb.mxu1 %v2160_v42 }
 0x8bb   : > { %v2290_v34 = vpack.c.b16 %v2289_v21, %v2289_v21 }
 0x8bc   : > { %2976 = vmatmul.msk.bf16.vlgmr.msra.gmra.mxu1 %vm1125_vm1, %v1988_v17  ;;  %v1974_v17 = vsel %vm1125_vm1, %v4484_v12, 0.0 }
 0x8be   : > { %v1995_v14 = vpop.permute.xlu2 %1994 }
 0x8bf   : > { %v2000_v15 = vsel %vm1272_vm2, %v1995_v14, 0  ;;  %v2108_v20 = vpop.permute.xlu0 %2107 }
 0x8c0   : > { %2009 = vmatpush.bf16.msra.mxu0 %v2000_v15  ;;  %v2130_v23 = vpack.c.bf16 %v2108_v20, %v2108_v20 }
 0x8c4   : > { %2150 = vmatpush.bf16.xpose.msrb.mxu0 %v2141_v10  ;;  %v1958_v18 = vpop.xlane.xlu1 %1957 }
 0x8c5   : > { %v1962_v19 = vsub.f32 %v1946_v47, %v1958_v18 }
 0x8c7   : > { %v1969_v22 = vmul.f32 1.442695, %v1962_v19 }
 0x8c9   : > { %3299 = vpow2.f32 %v1969_v22 }
 0x8ca   : > { %2982 = vmatmul.msk.bf16.vlgmr.msrb.gmra.mxu2 %vm1125_vm1, %v2131_v38 }
 0x8cc   : > { %2981 = vmatmul.msk.bf16.vlgmr.msrb.gmra.mxu1 %vm1125_vm1, %v2130_v23 }
 0x8cf   : > { %v4501_v41 = vpop.eup %3299 }
 0x8d0   : > { %v1990_v25 = vpack.c.bf16 %v4501_v41, %v4501_v41  ;;  %v1980_v14 = vsel %vm1125_vm1, %v4501_v41, 0.0 }
 0x8d2   : > { %2978 = vmatmul.msk.bf16.vlgmr.msra.gmra.mxu3 %vm1125_vm1, %v1990_v25 }
 0x8dc   : > { %v2114_v27 = vpop.permute.xlu1 %2113 }
 0x8dd   : > { %v2132_v29 = vpack.c.bf16 %v2114_v27, %v2114_v27 }
 0x8e2   : > { %2983 = vmatmul.msk.bf16.vlgmr.msrb.gmra.mxu3 %vm1125_vm1, %v2132_v29 }
 0x907   : > { %v1949_v24 = vpop.xlane.xlu1 %1948 }
 0x908   : > { %v1959_v26 = vsub.f32 %v1943_v1, %v1949_v24  ;;  %v2338_v1 = vpack.c.b16 %v2337_v63, %v2337_v63 }
 0x90a   : > { %v1963_v31 = vmul.f32 1.442695, %v1959_v26 }
 0x90c   : > { %3301 = vpow2.f32 %v1963_v31 }
 0x912   : > { %v4507_v32 = vpop.eup %3301 }
 0x913   : > { %v1987_v33 = vpack.c.bf16 %v4507_v32, %v4507_v32  ;;  %v1971_v29 = vsel %vm1125_vm1, %v4507_v32, 0.0 }
 0x915   : > { %2975 = vmatmul.msk.bf16.vlgmr.msra.gmra.mxu0 %vm1125_vm1, %v1987_v33 }
 0x925   : > { %2980 = vmatmul.msk.bf16.vlgmr.msrb.gmra.mxu0 %vm1125_vm1, %v2129_v35 }
 0x939   : > { %v4515_v36 = vpop.f32.mrf.mxu1 }
 0x93d   : > { %v4518_v39 = vpop.f32.mrf.mxu2 }
 0x941   : > { %v2037_v43 = vpop.f32.mrf.mxu1 }
 0x945   : > { %v2061_v9 = vpop.f32.mrf.mxu2 }
 0x949   : > { %v2171_v46 = vpop.f32.mrf.mxu1 }
 0x94a   : > { %v2217_v61 = vsel %vm4521_vm9, %v2171_v46, -1e+30 }
 0x94b   : > { %v2223_v48 = vsel %vm1125_vm1, %v2217_v61, -inf }
 0x94c   : > { %2224 = vmax.xlane.f32.xlu1 %v2223_v48 }
 0x94d   : > { %v2190_v53 = vpop.f32.mrf.mxu2 }
 0x94e   : > { %v2218_v54 = vsel %vm4521_vm9, %v2190_v53, -1e+30 }
 0x94f   : > { %v2226_v28 = vsel %vm1125_vm1, %v2218_v54, -inf }
 0x950   : > { %2227 = vmax.xlane.f32.xlu0 %v2226_v28 }
 0x951   : > { %v2173_v55 = vpop.f32.mrf.mxu1 }
 0x955   : > { %v4531_v56 = vpop.f32.mrf.mxu3  ;;  %v2192_v47 = vpop.f32.mrf.mxu2 }
 0x95d   : > { %v2085_v60 = vpop.f32.mrf.mxu3 }
 0x964   : > { %2315 = vrot.lane.b32.xlu0 %v2314_v0, %s3808_s4 }
 0x965   : > { %v2209_v2 = vpop.f32.mrf.mxu3  ;;  %2339 = vrot.lane.b32.xlu1 %v2338_v1, %s3808_s4 }
 0x966   : > { %v2219_v51 = vsel %vm4521_vm9, %v2209_v2, -1e+30 }
 0x967   : > { %v2229_v52 = vsel %vm1125_vm1, %v2219_v51, -inf }
 0x968   : > { %2230 = vmax.xlane.f32.xlu2 %v2229_v52 }
 0x96d   : > { %v2211_v7 = vpop.f32.mrf.mxu3  ;;  %2267 = vrot.lane.b32.xlu1 %v2266_v5, %s3808_s4 }
 0x980   : > { %2291 = vrot.lane.b32.xlu2 %v2290_v34, %s3808_s4  ;;  %s3709_s4 = sshra.s32 %s2654_s14, 4  ;;  %s3710_s4 = int_to_ptr.hbm [resolvable:$true] %s3709_s4 }
 0x981   : > { %p3716_p9 = scmp.lt.s32.totalorder %s3710_s4, %s4778_s11 }
 0x992   : > { %v4544_v8 = vpop.f32.mrf.mxu0 }
 0x99a   : > { %v2013_v30 = vpop.f32.mrf.mxu0 }
 0x9a2   : > { %v2152_v3 = vpop.f32.mrf.mxu0 }
 0x9a3   : > { %v2216_v50 = vsel %vm4521_vm9, %v2152_v3, -1e+30 }
 0x9a4   : > { %v2220_v42 = vsel %vm1125_vm1, %v2216_v50, -inf }
 0x9a5   : > { %2221 = vmax.xlane.f32.xlu0 %v2220_v42 }
 0x9a9   : > { %1975 = vadd.xlane.f32.xlu2 %v1974_v17 }
 0x9aa   : > { %v2154_v6 = vpop.f32.mrf.mxu0 }
 0x9ad   : > { %1978 = vadd.xlane.f32.xlu0 %v1977_v16 }
 0x9b1   : > { %1981 = vadd.xlane.f32.xlu2 %v1980_v14 }
 0x9bf   : > { %v2225_v15 = vpop.xlane.xlu1 %2224 }
 0x9c0   : > { %v2233_v10 = vsub.f32 %v2217_v61, %v2225_v15 }
 0x9c2   : > { %v2238_v18 = vmul.f32 1.442695, %v2233_v10 }
 0x9c3   : > { %v2228_v19 = vpop.xlane.xlu0 %2227 }
 0x9c4   : > { %3303 = vpow2.f32 %v2238_v18  ;;  %v2234_v20 = vsub.f32 %v2218_v54, %v2228_v19 }
 0x9c6   : > { %v2240_v22 = vmul.f32 1.442695, %v2234_v20 }
 0x9c8   : > { %3305 = vpow2.f32 %v2240_v22 }
 0x9ca   : > { %v3304_v38 = vpop.eup %3303 }
 0x9cb   : > { %v2247_v12 = vsel %vm1125_vm1, %v3304_v38, 0.0  ;;  %v2261_v9 = vpack.c.bf16 %v3304_v38, %v3304_v38  ;;  %v3036_v38 = vld [vmem:[%s4697_s15] sm:$0xff] }
 0x9cc   : > { %2248 = vadd.xlane.f32.xlu1 %v2247_v12 }
 0x9ce   : > { %v3306_v23 = vpop.eup %3305 }
 0x9cf   : > { %v2250_v13 = vsel %vm1125_vm1, %v3306_v23, 0.0  ;;  %v2262_v26 = vpack.c.bf16 %v3306_v23, %v3306_v23 }
 0x9d0   : > { %2251 = vadd.xlane.f32.xlu0 %v2250_v13 }
 0x9d6   : > { %v2316_v25 = vpop.permute.xlu0 %2315 }
 0x9d7   : > { %v2321_v41 = vsel %vm1272_vm2, %v2316_v25, 0  ;;  %v2340_v27 = vpop.permute.xlu1 %2339 }
 0x9d8   : > { %v2345_v24 = vsel %vm1272_vm2, %v2340_v27, 0  ;;  %2330 = vmatpush.bf16.msra.mxu2 %v2321_v41  ;;  %1972 = vadd.xlane.f32.xlu0 %v1971_v29 }
 0x9d9   : > { %2354 = vmatpush.bf16.msra.mxu3 %v2345_v24 }
 0x9db   : > { %2986 = vmatmul.msk.bf16.vlgmr.msra.gmra.mxu2 %vm1125_vm1, %v2262_v26  ;;  %v2231_v31 = vpop.xlane.xlu2 %2230 }
 0x9dc   : > { %v2235_v33 = vsub.f32 %v2219_v51, %v2231_v31 }
 0x9de   : > { %v2242_v35 = vmul.f32 1.442695, %v2235_v33 }
 0x9df   : > { %v2268_v37 = vpop.permute.xlu1 %2267 }
 0x9e0   : > { %3307 = vpow2.f32 %v2242_v35  ;;  %v2273_v40 = vsel %vm1272_vm2, %v2268_v37, 0 }
 0x9e1   : > { %2282 = vmatpush.bf16.msra.mxu0 %v2273_v40 }
 0x9e3   : > { %v2292_v43 = vpop.permute.xlu2 %2291 }
 0x9e4   : > { %v2297_v44 = vsel %vm1272_vm2, %v2292_v43, 0 }
 0x9e5   : > { %2306 = vmatpush.bf16.msra.mxu1 %v2297_v44 }
 0x9e6   : > { %v3308_v32 = vpop.eup %3307 }
 0x9e7   : > { %v2263_v45 = vpack.c.bf16 %v3308_v32, %v3308_v32  ;;  %v2253_v46 = vsel %vm1125_vm1, %v3308_v32, 0.0 }
 0x9e8   : > { %2985 = vmatmul.msk.bf16.vlgmr.msra.gmra.mxu1 %vm1125_vm1, %v2261_v9  ;;  %2254 = vadd.xlane.f32.xlu1 %v2253_v46 }
 0x9e9   : > { %2987 = vmatmul.msk.bf16.vlgmr.msra.gmra.mxu3 %vm1125_vm1, %v2263_v45 }
 0xa18   : > { %v2222_v61 = vpop.xlane.xlu0 %2221 }
 0xa19   : > { %v2232_v48 = vsub.f32 %v2216_v50, %v2222_v61  ;;  %v3250_v61 = vld [vmem:[%s4698_s16] ss:$0 sm:$0xff] }
 0xa1b   : > { %v2236_v53 = vmul.f32 1.442695, %v2232_v48 }
 0xa1c   : > { %v1976_v62 = vpop.xlane.xlu2 %1975 }
 0xa1d   : > { %3309 = vpow2.f32 %v2236_v53 }
 0xa20   : > { %v1979_v47 = vpop.xlane.xlu0 %1978 }
 0xa21   : > { %3311 = vrcp.f32 %v1979_v47 }
 0xa23   : > { %v3310_v54 = vpop.eup %3309 }
 0xa24   : > { %v2260_v28 = vpack.c.bf16 %v3310_v54, %v3310_v54  ;;  %v2244_v55 = vsel %vm1125_vm1, %v3310_v54, 0.0  ;;  %v1982_v4 = vpop.xlane.xlu2 %1981 }
 0xa25   : > { %2245 = vadd.xlane.f32.xlu2 %v2244_v55 }
 0xa26   : > { %2984 = vmatmul.msk.bf16.vlgmr.msra.gmra.mxu0 %vm1125_vm1, %v2260_v28 }
 0xa27   : > { %v3312_v0 = vpop.eup %3311 }
 0xa28   : > { %v2089_v51 = vmul.f32 %v3312_v0, %v4518_v39 }
 0xa3f   : > { %v2249_v63 = vpop.xlane.xlu1 %2248 }
 0xa43   : > { %v2252_v60 = vpop.xlane.xlu0 %2251 }
 0xa44   : > { %3313 = vrcp.f32 %v2252_v60 }
 0xa45   : > { %3315 = vrcp.f32 %v1976_v62 }
 0xa46   : > { %3317 = vrcp.f32 %v2249_v63 }
 0xa47   : > { %3319 = vrcp.f32 %v1982_v4 }
 0xa4a   : > { %v3314_v1 = vpop.eup %3313 }
 0xa4b   : > { %v3316_v7 = vpop.eup %3315  ;;  %v1973_v12 = vpop.xlane.xlu0 %1972 }
 0xa4c   : > { %v3318_v34 = vpop.eup %3317  ;;  %v2088_v3 = vmul.f32 %v3316_v7, %v4515_v36  ;;  %v3037_v36 = vld [vmem:[%s4697_s15 + $0x8] sm:$0xff] }
 0xa4d   : > { %v3320_v6 = vpop.eup %3319  ;;  %2409 = vmatpush.bf16.msrb.mxu0 %v3037_v36 }
 0xa4e   : > { %v2090_v14 = vmul.f32 %v3320_v6, %v4531_v56 }
 0xa51   : > { %2410 = vmatpush.bf16.msrb.mxu0 %v3036_v38 }
 0xa5b   : > { %v2255_v21 = vpop.xlane.xlu1 %2254 }
 0xa5c   : > { %3321 = vrcp.f32 %v2255_v21 }
 0xa5d   : > { %3323 = vrcp.f32 %v1973_v12 }
 0xa5e   : > { %v2332_v2 = vpop.f32.mrf.mxu2 }
 0xa5f   : > { %v2362_v52 = vmul.f32 %v3314_v1, %v2332_v2 }
 0xa61   : > { %v3234_v5 = vpack.i.bf16 %v2362_v52, %v2089_v51 }
 0xa62   : > { %v3322_v39 = vpop.eup %3321 }
 0xa63   : > { %3235 = vrot.lane.b32.xlu0 %v3234_v5, %s3813_s10  ;;  %v3324_v23 = vpop.eup %3323 }
 0xa64   : > { %v2087_v29 = vmul.f32 %v3324_v23, %v4544_v8  ;;  %v3251_v23 = vld [vmem:[%s4699_s17] ss:$0 sm:$0xff] }
 0xa65   : > { %v2308_v30 = vpop.f32.mrf.mxu1 }
 0xa66   : > { %v2361_v50 = vmul.f32 %v3318_v34, %v2308_v30  ;;  %v2334_v42 = vpop.f32.mrf.mxu2 }
 0xa67   : > { %v3038_v42 = vld [vmem:[#allocation20] sm:$0xff] }
 0xa68   : > { %v3229_v17 = vpack.i.bf16 %v2361_v50, %v2088_v3 }
 0xa6a   : > { %3230 = vrot.lane.b32.xlu1 %v3229_v17, %s3812_s7 }
 0xa6c   : > { %v2356_v16 = vpop.f32.mrf.mxu3 }
 0xa6d   : > { %v2363_v15 = vmul.f32 %v3322_v39, %v2356_v16  ;;  %v2310_v10 = vpop.f32.mrf.mxu1 }
 0xa6f   : > { %v3239_v18 = vpack.i.bf16 %v2363_v15, %v2090_v14 }
 0xa71   : > { %3240 = vrot.lane.b32.xlu2 %v3239_v18, %s3811_s22 }
 0xa74   : > { %v2358_v19 = vpop.f32.mrf.mxu3 }
 0xa98   : > { %v2246_v56 = vpop.xlane.xlu2 %2245 }
 0xa99   : > { %3325 = vrcp.f32 %v2246_v56 }
 0xa9f   : > { %v3326_v25 = vpop.eup %3325 }
 0xaa3   : > { %v2284_v20 = vpop.f32.mrf.mxu0 }
 0xaa4   : > { %v2360_v24 = vmul.f32 %v3326_v25, %v2284_v20 }
 0xaab   : > { %v2286_v22 = vpop.f32.mrf.mxu0 }
 0xacb   : > { %v3241_v41 = vpop.permute.xlu2 %3240 }
 0xacc   : > { %v3243_v37 = vunpack.i.h.bf16 %v3241_v41  ;;  %v3242_v40 = vunpack.i.l.bf16 %v3241_v41 }
 0xad5   : > { %v3236_v13 = vpop.permute.xlu0 %3235 }
 0xad6   : > { %v3238_v33 = vunpack.i.h.bf16 %v3236_v13  ;;  %v3237_v35 = vunpack.i.l.bf16 %v3236_v13 }
 0xadc   : > { %v3231_v27 = vpop.permute.xlu1 %3230 }
 0xadd   : > { %v3233_v26 = vunpack.i.h.bf16 %v3231_v27  ;;  %v3232_v31 = vunpack.i.l.bf16 %v3231_v27  ;;  %v3252_v27 = vld [vmem:[%s4772_s6] ss:$0 sm:$0xff]  ;;  %s4776_s6 = sld [smem:[#allocation54_spill]] }
 0xadf   : > { %v2103_v43 = vsel %vm1125_vm1, %v2087_v29, %v3232_v31  ;;  %v2376_v44 = vsel %vm1125_vm1, %v2360_v24, %v3233_v26 }
 0xae0   : > { %v2104_v32 = vsel %vm1369_vm10, %v2103_v43, %v3237_v35  ;;  %v2377_v9 = vsel %vm1369_vm10, %v2376_v44, %v3238_v33  ;;  %v3041_v43 = vld [vmem:[%s4773_s21 + $0x8] sm:$0xff]  ;;  %v3040_v44 = vld [vmem:[%s4773_s21] sm:$0xff] }
 0xae1   : > { %v2105_v45 = vsel %vm1371_vm11, %v2104_v32, %v3242_v40  ;;  %v2378_v46 = vsel %vm1371_vm11, %v2377_v9, %v3243_v37  ;;  %v3043_v37 = vld [vmem:[%s4773_s21 + $0x18] sm:$0xff]  ;;  %v3042_v40 = vld [vmem:[%s4773_s21 + $0x10] sm:$0xff]  ;;  %v3253_v9 = vld [vmem:[%s4774_s0] ss:$0 sm:$0xff]  ;;  %s2651_s0 = sshll.u32 %s1027_s23, 4  ;;  %s2652_s0 = int_to_ptr.vmem [resolvable:$true] %s2651_s0 }
 0xae2   : > { %v2379_v8 = vpack.c.bf16 %v2378_v46, %v2105_v45  ;;  %2566 = vmatpush.bf16.msrb.mxu2 %v3043_v37 }
 0xae4   : > { %2996 = vmatmul.msk.bf16.vlgmr.msrb.gmra.mxu0 %vm1082_vm0, %v2379_v8 }
 0xae6   : > { %2567 = vmatpush.bf16.msrb.mxu2 %v3042_v40 }
 0xaea   : > { %2568 = vmatpush.bf16.msrb.mxu2 %v3041_v43 }
 0xaee   : > { %2569 = vmatpush.bf16.msrb.mxu2 %v3040_v44 }
 0xb61   : > { %v2412_v48 = vpop.f32.mrf.mxu0 }
 0xb62   : > { %v2413_v53 = vadd.f32 %v3250_v61, %v2412_v48 }
 0xb64   : > { %v2417_v54 = vmul.f32 %v2413_v53, %v4381_v49 }
 0xb66   : > { %v2419_v28 = vadd.f32 %v2417_v54, %v4415_v58 }
 0xb68   : > { %v2421_v55 = vsel %vm1082_vm0, %v2419_v28, 0.0 }
 0xb69   : > { %v2414_v47 = vpop.f32.mrf.mxu0  ;;  %2422 = vadd.xlane.f32.xlu0 %v2421_v55  ;;  %v3254_v55 = vld [vmem:[%s4775_s1] ss:$0 sm:$0xff]  ;;  %s3711_s1 = scalar_lea.hbm %s3710_s4, 16 }
 0xb6a   : > { %v2415_v60 = vadd.f32 %v3250_v61, %v2414_v47  ;;  %p3712_p1 = scmp.ne.s32.totalorder %s3710_s4, %s3711_s1 }
 0xb6c   : > { %v2418_v62 = vmul.f32 %v2415_v60, %v4386_v57  ;;  %p3713_p12 = pnand %p3712_p1, %p4078_p4 }
 0xb6e   : > { %v2420_v63 = vadd.f32 %v2418_v62, %v4417_v59  ;;  %v3039_v59 = vld [vmem:[#allocation20 + $0x8] sm:$0xff]  ;;  %p3714_p7 = pneg %p3713_p12 }
 0xb6f   : > { %2507 = vmatpush.bf16.msrb.mxu1 %v3039_v59 }
 0xb70   : > { %v2424_v0 = vsel %vm1082_vm0, %v2420_v63, 0.0 }
 0xb71   : > { %2425 = vadd.xlane.f32.xlu1 %v2424_v0 }
 0xb73   : > { %2508 = vmatpush.bf16.msrb.mxu1 %v3038_v42 }
 0xbdc   : > { %v2423_v1 = vpop.xlane.xlu0 %2422 }
 0xbdd   : > { %v2427_v2 = vmul.f32 %v2423_v1, %v4396_v11 }
 0xbdf   : > { %v2429_v51 = vsub.f32 %v2419_v28, %v2427_v2 }
 0xbe1   : > { %v2431_v52 = vmul.f32 %v2429_v51, %v2429_v51 }
 0xbe3   : > { %v2433_v4 = vsel %vm1082_vm0, %v2431_v52, 0.0 }
 0xbe4   : > { %v2426_v58 = vpop.xlane.xlu1 %2425  ;;  %2434 = vadd.xlane.f32.xlu2 %v2433_v4 }
 0xbe5   : > { %v2428_v5 = vmul.f32 %v2426_v58, %v4396_v11 }
 0xbe7   : > { %v2430_v7 = vsub.f32 %v2420_v63, %v2428_v5 }
 0xbe9   : > { %v2432_v21 = vmul.f32 %v2430_v7, %v2430_v7 }
 0xbeb   : > { %v2436_v34 = vsel %vm1082_vm0, %v2432_v21, 0.0 }
 0xbec   : > { %2437 = vadd.xlane.f32.xlu0 %v2436_v34 }
 0xc57   : > { %v2435_v30 = vpop.xlane.xlu2 %2434 }
 0xc58   : > { %v2439_v3 = vmul.f32 %v2435_v30, %v4396_v11 }
 0xc5a   : > { %v2441_v50 = vadd.f32 1e-05, %v2439_v3 }
 0xc5c   : > { %3327 = vrsqrt.f32 %v2441_v50  ;;  %vm2449_vm2 = vweird.f32 %v2441_v50 }
 0xc5f   : > { %v2438_v17 = vpop.xlane.xlu0 %2437 }
 0xc60   : > { %v2440_v6 = vmul.f32 %v2438_v17, %v4396_v11 }
 0xc62   : > { %v3328_v39 = vpop.eup %3327  ;;  %v2442_v16 = vadd.f32 1e-05, %v2440_v6 }
 0xc63   : > { %v2444_v14 = vmul.f32 %v3328_v39, %v2441_v50  ;;  %vm2450_vm1 = vweird.f32 %v3328_v39 }
 0xc64   : > { %3329 = vrsqrt.f32 %v2442_v16  ;;  %vm2451_vm10 = vmor %vm2449_vm2, %vm2450_vm1  ;;  %vm2459_vm12 = vweird.f32 %v2442_v16 }
 0xc65   : > { %v2445_v15 = vmul.f32 %v3328_v39, %v2444_v14 }
 0xc67   : > { %v2446_v10 = vmul.f32 0.5, %v2445_v15 }
 0xc69   : > { %v2447_v18 = vsub.f32 1.5, %v2446_v10 }
 0xc6a   : > { %v3330_v19 = vpop.eup %3329 }
 0xc6b   : > { %v2448_v20 = vmul.f32 %v3328_v39, %v2447_v18  ;;  %v2454_v22 = vmul.f32 %v3330_v19, %v2442_v16  ;;  %vm2460_vm11 = vweird.f32 %v3330_v19 }
 0xc6c   : > { %vm2461_vm13 = vmor %vm2459_vm12, %vm2460_vm11 }
 0xc6d   : > { %v2455_v36 = vmul.f32 %v3330_v19, %v2454_v22  ;;  %v2452_v38 = vsel %vm2451_vm10, %v3328_v39, %v2448_v20 }
 0xc6e   : > { %v2463_v13 = vmul.f32 %v2452_v38, %v2429_v51  ;;  %v3255_v38 = vld [vmem:[%s4776_s6] ss:$0 sm:$0xff]  ;;  %s3715_s6 = scalar_lea.hbm %s4778_s11, 32 }
 0xc6f   : > { %v2456_v12 = vmul.f32 0.5, %v2455_v36  ;;  %p3717_p5 = scmp.lt.s32.totalorder %s3715_s6, %s3711_s1 }
 0xc70   : > { %v2469_v29 = vmul.f32 %v3251_v23, %v2463_v13 }
 0xc71   : > { %v2457_v56 = vsub.f32 1.5, %v2456_v12  ;;  %p3718_p8 = por %p3717_p5, %p3716_p9 }
 0xc72   : > { %v2475_v31 = vadd.f32 %v3252_v27, %v2469_v29 }
 0xc73   : > { %v2458_v25 = vmul.f32 %v3330_v19, %v2457_v56  ;;  %v3256_v56 = vld [vmem:[%s4777_s12] ss:$0 sm:$0xff]  ;;  %p3719_p10 = pnand %p3718_p8, %p3714_p7 }
 0xc75   : > { %v2462_v41 = vsel %vm2461_vm13, %v3330_v19, %v2458_v25 }
 0xc76   : > { %v2464_v24 = vmul.f32 %v2462_v41, %v2430_v7 }
 0xc78   : > { %v2470_v26 = vmul.f32 %v3251_v23, %v2464_v24 }
 0xc7a   : > { %v2476_v33 = vadd.f32 %v3252_v27, %v2470_v26 }
 0xc7c   : > { %v2477_v35 = vpack.c.bf16 %v2476_v33, %v2475_v31 }
 0xc7e   : > { %3005 = vmatmul.msk.bf16.vlgmr.msrb.gmra.mxu1 %vm1082_vm0, %v2477_v35 }
 0xcfb   : > { %v2510_v32 = vpop.f32.mrf.mxu1 }
 0xcfc   : > { %v2511_v45 = vadd.f32 %v3253_v9, %v2510_v32 }
 0xcfe   : > { %v2517_v8 = vmul.f32 0.01, %v2511_v45  ;;  %vm2515_vm14 = vcmp.gt.f32.partialorder %v2511_v45, 0.0 }
 0xd00   : > { %v2519_v53 = vsel %vm2515_vm14, %v2511_v45, %v2517_v8 }
 0xd03   : > { %v2512_v46 = vpop.f32.mrf.mxu1 }
 0xd04   : > { %v2513_v61 = vadd.f32 %v3253_v9, %v2512_v46 }
 0xd06   : > { %vm2516_vm15 = vcmp.gt.f32.partialorder %v2513_v61, 0.0  ;;  %v2518_v48 = vmul.f32 0.01, %v2513_v61 }
 0xd08   : > { %v2520_v54 = vsel %vm2516_vm15, %v2513_v61, %v2518_v48 }
 0xd09   : > { %v2521_v28 = vpack.c.bf16 %v2520_v54, %v2519_v53 }
 0xd0b   : > { %3022 = vmatmul.msk.bf16.vlgmr.msrb.gmra.mxu2 %vm2558_vm3, %v2521_v28 }
 0xd8e   : > { %v2571_v47 = vpop.f32.mrf.mxu2 }
 0xd8f   : > { %v2572_v60 = vadd.f32 %v3254_v55, %v2571_v47 }
 0xd91   : > { %v2576_v62 = vmul.f32 %v2572_v60, %v4381_v49 }
 0xd93   : > { %v2578_v63 = vadd.f32 %v2576_v62, %v2475_v31 }
 0xd95   : > { %v2580_v0 = vsel %vm1082_vm0, %v2578_v63, 0.0 }
 0xd96   : > { %v2573_v1 = vpop.f32.mrf.mxu2  ;;  %2581 = vadd.xlane.f32.xlu1 %v2580_v0 }
 0xd97   : > { %v2574_v2 = vadd.f32 %v3254_v55, %v2573_v1 }
 0xd99   : > { %v2577_v51 = vmul.f32 %v2574_v2, %v4386_v57 }
 0xd9b   : > { %v2579_v52 = vadd.f32 %v2577_v51, %v2476_v33 }
 0xd9d   : > { %v2583_v4 = vsel %vm1082_vm0, %v2579_v52, 0.0 }
 0xd9e   : > { %2584 = vadd.xlane.f32.xlu2 %v2583_v4 }
 0xe09   : > { %v2582_v58 = vpop.xlane.xlu1 %2581 }
 0xe0a   : > { %v2586_v5 = vmul.f32 %v2582_v58, %v4396_v11 }
 0xe0c   : > { %v2588_v7 = vsub.f32 %v2578_v63, %v2586_v5 }
 0xe0e   : > { %v2590_v21 = vmul.f32 %v2588_v7, %v2588_v7 }
 0xe10   : > { %v2592_v34 = vsel %vm1082_vm0, %v2590_v21, 0.0 }
 0xe11   : > { %v2585_v49 = vpop.xlane.xlu2 %2584  ;;  %2593 = vadd.xlane.f32.xlu0 %v2592_v34 }
 0xe12   : > { %v2587_v59 = vmul.f32 %v2585_v49, %v4396_v11 }
 0xe14   : > { %v2589_v30 = vsub.f32 %v2579_v52, %v2587_v59 }
 0xe16   : > { %v2591_v3 = vmul.f32 %v2589_v30, %v2589_v30 }
 0xe18   : > { %v2595_v50 = vsel %vm1082_vm0, %v2591_v3, 0.0 }
 0xe19   : > { %2596 = vadd.xlane.f32.xlu1 %v2595_v50 }
 0xe84   : > { %v2594_v57 = vpop.xlane.xlu0 %2593 }
 0xe85   : > { %v2598_v42 = vmul.f32 %v2594_v57, %v4396_v11 }
 0xe87   : > { %v2600_v17 = vadd.f32 1e-05, %v2598_v42 }
 0xe89   : > { %3331 = vrsqrt.f32 %v2600_v17  ;;  %vm2608_vm5 = vweird.f32 %v2600_v17 }
 0xe8c   : > { %v2597_v6 = vpop.xlane.xlu1 %2596 }
 0xe8d   : > { %v2599_v39 = vmul.f32 %v2597_v6, %v4396_v11 }
 0xe8f   : > { %v3332_v16 = vpop.eup %3331  ;;  %v2601_v14 = vadd.f32 1e-05, %v2599_v39 }
 0xe90   : > { %v2603_v15 = vmul.f32 %v3332_v16, %v2600_v17  ;;  %vm2609_vm4 = vweird.f32 %v3332_v16 }
 0xe91   : > { %3333 = vrsqrt.f32 %v2601_v14  ;;  %vm2610_vm6 = vmor %vm2608_vm5, %vm2609_vm4  ;;  %vm2618_vm8 = vweird.f32 %v2601_v14 }
 0xe92   : > { %v2604_v10 = vmul.f32 %v3332_v16, %v2603_v15 }
 0xe94   : > { %v2605_v18 = vmul.f32 0.5, %v2604_v10 }
 0xe96   : > { %v2606_v19 = vsub.f32 1.5, %v2605_v18 }
 0xe97   : > { %v3334_v20 = vpop.eup %3333 }
 0xe98   : > { %v2607_v22 = vmul.f32 %v3332_v16, %v2606_v19  ;;  %v2613_v36 = vmul.f32 %v3334_v20, %v2601_v14  ;;  %vm2619_vm7 = vweird.f32 %v3334_v20 }
 0xe99   : > { %vm2620_vm9 = vmor %vm2618_vm8, %vm2619_vm7 }
 0xe9a   : > { %v2611_v11 = vsel %vm2610_vm6, %v3332_v16, %v2607_v22  ;;  %v2614_v12 = vmul.f32 %v3334_v20, %v2613_v36 }
 0xe9b   : > { %v2622_v23 = vmul.f32 %v2611_v11, %v2588_v7 }
 0xe9c   : > { %v2615_v13 = vmul.f32 0.5, %v2614_v12 }
 0xe9d   : > { %v2628_v25 = vmul.f32 %v3255_v38, %v2622_v23 }
 0xe9e   : > { %v2616_v41 = vsub.f32 1.5, %v2615_v13 }
 0xe9f   : > { %v2634_v27 = vadd.f32 %v3256_v56, %v2628_v25 }
 0xea0   : > { %v2617_v29 = vmul.f32 %v3334_v20, %v2616_v41 }
 0xea1   : > { %2636 = vst.msk [vmem:[%s1027_s23] sm:$0xff] %vm1082_vm0, %v2634_v27 }
 0xea2   : > { %v2621_v24 = vsel %vm2620_vm9, %v3334_v20, %v2617_v29 }
 0xea3   : > { %v2623_v26 = vmul.f32 %v2621_v24, %v2589_v30 }
 0xea5   : > { %v2629_v31 = vmul.f32 %v3255_v38, %v2623_v26 }
 0xea7   : > { %v2635_v33 = vadd.f32 %v3256_v56, %v2629_v31 }
 0xea9   : > { %2637 = vst.msk [vmem:[%s1027_s23 + $0x8] sm:$0xff] %vm1082_vm0, %v2635_v33 }
 0xeaa   : > { %3722 = shalt.err (!%p3719_p10)
}
 0xeab   : > { %s3815_s28 = smov 128  }
 0xeac   : > { %3089 = dma.vmem_to_hbm [thread:$0]  (%p4078_p4), %s2652_s0, 256, %s2654_s14, %s2639_s8, %s3815_s28, %s3815_s28, %s3812_s7  }
 0xead PF: > { %s2668_s12 = sand.u32 1, %s3777_s29   ;;  %p4779_p13 = scmp.ge.s32.totalorder %s3789_s30, 2 }
 0xeae   : > { %s2669_s13 = scalar_lea.sflag [#allocation4], %s2668_s12 }
 0xeaf   : > { %p3130_p11 = pnand %p4779_p13, %p4082_p6 }
 0xeb1   : > { %p3131_p0 = pneg %p3130_p11 }
 0xeb3   : > { %3772 = dma.done.wait (%p3131_p0), %s2669_s13, 256  }
 0xeb4   : > { %3774 = vsyncadd (%p3131_p0), %s2669_s13, 4294967040  ;;  %s4780_s3 = sld [smem:[#allocation32_spill]]  ;;  %p46_p2 = scmp.ge.s32.totalorder %s4052_s18, 4  }
 0xeb5   : > { %s4781_s6 = sld [smem:[#allocation33_spill]]  ;;  %s4782_s29 = smov %s3781_s2 }
 0xeb6   : > { %s4784_s30 = smov %s4052_s18  ;;  %48 = sbr.rel (!%p46_p2) target bundleno = 36 (0x24), region = 229 }
 0xeba   : > { %s4783_s2 = smov %s4780_s3 }
 0xebb   :  { %2675 = vsyncpa [#allocation3], 1 }
 0xebc   :  { %2677 = vsyncpa [#allocation3 + $0x1], 1 }
 0xebd   :  { %2678 = vsyncpa [#allocation6], 1 }
 0xebe   :  { %2680 = vsyncpa [#allocation6 + $0x1], 1 }
 0xebf   :  { %2681 = vsyncpa [#allocation9], 1 }
 0xec0   :  { %2682 = vsyncpa [#allocation12], 1 }
 0xec1   :  { %2683 = vsyncpa [#allocation15], 1 }
 0xec2   :  { %2684 = vsyncpa [#allocation18], 1 }
 0xec3   :  { %2685 = vsyncpa [#allocation21], 1 }
 0xec4   :  { %2686 = vsyncpa [#allocation4], 1 }
 0xec5   :  { %2688 = vsyncpa [#allocation4 + $0x1], 1 }

</bundles_post_ra>
